<compile_context>
chip_gen: v6e
topology: v6e:2x2x1
jax: 0.10.0
libtpu: 0.0.40
codegen_flags: <defaults>
</compile_context>

<pallas_src>
import math
from functools import partial

import jax
import jax.numpy as jnp
from jax.experimental import pallas as pl
from jax.experimental.pallas import tpu as pltpu


# ---------------------------------------------------------------------------
# helpers / chip gating
# ---------------------------------------------------------------------------
def _round_up(x, m):
    return ((x + m - 1) // m) * m


def _pad_channels(c):
    return _round_up(c, 128)


def _chip_vmem_bytes():
    try:
        return int(pltpu.get_tpu_info().vmem_capacity_bytes)
    except Exception:
        return 64 * 1024 * 1024          # conservative default (v7x per-TC VMEM)


_VMEM_CAP = _chip_vmem_bytes()
_BIG_VMEM = _VMEM_CAP >= 100 * 1024 * 1024            # v5e / v6e (128 MiB)
_VMEM_LIMIT = int(max(32 * 1024 * 1024,
                      min(_VMEM_CAP * 0.55, 100 * 1024 * 1024)))


# ---------------------------------------------------------------------------
# Pallas kernels
# ---------------------------------------------------------------------------
def _make_gemm_kernel(has_res: bool, act: str):
    """K-tiled GEMM, f32 VMEM accumulator, fused bias/residual/ReLU epilogue."""

    def kernel(a_ref, b_ref, bias_ref, *rest):
        if has_res:
            res_ref, rest = rest[0], rest[1:]
        o_ref, acc_ref = rest
        k = pl.program_id(2)

        @pl.when(k == 0)
        def _():
            acc_ref[...] = jnp.zeros_like(acc_ref)

        acc_ref[...] += jnp.dot(a_ref[...], b_ref[...],
                                preferred_element_type=jnp.float32)

        @pl.when(k == pl.num_programs(2) - 1)
        def _():
            out = acc_ref[...] + bias_ref[...]
            if has_res:
                out = out + res_ref[...]            # residual arrives in f32
            if act == "relu":
                out = jnp.maximum(out, 0.0)
            o_ref[...] = out.astype(o_ref.dtype)

    return kernel


def _make_conv3x3_kernel(Wo, TH, TN, has_res: bool, act: str):
    """Fused stride-1 3x3 conv: the three kh taps are accumulated in-kernel from a
    halo'd row slab (no im2col buffer for the H window)."""
    TMo = TH * Wo

    def kernel(a_ref, w_ref, bias_ref, *rest):
        if has_res:
            res_ref, rest = rest[0], rest[1:]
        (o_ref,) = rest
        acc = jnp.zeros((TMo, TN), jnp.float32)
        for kh in range(3):                         # static tap loop -> 3 MXU matmuls
            a = a_ref[kh * Wo: kh * Wo + TMo, :]    # shifted row window of the slab
            acc = acc + jnp.dot(a, w_ref[kh],
                                preferred_element_type=jnp.float32)
        out = acc + bias_ref[...]
        if has_res:
            out = out + res_ref[...]
        if act == "relu":
            out = jnp.maximum(out, 0.0)
        o_ref[...] = out.astype(o_ref.dtype)

    return kernel


def _head_kernel(x_ref, w_ref, b_ref, o_ref):
    # Final ReLU -> AdaptiveAvgPool2d(1) -> Flatten -> Linear, all in one kernel.
    x = jnp.maximum(x_ref[...].astype(jnp.float32), 0.0)
    pooled = jnp.mean(x, axis=1)                    # (N, C) global average pool
    o_ref[...] = jnp.dot(pooled, w_ref[...],
                         preferred_element_type=jnp.float32) + b_ref[...]


# ---------------------------------------------------------------------------
# GEMM wrapper (im2col fallback path)
# ---------------------------------------------------------------------------
def gemm_fused(a, b, bias, residual=None, act="none", out_dtype=jnp.bfloat16):
    """(M,K) @ (K,N) + bias [+ f32 residual], fused activation, bf16 MXU operands."""
    M, K = a.shape
    K2, N = b.shape
    assert K == K2

    Np = _pad_channels(N)               # lane-dense outputs (unmasked vst)
    if Np != N:
        b = jnp.pad(b, ((0, 0), (0, Np - N)))
        bias = jnp.pad(bias, (0, Np - N))
        if residual is not None:
            residual = jnp.pad(residual, ((0, 0), (0, Np - N)))

    # --- M tiles: multiples of 16 (bf16 packing); keep >=2 tiles when possible ---
    if M >= 1024 and _BIG_VMEM:
        TM = 512
    elif M >= 512:
        TM = 256
    elif M >= 256:
        TM = 128
    elif M >= 32:
        TM = _round_up((M + 1) // 2, 16)
    else:
        TM = _round_up(max(M, 1), 16)
    Mp = _round_up(M, TM)
    n_m = Mp // TM

    # --- N tiles: prefer >=2 tiles when the M axis only has one (v7x dual-TC) ---
    TN = 512 if Np % 512 == 0 else (256 if Np % 256 == 0 else 128)
    if n_m == 1 and Np // TN == 1:
        if Np > 256 and Np % 256 == 0:
            TN = 256
        elif Np > 128:
            TN = 128

    # --- K tiles: TK (nearly) divides K in 128-multiples; no wasteful K padding ---
    k_single_max = 2048 if _BIG_VMEM else 1536
    if K <= k_single_max:
        nk = 1
        TK = Kp = _round_up(K, 16)
    else:
        K128 = _round_up(K, 128)
        nk_lo = -(-K128 // k_single_max)
        best = None
        for nk_c in range(nk_lo, nk_lo + 8):
            tk = _round_up(-(-K128 // nk_c), 128)
            padk = tk * nk_c - K
            if best is None or padk < best[2]:
                best = (nk_c, tk, padk)
            if padk < 128:
                break
        nk, TK, _ = best
        Kp = TK * nk

    if Mp != M:
        a = jnp.pad(a, ((0, Mp - M), (0, 0)))
        if residual is not None:
            residual = jnp.pad(residual, ((0, Mp - M), (0, 0)))
    if Kp != K:
        a = jnp.pad(a, ((0, 0), (0, Kp - K)))
        b = jnp.pad(b, ((0, Kp - K), (0, 0)))

    a = a.astype(jnp.bfloat16)
    b = b.astype(jnp.bfloat16)
    bias2 = bias.reshape(1, Np).astype(jnp.float32)
    has_res = residual is not None
    if has_res:
        residual = residual.astype(jnp.float32)     # residual stays f32 (fidelity)

    grid = (n_m, Np // TN, nk)
    in_specs = [
        pl.BlockSpec((TM, TK), lambda i, j, k: (i, k)),
        # TODO(synk): sweep pipeline_mode=pl.Buffered(3) on this spec for the
        # K-tiled GEMMs once its perf is validated on the target chips.
        pl.BlockSpec((TK, TN), lambda i, j, k: (k, j)),
        pl.BlockSpec((1, TN), lambda i, j, k: (0, j)),
    ]
    args = [a, b, bias2]
    if has_res:
        in_specs.append(pl.BlockSpec((TM, TN), lambda i, j, k: (i, j)))
        args.append(residual)

    out = pl.pallas_call(
        _make_gemm_kernel(has_res, act),
        out_shape=jax.ShapeDtypeStruct((Mp, Np), out_dtype),
        grid=grid,
        in_specs=in_specs,
        out_specs=pl.BlockSpec((TM, TN), lambda i, j, k: (i, j)),
        scratch_shapes=[pltpu.VMEM((TM, TN), jnp.float32)],
        compiler_params=pltpu.CompilerParams(
            dimension_semantics=("parallel", "parallel", "arbitrary"),
            vmem_limit_bytes=_VMEM_LIMIT,
        ),
    )(*args)
    return out[:M]


def im2col(x, k, stride, pad):
    """x: (N,H,W,C) -> patches (N*Ho*Wo, k*k*C) in (kh, kw, c) order."""
    N, H, W, C = x.shape
    if pad:
        x = jnp.pad(x, ((0, 0), (pad, pad), (pad, pad), (0, 0)))
    Ho = (H + 2 * pad - k) // stride + 1
    Wo = (W + 2 * pad - k) // stride + 1
    cols = []
    for kh in range(k):
        for kw in range(k):
            patch = jax.lax.slice(
                x,
                (0, kh, kw, 0),
                (N, kh + (Ho - 1) * stride + 1, kw + (Wo - 1) * stride + 1, C),
                (1, stride, stride, 1),
            )
            cols.append(patch)
    patches = jnp.concatenate(cols, axis=-1)
    return patches.reshape(N * Ho * Wo, k * k * C), (N, Ho, Wo)


# ---------------------------------------------------------------------------
# Fused stride-1 3x3 conv (no HBM im2col for the H window)
# ---------------------------------------------------------------------------
def _fused_conv_plan(N, H, W, c_trim, np_):
    """Tile plan (TH, TN) for the fused stride-1 3x3 conv, or None -> im2col fallback.

    Constraints keep every in-kernel slice sublane-aligned for bf16 and the
    per-step VMEM footprint inside budget; tiny-spatial layers fall back (their
    im2col expansion is negligible anyway)."""
    if W % 8 != 0 or c_trim % 2 != 0:
        return None
    cands = [th for th in range(1, H + 1) if H % th == 0 and th * W <= 512]
    if not cands:
        return None
    th = min(cands, key=lambda t: abs(t * W - 256))
    n_m = N * (H // th)
    TN = 512 if np_ % 512 == 0 else (256 if np_ % 256 == 0 else 128)
    if n_m == 1 and np_ // TN == 1:                 # keep both v7x TCs busy
        if np_ > 256 and np_ % 256 == 0:
            TN = 256
        elif np_ > 128:
            TN = 128
    srp = _round_up((th + 2) * W, 8)
    tmo = th * W
    kt = 3 * c_trim
    est = (2 * (srp * kt * 2 + 3 * kt * TN * 2 + tmo * TN * 2 + tmo * TN * 4)
           + tmo * TN * 4)
    if est > 0.6 * _VMEM_LIMIT:
        return None
    return th, TN


def conv3x3_s1_fused(x, w_mat, bias, c_trim, plan, *, act, residual, out_dtype):
    """x: (N,H,W,c_trim) bf16 (already trimmed/ReLU'd).  w_mat: (9*c_trim, Np)."""
    N, H, W, _ = x.shape
    TH, TN = plan
    Np = w_mat.shape[1]
    Kt = 3 * c_trim
    TMo = TH * W
    nt = H // TH
    num_slabs = N * nt

    # XLA prep (fuses into one gather producer): spatial pad, kw pre-gather (3x),
    # halo'd row slabs (TH+2 input rows per TH output rows).
    xp = jnp.pad(x, ((0, 0), (1, 1), (1, 1), (0, 0)))
    xw = jnp.concatenate([xp[:, :, kw:kw + W, :] for kw in range(3)], axis=-1)
    slabs = jnp.concatenate([xw[:, t * TH:t * TH + TH + 2] for t in range(nt)],
                            axis=1)                        # (N, nt*(TH+2), W, 3*Ct)
    slabs = slabs.reshape(num_slabs, (TH + 2) * W, Kt)
    srp = _round_up((TH + 2) * W, 8)
    if srp != (TH + 2) * W:
        slabs = jnp.pad(slabs, ((0, 0), (0, srp - (TH + 2) * W), (0, 0)))
    slabs = slabs.reshape(num_slabs * srp, Kt)

    w3 = w_mat.reshape(3, Kt, Np)                          # per-kh weight slabs
    bias2 = bias.reshape(1, Np).astype(jnp.float32)
    has_res = residual is not None

    in_specs = [
        pl.BlockSpec((srp, Kt), lambda i, j: (i, 0)),
        pl.BlockSpec((3, Kt, TN), lambda i, j: (0, 0, j)),
        pl.BlockSpec((1, TN), lambda i, j: (0, j)),
    ]
    args = [slabs, w3, bias2]
    if has_res:
        in_specs.append(pl.BlockSpec((TMo, TN), lambda i, j: (i, j)))
        args.append(residual.astype(jnp.float32))

    out = pl.pallas_call(
        _make_conv3x3_kernel(W, TH, TN, has_res, act),
        out_shape=jax.ShapeDtypeStruct((num_slabs * TMo, Np), out_dtype),
        grid=(num_slabs, Np // TN),
        in_specs=in_specs,
        out_specs=pl.BlockSpec((TMo, TN), lambda i, j: (i, j)),
        compiler_params=pltpu.CompilerParams(
            dimension_semantics=("parallel", "parallel"),
            vmem_limit_bytes=_VMEM_LIMIT,
        ),
    )(*args)
    return out


# ---------------------------------------------------------------------------
# Conv dispatcher
# ---------------------------------------------------------------------------
def conv2d(x, w_mat, bias, *, k, stride, pad, c_trim, act="none",
           residual=None, pre_relu=False, out_dtype=jnp.bfloat16):
    """Conv2d on NHWC x (channels may be zero-padded past c_trim).

    Stride-1 3x3 convs take the fused slab kernel when geometry allows; stride-2
    3x3, folded 2x2 skips, 1x1 skips and tiny-spatial convs go through
    im2col + the fused GEMM kernel."""
    if pre_relu:
        x = jnp.maximum(x, 0)                       # next-layer ReLU, fused into gather
    if c_trim < x.shape[-1]:
        x = x[..., :c_trim]                         # trim the reduction dim (K) only
    x = x.astype(jnp.bfloat16)
    Np = w_mat.shape[1]
    res2 = residual.reshape(-1, Np) if residual is not None else None

    if k == 3 and stride == 1 and pad == 1:
        N, H, W, _ = x.shape
        plan = _fused_conv_plan(N, H, W, c_trim, Np)
        if plan is not None:
            out = conv3x3_s1_fused(x, w_mat, bias, c_trim, plan,
                                   act=act, residual=res2, out_dtype=out_dtype)
            return out.reshape(N, H, W, Np)

    patches, (N, Ho, Wo) = im2col(x, k, stride, pad)
    out = gemm_fused(patches, w_mat, bias, residual=res2, act=act,
                     out_dtype=out_dtype)
    return out.reshape(N, Ho, Wo, Np)


def pallas_head(x, w_col, b_lin):
    """ReLU + AdaptiveAvgPool2d(1) + Flatten + Linear(C, 1)."""
    N, H, W, C = x.shape
    x3 = x.reshape(N, H * W, C)
    return pl.pallas_call(
        _head_kernel,
        out_shape=jax.ShapeDtypeStruct((N, 1), jnp.float32),
        compiler_params=pltpu.CompilerParams(vmem_limit_bytes=_VMEM_LIMIT),
    )(x3, w_col, b_lin.reshape(1, 1))


# ---------------------------------------------------------------------------
# Parameter init (PyTorch layout) and one-time preprocessing
# ---------------------------------------------------------------------------
def _init_conv(kw_key, kb_key, cout, cin, k):
    fan_in = cin * k * k
    std = math.sqrt(2.0 / fan_in)                   # kaiming_normal_, a=0, leaky_relu
    w = std * jax.random.normal(kw_key, (cout, cin, k, k), jnp.float32)
    bound = 1.0 / math.sqrt(fan_in)                 # PyTorch default bias init
    b = jax.random.uniform(kb_key, (cout,), jnp.float32, -bound, bound)
    return w, b


def _init_block(key, cin, cout, downsample):
    ks = jax.random.split(key, 6)
    p = {"downsample": downsample}
    p["w1"], p["b1"] = _init_conv(ks[0], ks[1], cout, cin, 3)
    p["w2"], p["b2"] = _init_conv(ks[2], ks[3], cout, cout, 3)
    if cin != cout or downsample:
        p["ws"], p["bs"] = _init_conv(ks[4], ks[5], cout, cin, 1)
    else:
        p["ws"], p["bs"] = None, None
    return p


def init_discriminator(key, in_channels, base_channels=64, num_blocks=(1, 1, 1, 1)):
    keys = iter(jax.random.split(key, 64))
    blocks = [_init_block(next(keys), in_channels, base_channels, True)]
    widths = [base_channels, 2 * base_channels, 4 * base_channels,
              8 * base_channels, 16 * base_channels]
    for stage in range(4):
        cin, cout = widths[stage], widths[stage + 1]
        blocks.append(_init_block(next(keys), cin, cout, True))
        for _ in range(num_blocks[stage] - 1):
            blocks.append(_init_block(next(keys), cout, cout, False))
    fan_in = 16 * base_channels
    std = math.sqrt(2.0 / fan_in)
    lin_w = std * jax.random.normal(next(keys), (1, fan_in), jnp.float32)
    bound = 1.0 / math.sqrt(fan_in)
    lin_b = jax.random.uniform(next(keys), (1,), jnp.float32, -bound, bound)
    return {"blocks": blocks, "lin_w": lin_w, "lin_b": lin_b}


def _conv_weight_mat(w, cout_pad):
    """PyTorch (cout,cin,kh,kw) -> bf16 (kh*kw*cin, cout_pad), row order (kh,kw,c).
    Only the output/lane dim is padded to 128; the reduction dim stays exact."""
    cout, cin, kh, kw = w.shape
    wt = jnp.transpose(w, (2, 3, 1, 0)).reshape(kh * kw * cin, cout)
    wt = jnp.pad(wt, ((0, 0), (0, cout_pad - cout)))
    return wt.astype(jnp.bfloat16)


def _pad_bias(b, cout_pad):
    return jnp.pad(b, (0, cout_pad - b.shape[0])).astype(jnp.float32)


def prepare_params(raw, in_channels):
    """Precompute bf16 GEMM-ready weight slabs once, outside the forward path."""
    blocks = []
    c_in_real = in_channels
    for p in raw["blocks"]:
        cout = p["w1"].shape[0]
        cout_pad = _pad_channels(cout)
        q = {"downsample": p["downsample"],
             "c_in": c_in_real, "c_mid": cout, "cout_pad": cout_pad}
        q["w1_mat"] = _conv_weight_mat(p["w1"], cout_pad)       # K = 9 * c_in_real
        q["b1"] = _pad_bias(p["b1"], cout_pad)
        q["w2_mat"] = _conv_weight_mat(p["w2"], cout_pad)       # K = 9 * cout
        q["b2"] = _pad_bias(p["b2"], cout_pad)
        if p["ws"] is None:
            q["ws_mat"] = None
            q["bs"] = None
            q["skip_k"] = q["skip_stride"] = None
        else:
            w1x1 = _conv_weight_mat(p["ws"], cout_pad)          # (c_in_real, cout_pad)
            if p["downsample"]:
                # AvgPool2d(2) + Conv2d(1x1) == one 2x2/stride-2 conv (weights / 4)
                q["ws_mat"] = jnp.concatenate([w1x1] * 4, axis=0) * 0.25
                q["skip_k"], q["skip_stride"] = 2, 2
            else:
                q["ws_mat"] = w1x1
                q["skip_k"], q["skip_stride"] = 1, 1
            q["bs"] = _pad_bias(p["bs"], cout_pad)
        blocks.append(q)
        c_in_real = cout
    cpad_last = blocks[-1]["cout_pad"]
    lin_w = jnp.pad(raw["lin_w"], ((0, 0), (0, cpad_last - raw["lin_w"].shape[1])))
    return {
        "blocks": blocks,
        "lin_w_col": jnp.transpose(lin_w).astype(jnp.float32),  # (C_pad, 1)
        "lin_b": raw["lin_b"].astype(jnp.float32),
    }


# ---------------------------------------------------------------------------
# Forward pass
# ---------------------------------------------------------------------------
def block_forward(x, p, first_identity=False):
    down = p["downsample"]
    # skip path (AvgPool folded into a 2x2/stride-2 conv when downsampling); f32 out
    if p["ws_mat"] is None:
        skip = x.astype(jnp.float32)
    else:
        skip = conv2d(x, p["ws_mat"], p["bs"], k=p["skip_k"], stride=p["skip_stride"],
                      pad=0, c_trim=p["c_in"], act="none", out_dtype=jnp.float32)
    # main path conv1: 3x3, stride 1 (+downsample), pad 1; first_activation ReLU is
    # applied lazily on the input gather (pre_relu); conv ReLU fused in the epilogue.
    h = conv2d(x, p["w1_mat"], p["b1"], k=3, stride=1 + int(down), pad=1,
               c_trim=p["c_in"], act="relu", pre_relu=not first_identity)
    # conv2: 3x3 stride 1 pad 1, residual added in the epilogue (plain output only;
    # the next block applies its own ReLU where it consumes this tensor).
    out = conv2d(h, p["w2_mat"], p["b2"], k=3, stride=1, pad=1,
                 c_trim=p["c_mid"], act="none", residual=skip)
    return out


def discriminator_forward(x_nchw, params):
    # accept PyTorch NCHW, convert to NHWC bf16 for the kernels
    x = jnp.transpose(x_nchw, (0, 2, 3, 1)).astype(jnp.bfloat16)
    for i, bp in enumerate(params["blocks"]):
        x = block_forward(x, bp, first_identity=(i == 0))
    # head: ReLU -> AdaptiveAvgPool2d(1) -> Flatten -> Linear(16*base, 1)
    return pallas_head(x, params["lin_w_col"], params["lin_b"])


# ---------------------------------------------------------------------------
if __name__ == "__main__":
    key = jax.random.PRNGKey(0)
    pkey, xkey = jax.random.split(key)

    in_channels = 3
    base_channels = 8          # small synthetic config (PyTorch default is 64)
    N, H, W = 2, 32, 32        # 5 downsampling blocks: 32 -> 1 spatial

    raw_params = init_discriminator(pkey, in_channels, base_channels,
                                    num_blocks=(1, 1, 1, 1))
    params = prepare_params(raw_params, in_channels)
    x = jax.random.normal(xkey, (N, in_channels, H, W), jnp.float32)

    fwd = jax.jit(partial(discriminator_forward, params=params))
    score = fwd(x)
    jax.block_until_ready(score)

    assert score.shape == (N, 1), score.shape
    assert score.dtype == jnp.float32
    print("KERNEL_OK")
</pallas_src>

<mosaic_0001>
module attributes {stable_mosaic.version = 11 : i64} {
  func.func @kernel(%arg0: i32, %arg1: i32, %arg2: i32, %arg3: memref<256x32xbf16, #tpu.memory_space<vmem>>, %arg4: memref<32x128xbf16, #tpu.memory_space<vmem>>, %arg5: memref<1x128xf32, #tpu.memory_space<vmem>>, %arg6: memref<256x128xbf16, #tpu.memory_space<vmem>>, %arg7: memref<256x128xf32, #tpu.memory_space<vmem>>) attributes {dimension_semantics = [#tpu.dimension_semantics<parallel>, #tpu.dimension_semantics<parallel>, #tpu.dimension_semantics<arbitrary>], iteration_bounds = array<i64: 2, 1, 1>, scalar_prefetch = 0 : i64, scratch_operands = 1 : i64, tpu.core_type = #tpu.core_type<tc>, window_params = [{transform_indices = @transform_0, window_bounds = array<i64: 256, 32>}, {transform_indices = @transform_1, window_bounds = array<i64: 32, 128>}, {transform_indices = @transform_2, window_bounds = array<i64: 1, 128>}, {transform_indices = @transform_3, window_bounds = array<i64: 256, 128>}]} {
    %c0_i32 = arith.constant 0 : i32
    %0 = arith.cmpi eq, %arg2, %c0_i32 : i32
    %1 = arith.extui %0 : i1 to i32
    %c0_i32_0 = arith.constant 0 : i32
    %2 = arith.cmpi ne, %1, %c0_i32_0 : i32
    scf.if %2 {
      %cst_10 = arith.constant 0.000000e+00 : f32
      %12 = vector.broadcast %cst_10 : f32 to vector<256x128xf32>
      %c0_11 = arith.constant 0 : index
      %c0_12 = arith.constant 0 : index
      %13 = vector.load %arg7[%c0_11, %c0_12] : memref<256x128xf32, #tpu.memory_space<vmem>>, vector<256x128xf32>
      tpu.vector_store %arg7[%c0_11, %c0_12], %12 {strides = array<i32>} : memref<256x128xf32, #tpu.memory_space<vmem>>, vector<256x128xf32>,
    } else {
    }
    %c0 = arith.constant 0 : index
    %c0_1 = arith.constant 0 : index
    %3 = vector.load %arg7[%c0, %c0_1] : memref<256x128xf32, #tpu.memory_space<vmem>>, vector<256x128xf32>
    %c0_2 = arith.constant 0 : index
    %c0_3 = arith.constant 0 : index
    %4 = vector.load %arg3[%c0_2, %c0_3] : memref<256x32xbf16, #tpu.memory_space<vmem>>, vector<256x32xbf16>
    %c0_4 = arith.constant 0 : index
    %c0_5 = arith.constant 0 : index
    %5 = vector.load %arg4[%c0_4, %c0_5] : memref<32x128xbf16, #tpu.memory_space<vmem>>, vector<32x128xbf16>
    %cst = arith.constant dense<0.000000e+00> : vector<256x128xf32>
    %6 = tpu.matmul %4, %5, %cst {dimension_numbers = #tpu.dot_dimension_numbers<[1], [0], [0], [1], [0, 0, 1, 1], [], []>} : vector<256x32xbf16>, vector<32x128xbf16>, vector<256x128xf32> -> vector<256x128xf32>
    %7 = arith.addf %3, %6 : vector<256x128xf32>
    %c0_6 = arith.constant 0 : index
    %c0_7 = arith.constant 0 : index
    %8 = vector.load %arg7[%c0_6, %c0_7] : memref<256x128xf32, #tpu.memory_space<vmem>>, vector<256x128xf32>
    tpu.vector_store %arg7[%c0_6, %c0_7], %7 {strides = array<i32>} : memref<256x128xf32, #tpu.memory_space<vmem>>, vector<256x128xf32>,
    %c0_i32_8 = arith.constant 0 : i32
    %9 = arith.cmpi eq, %arg2, %c0_i32_8 : i32
    %10 = arith.extui %9 : i1 to i32
    %c0_i32_9 = arith.constant 0 : i32
    %11 = arith.cmpi ne, %10, %c0_i32_9 : i32
    scf.if %11 {
      %c0_10 = arith.constant 0 : index
      %c0_11 = arith.constant 0 : index
      %12 = vector.load %arg7[%c0_10, %c0_11] : memref<256x128xf32, #tpu.memory_space<vmem>>, vector<256x128xf32>
      %c0_12 = arith.constant 0 : index
      %c0_13 = arith.constant 0 : index
      %13 = vector.load %arg5[%c0_12, %c0_13] : memref<1x128xf32, #tpu.memory_space<vmem>>, vector<1x128xf32>
      %14 = vector.broadcast %13 : vector<1x128xf32> to vector<256x128xf32>
      %15 = arith.addf %12, %14 : vector<256x128xf32>
      %cst_14 = arith.constant 0.000000e+00 : f32
      %16 = vector.broadcast %cst_14 : f32 to vector<256x128xf32>
      %17 = arith.maximumf %15, %16 : vector<256x128xf32>
      %18 = arith.truncf %17 : vector<256x128xf32> to vector<256x128xbf16>
      %c0_15 = arith.constant 0 : index
      %c0_16 = arith.constant 0 : index
      %19 = vector.load %arg6[%c0_15, %c0_16] : memref<256x128xbf16, #tpu.memory_space<vmem>>, vector<256x128xbf16>
      tpu.vector_store %arg6[%c0_15, %c0_16], %18 {strides = array<i32>} : memref<256x128xbf16, #tpu.memory_space<vmem>>, vector<256x128xbf16>,
    } else {
    }
    return
  }
  func.func @transform_0(%arg0: i32, %arg1: i32, %arg2: i32) -> (i32, i32) {
    %c0_i32 = arith.constant 0 : i32
    return %arg0, %arg2 : i32, i32
  }
  func.func @transform_1(%arg0: i32, %arg1: i32, %arg2: i32) -> (i32, i32) {
    %c0_i32 = arith.constant 0 : i32
    return %arg2, %arg1 : i32, i32
  }
  func.func @transform_2(%arg0: i32, %arg1: i32, %arg2: i32) -> (i32, i32) {
    %c0_i32 = arith.constant 0 : i32
    %c0_i32_0 = arith.constant 0 : i32
    return %c0_i32, %arg1 : i32, i32
  }
  func.func @transform_3(%arg0: i32, %arg1: i32, %arg2: i32) -> (i32, i32) {
    %c0_i32 = arith.constant 0 : i32
    return %arg0, %arg1 : i32, i32
  }
}

module attributes {stable_mosaic.version = 11 : i64} {
  func.func @kernel(%arg0: i32, %arg1: i32, %arg2: i32, %arg3: memref<256x16xbf16, #tpu.memory_space<vmem>>, %arg4: memref<16x128xbf16, #tpu.memory_space<vmem>>, %arg5: memref<1x128xf32, #tpu.memory_space<vmem>>, %arg6: memref<256x128xf32, #tpu.memory_space<vmem>>, %arg7: memref<256x128xf32, #tpu.memory_space<vmem>>) attributes {dimension_semantics = [#tpu.dimension_semantics<parallel>, #tpu.dimension_semantics<parallel>, #tpu.dimension_semantics<arbitrary>], iteration_bounds = array<i64: 2, 1, 1>, scalar_prefetch = 0 : i64, scratch_operands = 1 : i64, tpu.core_type = #tpu.core_type<tc>, window_params = [{transform_indices = @transform_0, window_bounds = array<i64: 256, 16>}, {transform_indices = @transform_1, window_bounds = array<i64: 16, 128>}, {transform_indices = @transform_2, window_bounds = array<i64: 1, 128>}, {transform_indices = @transform_3, window_bounds = array<i64: 256, 128>}]} {
    %c0_i32 = arith.constant 0 : i32
    %0 = arith.cmpi eq, %arg2, %c0_i32 : i32
    %1 = arith.extui %0 : i1 to i32
    %c0_i32_0 = arith.constant 0 : i32
    %2 = arith.cmpi ne, %1, %c0_i32_0 : i32
    scf.if %2 {
      %cst_10 = arith.constant 0.000000e+00 : f32
      %12 = vector.broadcast %cst_10 : f32 to vector<256x128xf32>
      %c0_11 = arith.constant 0 : index
      %c0_12 = arith.constant 0 : index
      %13 = vector.load %arg7[%c0_11, %c0_12] : memref<256x128xf32, #tpu.memory_space<vmem>>, vector<256x128xf32>
      tpu.vector_store %arg7[%c0_11, %c0_12], %12 {strides = array<i32>} : memref<256x128xf32, #tpu.memory_space<vmem>>, vector<256x128xf32>,
    } else {
    }
    %c0 = arith.constant 0 : index
    %c0_1 = arith.constant 0 : index
    %3 = vector.load %arg7[%c0, %c0_1] : memref<256x128xf32, #tpu.memory_space<vmem>>, vector<256x128xf32>
    %c0_2 = arith.constant 0 : index
    %c0_3 = arith.constant 0 : index
    %4 = vector.load %arg3[%c0_2, %c0_3] : memref<256x16xbf16, #tpu.memory_space<vmem>>, vector<256x16xbf16>
    %c0_4 = arith.constant 0 : index
    %c0_5 = arith.constant 0 : index
    %5 = vector.load %arg4[%c0_4, %c0_5] : memref<16x128xbf16, #tpu.memory_space<vmem>>, vector<16x128xbf16>
    %cst = arith.constant dense<0.000000e+00> : vector<256x128xf32>
    %6 = tpu.matmul %4, %5, %cst {dimension_numbers = #tpu.dot_dimension_numbers<[1], [0], [0], [1], [0, 0, 1, 1], [], []>} : vector<256x16xbf16>, vector<16x128xbf16>, vector<256x128xf32> -> vector<256x128xf32>
    %7 = arith.addf %3, %6 : vector<256x128xf32>
    %c0_6 = arith.constant 0 : index
    %c0_7 = arith.constant 0 : index
    %8 = vector.load %arg7[%c0_6, %c0_7] : memref<256x128xf32, #tpu.memory_space<vmem>>, vector<256x128xf32>
    tpu.vector_store %arg7[%c0_6, %c0_7], %7 {strides = array<i32>} : memref<256x128xf32, #tpu.memory_space<vmem>>, vector<256x128xf32>,
    %c0_i32_8 = arith.constant 0 : i32
    %9 = arith.cmpi eq, %arg2, %c0_i32_8 : i32
    %10 = arith.extui %9 : i1 to i32
    %c0_i32_9 = arith.constant 0 : i32
    %11 = arith.cmpi ne, %10, %c0_i32_9 : i32
    scf.if %11 {
      %c0_10 = arith.constant 0 : index
      %c0_11 = arith.constant 0 : index
      %12 = vector.load %arg7[%c0_10, %c0_11] : memref<256x128xf32, #tpu.memory_space<vmem>>, vector<256x128xf32>
      %c0_12 = arith.constant 0 : index
      %c0_13 = arith.constant 0 : index
      %13 = vector.load %arg5[%c0_12, %c0_13] : memref<1x128xf32, #tpu.memory_space<vmem>>, vector<1x128xf32>
      %14 = vector.broadcast %13 : vector<1x128xf32> to vector<256x128xf32>
      %15 = arith.addf %12, %14 : vector<256x128xf32>
      %c0_14 = arith.constant 0 : index
      %c0_15 = arith.constant 0 : index
      %16 = vector.load %arg6[%c0_14, %c0_15] : memref<256x128xf32, #tpu.memory_space<vmem>>, vector<256x128xf32>
      tpu.vector_store %arg6[%c0_14, %c0_15], %15 {strides = array<i32>} : memref<256x128xf32, #tpu.memory_space<vmem>>, vector<256x128xf32>,
    } else {
    }
    return
  }
  func.func @transform_0(%arg0: i32, %arg1: i32, %arg2: i32) -> (i32, i32) {
    %c0_i32 = arith.constant 0 : i32
    return %arg0, %arg2 : i32, i32
  }
  func.func @transform_1(%arg0: i32, %arg1: i32, %arg2: i32) -> (i32, i32) {
    %c0_i32 = arith.constant 0 : i32
    return %arg2, %arg1 : i32, i32
  }
  func.func @transform_2(%arg0: i32, %arg1: i32, %arg2: i32) -> (i32, i32) {
    %c0_i32 = arith.constant 0 : i32
    %c0_i32_0 = arith.constant 0 : i32
    return %c0_i32, %arg1 : i32, i32
  }
  func.func @transform_3(%arg0: i32, %arg1: i32, %arg2: i32) -> (i32, i32) {
    %c0_i32 = arith.constant 0 : i32
    return %arg0, %arg1 : i32, i32
  }
}

module attributes {stable_mosaic.version = 11 : i64} {
  func.func @kernel(%arg0: i32, %arg1: i32, %arg2: memref<288x24xbf16, #tpu.memory_space<vmem>>, %arg3: memref<3x24x128xbf16, #tpu.memory_space<vmem>>, %arg4: memref<1x128xf32, #tpu.memory_space<vmem>>, %arg5: memref<256x128xf32, #tpu.memory_space<vmem>>, %arg6: memref<256x128xbf16, #tpu.memory_space<vmem>>) attributes {dimension_semantics = [#tpu.dimension_semantics<parallel>, #tpu.dimension_semantics<parallel>], iteration_bounds = array<i64: 2, 1>, scalar_prefetch = 0 : i64, scratch_operands = 0 : i64, tpu.core_type = #tpu.core_type<tc>, window_params = [{transform_indices = @transform_0, window_bounds = array<i64: 288, 24>}, {transform_indices = @transform_1, window_bounds = array<i64: 3, 24, 128>}, {transform_indices = @transform_2, window_bounds = array<i64: 1, 128>}, {transform_indices = @transform_3, window_bounds = array<i64: 256, 128>}, {transform_indices = @transform_4, window_bounds = array<i64: 256, 128>}]} {
    %cst = arith.constant 0.000000e+00 : f32
    %0 = vector.broadcast %cst : f32 to vector<256x128xf32>
    %c0 = arith.constant 0 : index
    %c0_0 = arith.constant 0 : index
    %1 = vector.load %arg2[%c0, %c0_0] : memref<288x24xbf16, #tpu.memory_space<vmem>>, vector<256x24xbf16>
    %c0_1 = arith.constant 0 : index
    %c0_2 = arith.constant 0 : index
    %c0_3 = arith.constant 0 : index
    %2 = vector.load %arg3[%c0_1, %c0_2, %c0_3] : memref<3x24x128xbf16, #tpu.memory_space<vmem>>, vector<1x24x128xbf16>
    %3 = vector.shape_cast %2 : vector<1x24x128xbf16> to vector<24x128xbf16>
    %cst_4 = arith.constant dense<0.000000e+00> : vector<256x128xf32>
    %4 = tpu.matmul %1, %3, %cst_4 {dimension_numbers = #tpu.dot_dimension_numbers<[1], [0], [0], [1], [0, 0, 1, 1], [], []>} : vector<256x24xbf16>, vector<24x128xbf16>, vector<256x128xf32> -> vector<256x128xf32>
    %5 = arith.addf %0, %4 : vector<256x128xf32>
    %c16 = arith.constant 16 : index
    %c0_5 = arith.constant 0 : index
    %6 = vector.load %arg2[%c16, %c0_5] : memref<288x24xbf16, #tpu.memory_space<vmem>>, vector<256x24xbf16>
    %c1 = arith.constant 1 : index
    %c0_6 = arith.constant 0 : index
    %c0_7 = arith.constant 0 : index
    %7 = vector.load %arg3[%c1, %c0_6, %c0_7] : memref<3x24x128xbf16, #tpu.memory_space<vmem>>, vector<1x24x128xbf16>
    %8 = vector.shape_cast %7 : vector<1x24x128xbf16> to vector<24x128xbf16>
    %cst_8 = arith.constant dense<0.000000e+00> : vector<256x128xf32>
    %9 = tpu.matmul %6, %8, %cst_8 {dimension_numbers = #tpu.dot_dimension_numbers<[1], [0], [0], [1], [0, 0, 1, 1], [], []>} : vector<256x24xbf16>, vector<24x128xbf16>, vector<256x128xf32> -> vector<256x128xf32>
    %10 = arith.addf %5, %9 : vector<256x128xf32>
    %c32 = arith.constant 32 : index
    %c0_9 = arith.constant 0 : index
    %11 = vector.load %arg2[%c32, %c0_9] : memref<288x24xbf16, #tpu.memory_space<vmem>>, vector<256x24xbf16>
    %c2 = arith.constant 2 : index
    %c0_10 = arith.constant 0 : index
    %c0_11 = arith.constant 0 : index
    %12 = vector.load %arg3[%c2, %c0_10, %c0_11] : memref<3x24x128xbf16, #tpu.memory_space<vmem>>, vector<1x24x128xbf16>
    %13 = vector.shape_cast %12 : vector<1x24x128xbf16> to vector<24x128xbf16>
    %cst_12 = arith.constant dense<0.000000e+00> : vector<256x128xf32>
    %14 = tpu.matmul %11, %13, %cst_12 {dimension_numbers = #tpu.dot_dimension_numbers<[1], [0], [0], [1], [0, 0, 1, 1], [], []>} : vector<256x24xbf16>, vector<24x128xbf16>, vector<256x128xf32> -> vector<256x128xf32>
    %15 = arith.addf %10, %14 : vector<256x128xf32>
    %c0_13 = arith.constant 0 : index
    %c0_14 = arith.constant 0 : index
    %16 = vector.load %arg4[%c0_13, %c0_14] : memref<1x128xf32, #tpu.memory_space<vmem>>, vector<1x128xf32>
    %17 = vector.broadcast %16 : vector<1x128xf32> to vector<256x128xf32>
    %18 = arith.addf %15, %17 : vector<256x128xf32>
    %c0_15 = arith.constant 0 : index
    %c0_16 = arith.constant 0 : index
    %19 = vector.load %arg5[%c0_15, %c0_16] : memref<256x128xf32, #tpu.memory_space<vmem>>, vector<256x128xf32>
    %20 = arith.addf %18, %19 : vector<256x128xf32>
    %21 = arith.truncf %20 : vector<256x128xf32> to vector<256x128xbf16>
    %c0_17 = arith.constant 0 : index
    %c0_18 = arith.constant 0 : index
    %22 = vector.load %arg6[%c0_17, %c0_18] : memref<256x128xbf16, #tpu.memory_space<vmem>>, vector<256x128xbf16>
    tpu.vector_store %arg6[%c0_17, %c0_18], %21 {strides = array<i32>} : memref<256x128xbf16, #tpu.memory_space<vmem>>, vector<256x128xbf16>,
    return
  }
  func.func @transform_0(%arg0: i32, %arg1: i32) -> (i32, i32) {
    %c0_i32 = arith.constant 0 : i32
    %c0_i32_0 = arith.constant 0 : i32
    return %arg0, %c0_i32 : i32, i32
  }
  func.func @transform_1(%arg0: i32, %arg1: i32) -> (i32, i32, i32) {
    %c0_i32 = arith.constant 0 : i32
    %c0_i32_0 = arith.constant 0 : i32
    %c0_i32_1 = arith.constant 0 : i32
    return %c0_i32, %c0_i32_0, %arg1 : i32, i32, i32
  }
  func.func @transform_2(%arg0: i32, %arg1: i32) -> (i32, i32) {
    %c0_i32 = arith.constant 0 : i32
    %c0_i32_0 = arith.constant 0 : i32
    return %c0_i32, %arg1 : i32, i32
  }
  func.func @transform_3(%arg0: i32, %arg1: i32) -> (i32, i32) {
    %c0_i32 = arith.constant 0 : i32
    return %arg0, %arg1 : i32, i32
  }
  func.func @transform_4(%arg0: i32, %arg1: i32) -> (i32, i32) {
    %c0_i32 = arith.constant 0 : i32
    return %arg0, %arg1 : i32, i32
  }
}

module attributes {stable_mosaic.version = 11 : i64} {
  func.func @kernel(%arg0: i32, %arg1: i32, %arg2: i32, %arg3: memref<64x32xbf16, #tpu.memory_space<vmem>>, %arg4: memref<32x128xbf16, #tpu.memory_space<vmem>>, %arg5: memref<1x128xf32, #tpu.memory_space<vmem>>, %arg6: memref<64x128xf32, #tpu.memory_space<vmem>>, %arg7: memref<64x128xf32, #tpu.memory_space<vmem>>) attributes {dimension_semantics = [#tpu.dimension_semantics<parallel>, #tpu.dimension_semantics<parallel>, #tpu.dimension_semantics<arbitrary>], iteration_bounds = array<i64: 2, 1, 1>, scalar_prefetch = 0 : i64, scratch_operands = 1 : i64, tpu.core_type = #tpu.core_type<tc>, window_params = [{transform_indices = @transform_0, window_bounds = array<i64: 64, 32>}, {transform_indices = @transform_1, window_bounds = array<i64: 32, 128>}, {transform_indices = @transform_2, window_bounds = array<i64: 1, 128>}, {transform_indices = @transform_3, window_bounds = array<i64: 64, 128>}]} {
    %c0_i32 = arith.constant 0 : i32
    %0 = arith.cmpi eq, %arg2, %c0_i32 : i32
    %1 = arith.extui %0 : i1 to i32
    %c0_i32_0 = arith.constant 0 : i32
    %2 = arith.cmpi ne, %1, %c0_i32_0 : i32
    scf.if %2 {
      %cst_10 = arith.constant 0.000000e+00 : f32
      %12 = vector.broadcast %cst_10 : f32 to vector<64x128xf32>
      %c0_11 = arith.constant 0 : index
      %c0_12 = arith.constant 0 : index
      %13 = vector.load %arg7[%c0_11, %c0_12] : memref<64x128xf32, #tpu.memory_space<vmem>>, vector<64x128xf32>
      tpu.vector_store %arg7[%c0_11, %c0_12], %12 {strides = array<i32>} : memref<64x128xf32, #tpu.memory_space<vmem>>, vector<64x128xf32>,
    } else {
    }
    %c0 = arith.constant 0 : index
    %c0_1 = arith.constant 0 : index
    %3 = vector.load %arg7[%c0, %c0_1] : memref<64x128xf32, #tpu.memory_space<vmem>>, vector<64x128xf32>
    %c0_2 = arith.constant 0 : index
    %c0_3 = arith.constant 0 : index
    %4 = vector.load %arg3[%c0_2, %c0_3] : memref<64x32xbf16, #tpu.memory_space<vmem>>, vector<64x32xbf16>
    %c0_4 = arith.constant 0 : index
    %c0_5 = arith.constant 0 : index
    %5 = vector.load %arg4[%c0_4, %c0_5] : memref<32x128xbf16, #tpu.memory_space<vmem>>, vector<32x128xbf16>
    %cst = arith.constant dense<0.000000e+00> : vector<64x128xf32>
    %6 = tpu.matmul %4, %5, %cst {dimension_numbers = #tpu.dot_dimension_numbers<[1], [0], [0], [1], [0, 0, 1, 1], [], []>} : vector<64x32xbf16>, vector<32x128xbf16>, vector<64x128xf32> -> vector<64x128xf32>
    %7 = arith.addf %3, %6 : vector<64x128xf32>
    %c0_6 = arith.constant 0 : index
    %c0_7 = arith.constant 0 : index
    %8 = vector.load %arg7[%c0_6, %c0_7] : memref<64x128xf32, #tpu.memory_space<vmem>>, vector<64x128xf32>
    tpu.vector_store %arg7[%c0_6, %c0_7], %7 {strides = array<i32>} : memref<64x128xf32, #tpu.memory_space<vmem>>, vector<64x128xf32>,
    %c0_i32_8 = arith.constant 0 : i32
    %9 = arith.cmpi eq, %arg2, %c0_i32_8 : i32
    %10 = arith.extui %9 : i1 to i32
    %c0_i32_9 = arith.constant 0 : i32
    %11 = arith.cmpi ne, %10, %c0_i32_9 : i32
    scf.if %11 {
      %c0_10 = arith.constant 0 : index
      %c0_11 = arith.constant 0 : index
      %12 = vector.load %arg7[%c0_10, %c0_11] : memref<64x128xf32, #tpu.memory_space<vmem>>, vector<64x128xf32>
      %c0_12 = arith.constant 0 : index
      %c0_13 = arith.constant 0 : index
      %13 = vector.load %arg5[%c0_12, %c0_13] : memref<1x128xf32, #tpu.memory_space<vmem>>, vector<1x128xf32>
      %14 = vector.broadcast %13 : vector<1x128xf32> to vector<64x128xf32>
      %15 = arith.addf %12, %14 : vector<64x128xf32>
      %c0_14 = arith.constant 0 : index
      %c0_15 = arith.constant 0 : index
      %16 = vector.load %arg6[%c0_14, %c0_15] : memref<64x128xf32, #tpu.memory_space<vmem>>, vector<64x128xf32>
      tpu.vector_store %arg6[%c0_14, %c0_15], %15 {strides = array<i32>} : memref<64x128xf32, #tpu.memory_space<vmem>>, vector<64x128xf32>,
    } else {
    }
    return
  }
  func.func @transform_0(%arg0: i32, %arg1: i32, %arg2: i32) -> (i32, i32) {
    %c0_i32 = arith.constant 0 : i32
    return %arg0, %arg2 : i32, i32
  }
  func.func @transform_1(%arg0: i32, %arg1: i32, %arg2: i32) -> (i32, i32) {
    %c0_i32 = arith.constant 0 : i32
    return %arg2, %arg1 : i32, i32
  }
  func.func @transform_2(%arg0: i32, %arg1: i32, %arg2: i32) -> (i32, i32) {
    %c0_i32 = arith.constant 0 : i32
    %c0_i32_0 = arith.constant 0 : i32
    return %c0_i32, %arg1 : i32, i32
  }
  func.func @transform_3(%arg0: i32, %arg1: i32, %arg2: i32) -> (i32, i32) {
    %c0_i32 = arith.constant 0 : i32
    return %arg0, %arg1 : i32, i32
  }
}

module attributes {stable_mosaic.version = 11 : i64} {
  func.func @kernel(%arg0: i32, %arg1: i32, %arg2: i32, %arg3: memref<64x80xbf16, #tpu.memory_space<vmem>>, %arg4: memref<80x128xbf16, #tpu.memory_space<vmem>>, %arg5: memref<1x128xf32, #tpu.memory_space<vmem>>, %arg6: memref<64x128xbf16, #tpu.memory_space<vmem>>, %arg7: memref<64x128xf32, #tpu.memory_space<vmem>>) attributes {dimension_semantics = [#tpu.dimension_semantics<parallel>, #tpu.dimension_semantics<parallel>, #tpu.dimension_semantics<arbitrary>], iteration_bounds = array<i64: 2, 1, 1>, scalar_prefetch = 0 : i64, scratch_operands = 1 : i64, tpu.core_type = #tpu.core_type<tc>, window_params = [{transform_indices = @transform_0, window_bounds = array<i64: 64, 80>}, {transform_indices = @transform_1, window_bounds = array<i64: 80, 128>}, {transform_indices = @transform_2, window_bounds = array<i64: 1, 128>}, {transform_indices = @transform_3, window_bounds = array<i64: 64, 128>}]} {
    %c0_i32 = arith.constant 0 : i32
    %0 = arith.cmpi eq, %arg2, %c0_i32 : i32
    %1 = arith.extui %0 : i1 to i32
    %c0_i32_0 = arith.constant 0 : i32
    %2 = arith.cmpi ne, %1, %c0_i32_0 : i32
    scf.if %2 {
      %cst_10 = arith.constant 0.000000e+00 : f32
      %12 = vector.broadcast %cst_10 : f32 to vector<64x128xf32>
      %c0_11 = arith.constant 0 : index
      %c0_12 = arith.constant 0 : index
      %13 = vector.load %arg7[%c0_11, %c0_12] : memref<64x128xf32, #tpu.memory_space<vmem>>, vector<64x128xf32>
      tpu.vector_store %arg7[%c0_11, %c0_12], %12 {strides = array<i32>} : memref<64x128xf32, #tpu.memory_space<vmem>>, vector<64x128xf32>,
    } else {
    }
    %c0 = arith.constant 0 : index
    %c0_1 = arith.constant 0 : index
    %3 = vector.load %arg7[%c0, %c0_1] : memref<64x128xf32, #tpu.memory_space<vmem>>, vector<64x128xf32>
    %c0_2 = arith.constant 0 : index
    %c0_3 = arith.constant 0 : index
    %4 = vector.load %arg3[%c0_2, %c0_3] : memref<64x80xbf16, #tpu.memory_space<vmem>>, vector<64x80xbf16>
    %c0_4 = arith.constant 0 : index
    %c0_5 = arith.constant 0 : index
    %5 = vector.load %arg4[%c0_4, %c0_5] : memref<80x128xbf16, #tpu.memory_space<vmem>>, vector<80x128xbf16>
    %cst = arith.constant dense<0.000000e+00> : vector<64x128xf32>
    %6 = tpu.matmul %4, %5, %cst {dimension_numbers = #tpu.dot_dimension_numbers<[1], [0], [0], [1], [0, 0, 1, 1], [], []>} : vector<64x80xbf16>, vector<80x128xbf16>, vector<64x128xf32> -> vector<64x128xf32>
    %7 = arith.addf %3, %6 : vector<64x128xf32>
    %c0_6 = arith.constant 0 : index
    %c0_7 = arith.constant 0 : index
    %8 = vector.load %arg7[%c0_6, %c0_7] : memref<64x128xf32, #tpu.memory_space<vmem>>, vector<64x128xf32>
    tpu.vector_store %arg7[%c0_6, %c0_7], %7 {strides = array<i32>} : memref<64x128xf32, #tpu.memory_space<vmem>>, vector<64x128xf32>,
    %c0_i32_8 = arith.constant 0 : i32
    %9 = arith.cmpi eq, %arg2, %c0_i32_8 : i32
    %10 = arith.extui %9 : i1 to i32
    %c0_i32_9 = arith.constant 0 : i32
    %11 = arith.cmpi ne, %10, %c0_i32_9 : i32
    scf.if %11 {
      %c0_10 = arith.constant 0 : index
      %c0_11 = arith.constant 0 : index
      %12 = vector.load %arg7[%c0_10, %c0_11] : memref<64x128xf32, #tpu.memory_space<vmem>>, vector<64x128xf32>
      %c0_12 = arith.constant 0 : index
      %c0_13 = arith.constant 0 : index
      %13 = vector.load %arg5[%c0_12, %c0_13] : memref<1x128xf32, #tpu.memory_space<vmem>>, vector<1x128xf32>
      %14 = vector.broadcast %13 : vector<1x128xf32> to vector<64x128xf32>
      %15 = arith.addf %12, %14 : vector<64x128xf32>
      %cst_14 = arith.constant 0.000000e+00 : f32
      %16 = vector.broadcast %cst_14 : f32 to vector<64x128xf32>
      %17 = arith.maximumf %15, %16 : vector<64x128xf32>
      %18 = arith.truncf %17 : vector<64x128xf32> to vector<64x128xbf16>
      %c0_15 = arith.constant 0 : index
      %c0_16 = arith.constant 0 : index
      %19 = vector.load %arg6[%c0_15, %c0_16] : memref<64x128xbf16, #tpu.memory_space<vmem>>, vector<64x128xbf16>
      tpu.vector_store %arg6[%c0_15, %c0_16], %18 {strides = array<i32>} : memref<64x128xbf16, #tpu.memory_space<vmem>>, vector<64x128xbf16>,
    } else {
    }
    return
  }
  func.func @transform_0(%arg0: i32, %arg1: i32, %arg2: i32) -> (i32, i32) {
    %c0_i32 = arith.constant 0 : i32
    return %arg0, %arg2 : i32, i32
  }
  func.func @transform_1(%arg0: i32, %arg1: i32, %arg2: i32) -> (i32, i32) {
    %c0_i32 = arith.constant 0 : i32
    return %arg2, %arg1 : i32, i32
  }
  func.func @transform_2(%arg0: i32, %arg1: i32, %arg2: i32) -> (i32, i32) {
    %c0_i32 = arith.constant 0 : i32
    %c0_i32_0 = arith.constant 0 : i32
    return %c0_i32, %arg1 : i32, i32
  }
  func.func @transform_3(%arg0: i32, %arg1: i32, %arg2: i32) -> (i32, i32) {
    %c0_i32 = arith.constant 0 : i32
    return %arg0, %arg1 : i32, i32
  }
}

module attributes {stable_mosaic.version = 11 : i64} {
  func.func @kernel(%arg0: i32, %arg1: i32, %arg2: memref<80x48xbf16, #tpu.memory_space<vmem>>, %arg3: memref<3x48x128xbf16, #tpu.memory_space<vmem>>, %arg4: memref<1x128xf32, #tpu.memory_space<vmem>>, %arg5: memref<64x128xf32, #tpu.memory_space<vmem>>, %arg6: memref<64x128xbf16, #tpu.memory_space<vmem>>) attributes {dimension_semantics = [#tpu.dimension_semantics<parallel>, #tpu.dimension_semantics<parallel>], iteration_bounds = array<i64: 2, 1>, scalar_prefetch = 0 : i64, scratch_operands = 0 : i64, tpu.core_type = #tpu.core_type<tc>, window_params = [{transform_indices = @transform_0, window_bounds = array<i64: 80, 48>}, {transform_indices = @transform_1, window_bounds = array<i64: 3, 48, 128>}, {transform_indices = @transform_2, window_bounds = array<i64: 1, 128>}, {transform_indices = @transform_3, window_bounds = array<i64: 64, 128>}, {transform_indices = @transform_4, window_bounds = array<i64: 64, 128>}]} {
    %cst = arith.constant 0.000000e+00 : f32
    %0 = vector.broadcast %cst : f32 to vector<64x128xf32>
    %c0 = arith.constant 0 : index
    %c0_0 = arith.constant 0 : index
    %1 = vector.load %arg2[%c0, %c0_0] : memref<80x48xbf16, #tpu.memory_space<vmem>>, vector<64x48xbf16>
    %c0_1 = arith.constant 0 : index
    %c0_2 = arith.constant 0 : index
    %c0_3 = arith.constant 0 : index
    %2 = vector.load %arg3[%c0_1, %c0_2, %c0_3] : memref<3x48x128xbf16, #tpu.memory_space<vmem>>, vector<1x48x128xbf16>
    %3 = vector.shape_cast %2 : vector<1x48x128xbf16> to vector<48x128xbf16>
    %cst_4 = arith.constant dense<0.000000e+00> : vector<64x128xf32>
    %4 = tpu.matmul %1, %3, %cst_4 {dimension_numbers = #tpu.dot_dimension_numbers<[1], [0], [0], [1], [0, 0, 1, 1], [], []>} : vector<64x48xbf16>, vector<48x128xbf16>, vector<64x128xf32> -> vector<64x128xf32>
    %5 = arith.addf %0, %4 : vector<64x128xf32>
    %c8 = arith.constant 8 : index
    %c0_5 = arith.constant 0 : index
    %6 = vector.load %arg2[%c8, %c0_5] : memref<80x48xbf16, #tpu.memory_space<vmem>>, vector<64x48xbf16>
    %c1 = arith.constant 1 : index
    %c0_6 = arith.constant 0 : index
    %c0_7 = arith.constant 0 : index
    %7 = vector.load %arg3[%c1, %c0_6, %c0_7] : memref<3x48x128xbf16, #tpu.memory_space<vmem>>, vector<1x48x128xbf16>
    %8 = vector.shape_cast %7 : vector<1x48x128xbf16> to vector<48x128xbf16>
    %cst_8 = arith.constant dense<0.000000e+00> : vector<64x128xf32>
    %9 = tpu.matmul %6, %8, %cst_8 {dimension_numbers = #tpu.dot_dimension_numbers<[1], [0], [0], [1], [0, 0, 1, 1], [], []>} : vector<64x48xbf16>, vector<48x128xbf16>, vector<64x128xf32> -> vector<64x128xf32>
    %10 = arith.addf %5, %9 : vector<64x128xf32>
    %c16 = arith.constant 16 : index
    %c0_9 = arith.constant 0 : index
    %11 = vector.load %arg2[%c16, %c0_9] : memref<80x48xbf16, #tpu.memory_space<vmem>>, vector<64x48xbf16>
    %c2 = arith.constant 2 : index
    %c0_10 = arith.constant 0 : index
    %c0_11 = arith.constant 0 : index
    %12 = vector.load %arg3[%c2, %c0_10, %c0_11] : memref<3x48x128xbf16, #tpu.memory_space<vmem>>, vector<1x48x128xbf16>
    %13 = vector.shape_cast %12 : vector<1x48x128xbf16> to vector<48x128xbf16>
    %cst_12 = arith.constant dense<0.000000e+00> : vector<64x128xf32>
    %14 = tpu.matmul %11, %13, %cst_12 {dimension_numbers = #tpu.dot_dimension_numbers<[1], [0], [0], [1], [0, 0, 1, 1], [], []>} : vector<64x48xbf16>, vector<48x128xbf16>, vector<64x128xf32> -> vector<64x128xf32>
    %15 = arith.addf %10, %14 : vector<64x128xf32>
    %c0_13 = arith.constant 0 : index
    %c0_14 = arith.constant 0 : index
    %16 = vector.load %arg4[%c0_13, %c0_14] : memref<1x128xf32, #tpu.memory_space<vmem>>, vector<1x128xf32>
    %17 = vector.broadcast %16 : vector<1x128xf32> to vector<64x128xf32>
    %18 = arith.addf %15, %17 : vector<64x128xf32>
    %c0_15 = arith.constant 0 : index
    %c0_16 = arith.constant 0 : index
    %19 = vector.load %arg5[%c0_15, %c0_16] : memref<64x128xf32, #tpu.memory_space<vmem>>, vector<64x128xf32>
    %20 = arith.addf %18, %19 : vector<64x128xf32>
    %21 = arith.truncf %20 : vector<64x128xf32> to vector<64x128xbf16>
    %c0_17 = arith.constant 0 : index
    %c0_18 = arith.constant 0 : index
    %22 = vector.load %arg6[%c0_17, %c0_18] : memref<64x128xbf16, #tpu.memory_space<vmem>>, vector<64x128xbf16>
    tpu.vector_store %arg6[%c0_17, %c0_18], %21 {strides = array<i32>} : memref<64x128xbf16, #tpu.memory_space<vmem>>, vector<64x128xbf16>,
    return
  }
  func.func @transform_0(%arg0: i32, %arg1: i32) -> (i32, i32) {
    %c0_i32 = arith.constant 0 : i32
    %c0_i32_0 = arith.constant 0 : i32
    return %arg0, %c0_i32 : i32, i32
  }
  func.func @transform_1(%arg0: i32, %arg1: i32) -> (i32, i32, i32) {
    %c0_i32 = arith.constant 0 : i32
    %c0_i32_0 = arith.constant 0 : i32
    %c0_i32_1 = arith.constant 0 : i32
    return %c0_i32, %c0_i32_0, %arg1 : i32, i32, i32
  }
  func.func @transform_2(%arg0: i32, %arg1: i32) -> (i32, i32) {
    %c0_i32 = arith.constant 0 : i32
    %c0_i32_0 = arith.constant 0 : i32
    return %c0_i32, %arg1 : i32, i32
  }
  func.func @transform_3(%arg0: i32, %arg1: i32) -> (i32, i32) {
    %c0_i32 = arith.constant 0 : i32
    return %arg0, %arg1 : i32, i32
  }
  func.func @transform_4(%arg0: i32, %arg1: i32) -> (i32, i32) {
    %c0_i32 = arith.constant 0 : i32
    return %arg0, %arg1 : i32, i32
  }
}

module attributes {stable_mosaic.version = 11 : i64} {
  func.func @kernel(%arg0: i32, %arg1: i32, %arg2: i32, %arg3: memref<16x64xbf16, #tpu.memory_space<vmem>>, %arg4: memref<64x128xbf16, #tpu.memory_space<vmem>>, %arg5: memref<1x128xf32, #tpu.memory_space<vmem>>, %arg6: memref<16x128xf32, #tpu.memory_space<vmem>>, %arg7: memref<16x128xf32, #tpu.memory_space<vmem>>) attributes {dimension_semantics = [#tpu.dimension_semantics<parallel>, #tpu.dimension_semantics<parallel>, #tpu.dimension_semantics<arbitrary>], iteration_bounds = array<i64: 2, 1, 1>, scalar_prefetch = 0 : i64, scratch_operands = 1 : i64, tpu.core_type = #tpu.core_type<tc>, window_params = [{transform_indices = @transform_0, window_bounds = array<i64: 16, 64>}, {transform_indices = @transform_1, window_bounds = array<i64: 64, 128>}, {transform_indices = @transform_2, window_bounds = array<i64: 1, 128>}, {transform_indices = @transform_3, window_bounds = array<i64: 16, 128>}]} {
    %c0_i32 = arith.constant 0 : i32
    %0 = arith.cmpi eq, %arg2, %c0_i32 : i32
    %1 = arith.extui %0 : i1 to i32
    %c0_i32_0 = arith.constant 0 : i32
    %2 = arith.cmpi ne, %1, %c0_i32_0 : i32
    scf.if %2 {
      %cst_10 = arith.constant 0.000000e+00 : f32
      %12 = vector.broadcast %cst_10 : f32 to vector<16x128xf32>
      %c0_11 = arith.constant 0 : index
      %c0_12 = arith.constant 0 : index
      %13 = vector.load %arg7[%c0_11, %c0_12] : memref<16x128xf32, #tpu.memory_space<vmem>>, vector<16x128xf32>
      tpu.vector_store %arg7[%c0_11, %c0_12], %12 {strides = array<i32>} : memref<16x128xf32, #tpu.memory_space<vmem>>, vector<16x128xf32>,
    } else {
    }
    %c0 = arith.constant 0 : index
    %c0_1 = arith.constant 0 : index
    %3 = vector.load %arg7[%c0, %c0_1] : memref<16x128xf32, #tpu.memory_space<vmem>>, vector<16x128xf32>
    %c0_2 = arith.constant 0 : index
    %c0_3 = arith.constant 0 : index
    %4 = vector.load %arg3[%c0_2, %c0_3] : memref<16x64xbf16, #tpu.memory_space<vmem>>, vector<16x64xbf16>
    %c0_4 = arith.constant 0 : index
    %c0_5 = arith.constant 0 : index
    %5 = vector.load %arg4[%c0_4, %c0_5] : memref<64x128xbf16, #tpu.memory_space<vmem>>, vector<64x128xbf16>
    %cst = arith.constant dense<0.000000e+00> : vector<16x128xf32>
    %6 = tpu.matmul %4, %5, %cst {dimension_numbers = #tpu.dot_dimension_numbers<[1], [0], [0], [1], [0, 0, 1, 1], [], []>} : vector<16x64xbf16>, vector<64x128xbf16>, vector<16x128xf32> -> vector<16x128xf32>
    %7 = arith.addf %3, %6 : vector<16x128xf32>
    %c0_6 = arith.constant 0 : index
    %c0_7 = arith.constant 0 : index
    %8 = vector.load %arg7[%c0_6, %c0_7] : memref<16x128xf32, #tpu.memory_space<vmem>>, vector<16x128xf32>
    tpu.vector_store %arg7[%c0_6, %c0_7], %7 {strides = array<i32>} : memref<16x128xf32, #tpu.memory_space<vmem>>, vector<16x128xf32>,
    %c0_i32_8 = arith.constant 0 : i32
    %9 = arith.cmpi eq, %arg2, %c0_i32_8 : i32
    %10 = arith.extui %9 : i1 to i32
    %c0_i32_9 = arith.constant 0 : i32
    %11 = arith.cmpi ne, %10, %c0_i32_9 : i32
    scf.if %11 {
      %c0_10 = arith.constant 0 : index
      %c0_11 = arith.constant 0 : index
      %12 = vector.load %arg7[%c0_10, %c0_11] : memref<16x128xf32, #tpu.memory_space<vmem>>, vector<16x128xf32>
      %c0_12 = arith.constant 0 : index
      %c0_13 = arith.constant 0 : index
      %13 = vector.load %arg5[%c0_12, %c0_13] : memref<1x128xf32, #tpu.memory_space<vmem>>, vector<1x128xf32>
      %14 = vector.broadcast %13 : vector<1x128xf32> to vector<16x128xf32>
      %15 = arith.addf %12, %14 : vector<16x128xf32>
      %c0_14 = arith.constant 0 : index
      %c0_15 = arith.constant 0 : index
      %16 = vector.load %arg6[%c0_14, %c0_15] : memref<16x128xf32, #tpu.memory_space<vmem>>, vector<16x128xf32>
      tpu.vector_store %arg6[%c0_14, %c0_15], %15 {strides = array<i32>} : memref<16x128xf32, #tpu.memory_space<vmem>>, vector<16x128xf32>,
    } else {
    }
    return
  }
  func.func @transform_0(%arg0: i32, %arg1: i32, %arg2: i32) -> (i32, i32) {
    %c0_i32 = arith.constant 0 : i32
    return %arg0, %arg2 : i32, i32
  }
  func.func @transform_1(%arg0: i32, %arg1: i32, %arg2: i32) -> (i32, i32) {
    %c0_i32 = arith.constant 0 : i32
    return %arg2, %arg1 : i32, i32
  }
  func.func @transform_2(%arg0: i32, %arg1: i32, %arg2: i32) -> (i32, i32) {
    %c0_i32 = arith.constant 0 : i32
    %c0_i32_0 = arith.constant 0 : i32
    return %c0_i32, %arg1 : i32, i32
  }
  func.func @transform_3(%arg0: i32, %arg1: i32, %arg2: i32) -> (i32, i32) {
    %c0_i32 = arith.constant 0 : i32
    return %arg0, %arg1 : i32, i32
  }
}

module attributes {stable_mosaic.version = 11 : i64} {
  func.func @kernel(%arg0: i32, %arg1: i32, %arg2: i32, %arg3: memref<16x144xbf16, #tpu.memory_space<vmem>>, %arg4: memref<144x128xbf16, #tpu.memory_space<vmem>>, %arg5: memref<1x128xf32, #tpu.memory_space<vmem>>, %arg6: memref<16x128xbf16, #tpu.memory_space<vmem>>, %arg7: memref<16x128xf32, #tpu.memory_space<vmem>>) attributes {dimension_semantics = [#tpu.dimension_semantics<parallel>, #tpu.dimension_semantics<parallel>, #tpu.dimension_semantics<arbitrary>], iteration_bounds = array<i64: 2, 1, 1>, scalar_prefetch = 0 : i64, scratch_operands = 1 : i64, tpu.core_type = #tpu.core_type<tc>, window_params = [{transform_indices = @transform_0, window_bounds = array<i64: 16, 144>}, {transform_indices = @transform_1, window_bounds = array<i64: 144, 128>}, {transform_indices = @transform_2, window_bounds = array<i64: 1, 128>}, {transform_indices = @transform_3, window_bounds = array<i64: 16, 128>}]} {
    %c0_i32 = arith.constant 0 : i32
    %0 = arith.cmpi eq, %arg2, %c0_i32 : i32
    %1 = arith.extui %0 : i1 to i32
    %c0_i32_0 = arith.constant 0 : i32
    %2 = arith.cmpi ne, %1, %c0_i32_0 : i32
    scf.if %2 {
      %cst_10 = arith.constant 0.000000e+00 : f32
      %12 = vector.broadcast %cst_10 : f32 to vector<16x128xf32>
      %c0_11 = arith.constant 0 : index
      %c0_12 = arith.constant 0 : index
      %13 = vector.load %arg7[%c0_11, %c0_12] : memref<16x128xf32, #tpu.memory_space<vmem>>, vector<16x128xf32>
      tpu.vector_store %arg7[%c0_11, %c0_12], %12 {strides = array<i32>} : memref<16x128xf32, #tpu.memory_space<vmem>>, vector<16x128xf32>,
    } else {
    }
    %c0 = arith.constant 0 : index
    %c0_1 = arith.constant 0 : index
    %3 = vector.load %arg7[%c0, %c0_1] : memref<16x128xf32, #tpu.memory_space<vmem>>, vector<16x128xf32>
    %c0_2 = arith.constant 0 : index
    %c0_3 = arith.constant 0 : index
    %4 = vector.load %arg3[%c0_2, %c0_3] : memref<16x144xbf16, #tpu.memory_space<vmem>>, vector<16x144xbf16>
    %c0_4 = arith.constant 0 : index
    %c0_5 = arith.constant 0 : index
    %5 = vector.load %arg4[%c0_4, %c0_5] : memref<144x128xbf16, #tpu.memory_space<vmem>>, vector<144x128xbf16>
    %cst = arith.constant dense<0.000000e+00> : vector<16x128xf32>
    %6 = tpu.matmul %4, %5, %cst {dimension_numbers = #tpu.dot_dimension_numbers<[1], [0], [0], [1], [0, 0, 1, 1], [], []>} : vector<16x144xbf16>, vector<144x128xbf16>, vector<16x128xf32> -> vector<16x128xf32>
    %7 = arith.addf %3, %6 : vector<16x128xf32>
    %c0_6 = arith.constant 0 : index
    %c0_7 = arith.constant 0 : index
    %8 = vector.load %arg7[%c0_6, %c0_7] : memref<16x128xf32, #tpu.memory_space<vmem>>, vector<16x128xf32>
    tpu.vector_store %arg7[%c0_6, %c0_7], %7 {strides = array<i32>} : memref<16x128xf32, #tpu.memory_space<vmem>>, vector<16x128xf32>,
    %c0_i32_8 = arith.constant 0 : i32
    %9 = arith.cmpi eq, %arg2, %c0_i32_8 : i32
    %10 = arith.extui %9 : i1 to i32
    %c0_i32_9 = arith.constant 0 : i32
    %11 = arith.cmpi ne, %10, %c0_i32_9 : i32
    scf.if %11 {
      %c0_10 = arith.constant 0 : index
      %c0_11 = arith.constant 0 : index
      %12 = vector.load %arg7[%c0_10, %c0_11] : memref<16x128xf32, #tpu.memory_space<vmem>>, vector<16x128xf32>
      %c0_12 = arith.constant 0 : index
      %c0_13 = arith.constant 0 : index
      %13 = vector.load %arg5[%c0_12, %c0_13] : memref<1x128xf32, #tpu.memory_space<vmem>>, vector<1x128xf32>
      %14 = vector.broadcast %13 : vector<1x128xf32> to vector<16x128xf32>
      %15 = arith.addf %12, %14 : vector<16x128xf32>
      %cst_14 = arith.constant 0.000000e+00 : f32
      %16 = vector.broadcast %cst_14 : f32 to vector<16x128xf32>
      %17 = arith.maximumf %15, %16 : vector<16x128xf32>
      %18 = arith.truncf %17 : vector<16x128xf32> to vector<16x128xbf16>
      %c0_15 = arith.constant 0 : index
      %c0_16 = arith.constant 0 : index
      %19 = vector.load %arg6[%c0_15, %c0_16] : memref<16x128xbf16, #tpu.memory_space<vmem>>, vector<16x128xbf16>
      tpu.vector_store %arg6[%c0_15, %c0_16], %18 {strides = array<i32>} : memref<16x128xbf16, #tpu.memory_space<vmem>>, vector<16x128xbf16>,
    } else {
    }
    return
  }
  func.func @transform_0(%arg0: i32, %arg1: i32, %arg2: i32) -> (i32, i32) {
    %c0_i32 = arith.constant 0 : i32
    return %arg0, %arg2 : i32, i32
  }
  func.func @transform_1(%arg0: i32, %arg1: i32, %arg2: i32) -> (i32, i32) {
    %c0_i32 = arith.constant 0 : i32
    return %arg2, %arg1 : i32, i32
  }
  func.func @transform_2(%arg0: i32, %arg1: i32, %arg2: i32) -> (i32, i32) {
    %c0_i32 = arith.constant 0 : i32
    %c0_i32_0 = arith.constant 0 : i32
    return %c0_i32, %arg1 : i32, i32
  }
  func.func @transform_3(%arg0: i32, %arg1: i32, %arg2: i32) -> (i32, i32) {
    %c0_i32 = arith.constant 0 : i32
    return %arg0, %arg1 : i32, i32
  }
}

module attributes {stable_mosaic.version = 11 : i64} {
  func.func @kernel(%arg0: i32, %arg1: i32, %arg2: i32, %arg3: memref<16x128xbf16, #tpu.memory_space<vmem>>, %arg4: memref<128x128xbf16, #tpu.memory_space<vmem>>, %arg5: memref<1x128xf32, #tpu.memory_space<vmem>>, %arg6: memref<16x128xf32, #tpu.memory_space<vmem>>, %arg7: memref<16x128xf32, #tpu.memory_space<vmem>>) attributes {dimension_semantics = [#tpu.dimension_semantics<parallel>, #tpu.dimension_semantics<parallel>, #tpu.dimension_semantics<arbitrary>], iteration_bounds = array<i64: 1, 1, 1>, scalar_prefetch = 0 : i64, scratch_operands = 1 : i64, tpu.core_type = #tpu.core_type<tc>, window_params = [{transform_indices = @transform_0, window_bounds = array<i64: 16, 128>}, {transform_indices = @transform_1, window_bounds = array<i64: 128, 128>}, {transform_indices = @transform_2, window_bounds = array<i64: 1, 128>}, {transform_indices = @transform_3, window_bounds = array<i64: 16, 128>}]} {
    %c0_i32 = arith.constant 0 : i32
    %0 = arith.cmpi eq, %arg2, %c0_i32 : i32
    %1 = arith.extui %0 : i1 to i32
    %c0_i32_0 = arith.constant 0 : i32
    %2 = arith.cmpi ne, %1, %c0_i32_0 : i32
    scf.if %2 {
      %cst_10 = arith.constant 0.000000e+00 : f32
      %12 = vector.broadcast %cst_10 : f32 to vector<16x128xf32>
      %c0_11 = arith.constant 0 : index
      %c0_12 = arith.constant 0 : index
      %13 = vector.load %arg7[%c0_11, %c0_12] : memref<16x128xf32, #tpu.memory_space<vmem>>, vector<16x128xf32>
      tpu.vector_store %arg7[%c0_11, %c0_12], %12 {strides = array<i32>} : memref<16x128xf32, #tpu.memory_space<vmem>>, vector<16x128xf32>,
    } else {
    }
    %c0 = arith.constant 0 : index
    %c0_1 = arith.constant 0 : index
    %3 = vector.load %arg7[%c0, %c0_1] : memref<16x128xf32, #tpu.memory_space<vmem>>, vector<16x128xf32>
    %c0_2 = arith.constant 0 : index
    %c0_3 = arith.constant 0 : index
    %4 = vector.load %arg3[%c0_2, %c0_3] : memref<16x128xbf16, #tpu.memory_space<vmem>>, vector<16x128xbf16>
    %c0_4 = arith.constant 0 : index
    %c0_5 = arith.constant 0 : index
    %5 = vector.load %arg4[%c0_4, %c0_5] : memref<128x128xbf16, #tpu.memory_space<vmem>>, vector<128x128xbf16>
    %cst = arith.constant dense<0.000000e+00> : vector<16x128xf32>
    %6 = tpu.matmul %4, %5, %cst {dimension_numbers = #tpu.dot_dimension_numbers<[1], [0], [0], [1], [0, 0, 1, 1], [], []>} : vector<16x128xbf16>, vector<128x128xbf16>, vector<16x128xf32> -> vector<16x128xf32>
    %7 = arith.addf %3, %6 : vector<16x128xf32>
    %c0_6 = arith.constant 0 : index
    %c0_7 = arith.constant 0 : index
    %8 = vector.load %arg7[%c0_6, %c0_7] : memref<16x128xf32, #tpu.memory_space<vmem>>, vector<16x128xf32>
    tpu.vector_store %arg7[%c0_6, %c0_7], %7 {strides = array<i32>} : memref<16x128xf32, #tpu.memory_space<vmem>>, vector<16x128xf32>,
    %c0_i32_8 = arith.constant 0 : i32
    %9 = arith.cmpi eq, %arg2, %c0_i32_8 : i32
    %10 = arith.extui %9 : i1 to i32
    %c0_i32_9 = arith.constant 0 : i32
    %11 = arith.cmpi ne, %10, %c0_i32_9 : i32
    scf.if %11 {
      %c0_10 = arith.constant 0 : index
      %c0_11 = arith.constant 0 : index
      %12 = vector.load %arg7[%c0_10, %c0_11] : memref<16x128xf32, #tpu.memory_space<vmem>>, vector<16x128xf32>
      %c0_12 = arith.constant 0 : index
      %c0_13 = arith.constant 0 : index
      %13 = vector.load %arg5[%c0_12, %c0_13] : memref<1x128xf32, #tpu.memory_space<vmem>>, vector<1x128xf32>
      %14 = vector.broadcast %13 : vector<1x128xf32> to vector<16x128xf32>
      %15 = arith.addf %12, %14 : vector<16x128xf32>
      %c0_14 = arith.constant 0 : index
      %c0_15 = arith.constant 0 : index
      %16 = vector.load %arg6[%c0_14, %c0_15] : memref<16x128xf32, #tpu.memory_space<vmem>>, vector<16x128xf32>
      tpu.vector_store %arg6[%c0_14, %c0_15], %15 {strides = array<i32>} : memref<16x128xf32, #tpu.memory_space<vmem>>, vector<16x128xf32>,
    } else {
    }
    return
  }
  func.func @transform_0(%arg0: i32, %arg1: i32, %arg2: i32) -> (i32, i32) {
    %c0_i32 = arith.constant 0 : i32
    return %arg0, %arg2 : i32, i32
  }
  func.func @transform_1(%arg0: i32, %arg1: i32, %arg2: i32) -> (i32, i32) {
    %c0_i32 = arith.constant 0 : i32
    return %arg2, %arg1 : i32, i32
  }
  func.func @transform_2(%arg0: i32, %arg1: i32, %arg2: i32) -> (i32, i32) {
    %c0_i32 = arith.constant 0 : i32
    %c0_i32_0 = arith.constant 0 : i32
    return %c0_i32, %arg1 : i32, i32
  }
  func.func @transform_3(%arg0: i32, %arg1: i32, %arg2: i32) -> (i32, i32) {
    %c0_i32 = arith.constant 0 : i32
    return %arg0, %arg1 : i32, i32
  }
}

module attributes {stable_mosaic.version = 11 : i64} {
  func.func @kernel(%arg0: i32, %arg1: i32, %arg2: i32, %arg3: memref<16x288xbf16, #tpu.memory_space<vmem>>, %arg4: memref<288x128xbf16, #tpu.memory_space<vmem>>, %arg5: memref<1x128xf32, #tpu.memory_space<vmem>>, %arg6: memref<16x128xf32, #tpu.memory_space<vmem>>, %arg7: memref<16x128xbf16, #tpu.memory_space<vmem>>, %arg8: memref<16x128xf32, #tpu.memory_space<vmem>>) attributes {dimension_semantics = [#tpu.dimension_semantics<parallel>, #tpu.dimension_semantics<parallel>, #tpu.dimension_semantics<arbitrary>], iteration_bounds = array<i64: 2, 1, 1>, scalar_prefetch = 0 : i64, scratch_operands = 1 : i64, tpu.core_type = #tpu.core_type<tc>, window_params = [{transform_indices = @transform_0, window_bounds = array<i64: 16, 288>}, {transform_indices = @transform_1, window_bounds = array<i64: 288, 128>}, {transform_indices = @transform_2, window_bounds = array<i64: 1, 128>}, {transform_indices = @transform_3, window_bounds = array<i64: 16, 128>}, {transform_indices = @transform_4, window_bounds = array<i64: 16, 128>}]} {
    %c0_i32 = arith.constant 0 : i32
    %0 = arith.cmpi eq, %arg2, %c0_i32 : i32
    %1 = arith.extui %0 : i1 to i32
    %c0_i32_0 = arith.constant 0 : i32
    %2 = arith.cmpi ne, %1, %c0_i32_0 : i32
    scf.if %2 {
      %cst_10 = arith.constant 0.000000e+00 : f32
      %12 = vector.broadcast %cst_10 : f32 to vector<16x128xf32>
      %c0_11 = arith.constant 0 : index
      %c0_12 = arith.constant 0 : index
      %13 = vector.load %arg8[%c0_11, %c0_12] : memref<16x128xf32, #tpu.memory_space<vmem>>, vector<16x128xf32>
      tpu.vector_store %arg8[%c0_11, %c0_12], %12 {strides = array<i32>} : memref<16x128xf32, #tpu.memory_space<vmem>>, vector<16x128xf32>,
    } else {
    }
    %c0 = arith.constant 0 : index
    %c0_1 = arith.constant 0 : index
    %3 = vector.load %arg8[%c0, %c0_1] : memref<16x128xf32, #tpu.memory_space<vmem>>, vector<16x128xf32>
    %c0_2 = arith.constant 0 : index
    %c0_3 = arith.constant 0 : index
    %4 = vector.load %arg3[%c0_2, %c0_3] : memref<16x288xbf16, #tpu.memory_space<vmem>>, vector<16x288xbf16>
    %c0_4 = arith.constant 0 : index
    %c0_5 = arith.constant 0 : index
    %5 = vector.load %arg4[%c0_4, %c0_5] : memref<288x128xbf16, #tpu.memory_space<vmem>>, vector<288x128xbf16>
    %cst = arith.constant dense<0.000000e+00> : vector<16x128xf32>
    %6 = tpu.matmul %4, %5, %cst {dimension_numbers = #tpu.dot_dimension_numbers<[1], [0], [0], [1], [0, 0, 1, 1], [], []>} : vector<16x288xbf16>, vector<288x128xbf16>, vector<16x128xf32> -> vector<16x128xf32>
    %7 = arith.addf %3, %6 : vector<16x128xf32>
    %c0_6 = arith.constant 0 : index
    %c0_7 = arith.constant 0 : index
    %8 = vector.load %arg8[%c0_6, %c0_7] : memref<16x128xf32, #tpu.memory_space<vmem>>, vector<16x128xf32>
    tpu.vector_store %arg8[%c0_6, %c0_7], %7 {strides = array<i32>} : memref<16x128xf32, #tpu.memory_space<vmem>>, vector<16x128xf32>,
    %c0_i32_8 = arith.constant 0 : i32
    %9 = arith.cmpi eq, %arg2, %c0_i32_8 : i32
    %10 = arith.extui %9 : i1 to i32
    %c0_i32_9 = arith.constant 0 : i32
    %11 = arith.cmpi ne, %10, %c0_i32_9 : i32
    scf.if %11 {
      %c0_10 = arith.constant 0 : index
      %c0_11 = arith.constant 0 : index
      %12 = vector.load %arg8[%c0_10, %c0_11] : memref<16x128xf32, #tpu.memory_space<vmem>>, vector<16x128xf32>
      %c0_12 = arith.constant 0 : index
      %c0_13 = arith.constant 0 : index
      %13 = vector.load %arg5[%c0_12, %c0_13] : memref<1x128xf32, #tpu.memory_space<vmem>>, vector<1x128xf32>
      %14 = vector.broadcast %13 : vector<1x128xf32> to vector<16x128xf32>
      %15 = arith.addf %12, %14 : vector<16x128xf32>
      %c0_14 = arith.constant 0 : index
      %c0_15 = arith.constant 0 : index
      %16 = vector.load %arg6[%c0_14, %c0_15] : memref<16x128xf32, #tpu.memory_space<vmem>>, vector<16x128xf32>
      %17 = arith.addf %15, %16 : vector<16x128xf32>
      %18 = arith.truncf %17 : vector<16x128xf32> to vector<16x128xbf16>
      %c0_16 = arith.constant 0 : index
      %c0_17 = arith.constant 0 : index
      %19 = vector.load %arg7[%c0_16, %c0_17] : memref<16x128xbf16, #tpu.memory_space<vmem>>, vector<16x128xbf16>
      tpu.vector_store %arg7[%c0_16, %c0_17], %18 {strides = array<i32>} : memref<16x128xbf16, #tpu.memory_space<vmem>>, vector<16x128xbf16>,
    } else {
    }
    return
  }
  func.func @transform_0(%arg0: i32, %arg1: i32, %arg2: i32) -> (i32, i32) {
    %c0_i32 = arith.constant 0 : i32
    return %arg0, %arg2 : i32, i32
  }
  func.func @transform_1(%arg0: i32, %arg1: i32, %arg2: i32) -> (i32, i32) {
    %c0_i32 = arith.constant 0 : i32
    return %arg2, %arg1 : i32, i32
  }
  func.func @transform_2(%arg0: i32, %arg1: i32, %arg2: i32) -> (i32, i32) {
    %c0_i32 = arith.constant 0 : i32
    %c0_i32_0 = arith.constant 0 : i32
    return %c0_i32, %arg1 : i32, i32
  }
  func.func @transform_3(%arg0: i32, %arg1: i32, %arg2: i32) -> (i32, i32) {
    %c0_i32 = arith.constant 0 : i32
    return %arg0, %arg1 : i32, i32
  }
  func.func @transform_4(%arg0: i32, %arg1: i32, %arg2: i32) -> (i32, i32) {
    %c0_i32 = arith.constant 0 : i32
    return %arg0, %arg1 : i32, i32
  }
}

module attributes {stable_mosaic.version = 11 : i64} {
  func.func @kernel(%arg0: i32, %arg1: i32, %arg2: i32, %arg3: memref<16x288xbf16, #tpu.memory_space<vmem>>, %arg4: memref<288x128xbf16, #tpu.memory_space<vmem>>, %arg5: memref<1x128xf32, #tpu.memory_space<vmem>>, %arg6: memref<16x128xbf16, #tpu.memory_space<vmem>>, %arg7: memref<16x128xf32, #tpu.memory_space<vmem>>) attributes {dimension_semantics = [#tpu.dimension_semantics<parallel>, #tpu.dimension_semantics<parallel>, #tpu.dimension_semantics<arbitrary>], iteration_bounds = array<i64: 1, 1, 1>, scalar_prefetch = 0 : i64, scratch_operands = 1 : i64, tpu.core_type = #tpu.core_type<tc>, window_params = [{transform_indices = @transform_0, window_bounds = array<i64: 16, 288>}, {transform_indices = @transform_1, window_bounds = array<i64: 288, 128>}, {transform_indices = @transform_2, window_bounds = array<i64: 1, 128>}, {transform_indices = @transform_3, window_bounds = array<i64: 16, 128>}]} {
    %c0_i32 = arith.constant 0 : i32
    %0 = arith.cmpi eq, %arg2, %c0_i32 : i32
    %1 = arith.extui %0 : i1 to i32
    %c0_i32_0 = arith.constant 0 : i32
    %2 = arith.cmpi ne, %1, %c0_i32_0 : i32
    scf.if %2 {
      %cst_10 = arith.constant 0.000000e+00 : f32
      %12 = vector.broadcast %cst_10 : f32 to vector<16x128xf32>
      %c0_11 = arith.constant 0 : index
      %c0_12 = arith.constant 0 : index
      %13 = vector.load %arg7[%c0_11, %c0_12] : memref<16x128xf32, #tpu.memory_space<vmem>>, vector<16x128xf32>
      tpu.vector_store %arg7[%c0_11, %c0_12], %12 {strides = array<i32>} : memref<16x128xf32, #tpu.memory_space<vmem>>, vector<16x128xf32>,
    } else {
    }
    %c0 = arith.constant 0 : index
    %c0_1 = arith.constant 0 : index
    %3 = vector.load %arg7[%c0, %c0_1] : memref<16x128xf32, #tpu.memory_space<vmem>>, vector<16x128xf32>
    %c0_2 = arith.constant 0 : index
    %c0_3 = arith.constant 0 : index
    %4 = vector.load %arg3[%c0_2, %c0_3] : memref<16x288xbf16, #tpu.memory_space<vmem>>, vector<16x288xbf16>
    %c0_4 = arith.constant 0 : index
    %c0_5 = arith.constant 0 : index
    %5 = vector.load %arg4[%c0_4, %c0_5] : memref<288x128xbf16, #tpu.memory_space<vmem>>, vector<288x128xbf16>
    %cst = arith.constant dense<0.000000e+00> : vector<16x128xf32>
    %6 = tpu.matmul %4, %5, %cst {dimension_numbers = #tpu.dot_dimension_numbers<[1], [0], [0], [1], [0, 0, 1, 1], [], []>} : vector<16x288xbf16>, vector<288x128xbf16>, vector<16x128xf32> -> vector<16x128xf32>
    %7 = arith.addf %3, %6 : vector<16x128xf32>
    %c0_6 = arith.constant 0 : index
    %c0_7 = arith.constant 0 : index
    %8 = vector.load %arg7[%c0_6, %c0_7] : memref<16x128xf32, #tpu.memory_space<vmem>>, vector<16x128xf32>
    tpu.vector_store %arg7[%c0_6, %c0_7], %7 {strides = array<i32>} : memref<16x128xf32, #tpu.memory_space<vmem>>, vector<16x128xf32>,
    %c0_i32_8 = arith.constant 0 : i32
    %9 = arith.cmpi eq, %arg2, %c0_i32_8 : i32
    %10 = arith.extui %9 : i1 to i32
    %c0_i32_9 = arith.constant 0 : i32
    %11 = arith.cmpi ne, %10, %c0_i32_9 : i32
    scf.if %11 {
      %c0_10 = arith.constant 0 : index
      %c0_11 = arith.constant 0 : index
      %12 = vector.load %arg7[%c0_10, %c0_11] : memref<16x128xf32, #tpu.memory_space<vmem>>, vector<16x128xf32>
      %c0_12 = arith.constant 0 : index
      %c0_13 = arith.constant 0 : index
      %13 = vector.load %arg5[%c0_12, %c0_13] : memref<1x128xf32, #tpu.memory_space<vmem>>, vector<1x128xf32>
      %14 = vector.broadcast %13 : vector<1x128xf32> to vector<16x128xf32>
      %15 = arith.addf %12, %14 : vector<16x128xf32>
      %cst_14 = arith.constant 0.000000e+00 : f32
      %16 = vector.broadcast %cst_14 : f32 to vector<16x128xf32>
      %17 = arith.maximumf %15, %16 : vector<16x128xf32>
      %18 = arith.truncf %17 : vector<16x128xf32> to vector<16x128xbf16>
      %c0_15 = arith.constant 0 : index
      %c0_16 = arith.constant 0 : index
      %19 = vector.load %arg6[%c0_15, %c0_16] : memref<16x128xbf16, #tpu.memory_space<vmem>>, vector<16x128xbf16>
      tpu.vector_store %arg6[%c0_15, %c0_16], %18 {strides = array<i32>} : memref<16x128xbf16, #tpu.memory_space<vmem>>, vector<16x128xbf16>,
    } else {
    }
    return
  }
  func.func @transform_0(%arg0: i32, %arg1: i32, %arg2: i32) -> (i32, i32) {
    %c0_i32 = arith.constant 0 : i32
    return %arg0, %arg2 : i32, i32
  }
  func.func @transform_1(%arg0: i32, %arg1: i32, %arg2: i32) -> (i32, i32) {
    %c0_i32 = arith.constant 0 : i32
    return %arg2, %arg1 : i32, i32
  }
  func.func @transform_2(%arg0: i32, %arg1: i32, %arg2: i32) -> (i32, i32) {
    %c0_i32 = arith.constant 0 : i32
    %c0_i32_0 = arith.constant 0 : i32
    return %c0_i32, %arg1 : i32, i32
  }
  func.func @transform_3(%arg0: i32, %arg1: i32, %arg2: i32) -> (i32, i32) {
    %c0_i32 = arith.constant 0 : i32
    return %arg0, %arg1 : i32, i32
  }
}

module attributes {stable_mosaic.version = 11 : i64} {
  func.func @kernel(%arg0: i32, %arg1: i32, %arg2: i32, %arg3: memref<16x576xbf16, #tpu.memory_space<vmem>>, %arg4: memref<576x128xbf16, #tpu.memory_space<vmem>>, %arg5: memref<1x128xf32, #tpu.memory_space<vmem>>, %arg6: memref<16x128xf32, #tpu.memory_space<vmem>>, %arg7: memref<16x128xbf16, #tpu.memory_space<vmem>>, %arg8: memref<16x128xf32, #tpu.memory_space<vmem>>) attributes {dimension_semantics = [#tpu.dimension_semantics<parallel>, #tpu.dimension_semantics<parallel>, #tpu.dimension_semantics<arbitrary>], iteration_bounds = array<i64: 1, 1, 1>, scalar_prefetch = 0 : i64, scratch_operands = 1 : i64, tpu.core_type = #tpu.core_type<tc>, window_params = [{transform_indices = @transform_0, window_bounds = array<i64: 16, 576>}, {transform_indices = @transform_1, window_bounds = array<i64: 576, 128>}, {transform_indices = @transform_2, window_bounds = array<i64: 1, 128>}, {transform_indices = @transform_3, window_bounds = array<i64: 16, 128>}, {transform_indices = @transform_4, window_bounds = array<i64: 16, 128>}]} {
    %c0_i32 = arith.constant 0 : i32
    %0 = arith.cmpi eq, %arg2, %c0_i32 : i32
    %1 = arith.extui %0 : i1 to i32
    %c0_i32_0 = arith.constant 0 : i32
    %2 = arith.cmpi ne, %1, %c0_i32_0 : i32
    scf.if %2 {
      %cst_10 = arith.constant 0.000000e+00 : f32
      %12 = vector.broadcast %cst_10 : f32 to vector<16x128xf32>
      %c0_11 = arith.constant 0 : index
      %c0_12 = arith.constant 0 : index
      %13 = vector.load %arg8[%c0_11, %c0_12] : memref<16x128xf32, #tpu.memory_space<vmem>>, vector<16x128xf32>
      tpu.vector_store %arg8[%c0_11, %c0_12], %12 {strides = array<i32>} : memref<16x128xf32, #tpu.memory_space<vmem>>, vector<16x128xf32>,
    } else {
    }
    %c0 = arith.constant 0 : index
    %c0_1 = arith.constant 0 : index
    %3 = vector.load %arg8[%c0, %c0_1] : memref<16x128xf32, #tpu.memory_space<vmem>>, vector<16x128xf32>
    %c0_2 = arith.constant 0 : index
    %c0_3 = arith.constant 0 : index
    %4 = vector.load %arg3[%c0_2, %c0_3] : memref<16x576xbf16, #tpu.memory_space<vmem>>, vector<16x576xbf16>
    %c0_4 = arith.constant 0 : index
    %c0_5 = arith.constant 0 : index
    %5 = vector.load %arg4[%c0_4, %c0_5] : memref<576x128xbf16, #tpu.memory_space<vmem>>, vector<576x128xbf16>
    %cst = arith.constant dense<0.000000e+00> : vector<16x128xf32>
    %6 = tpu.matmul %4, %5, %cst {dimension_numbers = #tpu.dot_dimension_numbers<[1], [0], [0], [1], [0, 0, 1, 1], [], []>} : vector<16x576xbf16>, vector<576x128xbf16>, vector<16x128xf32> -> vector<16x128xf32>
    %7 = arith.addf %3, %6 : vector<16x128xf32>
    %c0_6 = arith.constant 0 : index
    %c0_7 = arith.constant 0 : index
    %8 = vector.load %arg8[%c0_6, %c0_7] : memref<16x128xf32, #tpu.memory_space<vmem>>, vector<16x128xf32>
    tpu.vector_store %arg8[%c0_6, %c0_7], %7 {strides = array<i32>} : memref<16x128xf32, #tpu.memory_space<vmem>>, vector<16x128xf32>,
    %c0_i32_8 = arith.constant 0 : i32
    %9 = arith.cmpi eq, %arg2, %c0_i32_8 : i32
    %10 = arith.extui %9 : i1 to i32
    %c0_i32_9 = arith.constant 0 : i32
    %11 = arith.cmpi ne, %10, %c0_i32_9 : i32
    scf.if %11 {
      %c0_10 = arith.constant 0 : index
      %c0_11 = arith.constant 0 : index
      %12 = vector.load %arg8[%c0_10, %c0_11] : memref<16x128xf32, #tpu.memory_space<vmem>>, vector<16x128xf32>
      %c0_12 = arith.constant 0 : index
      %c0_13 = arith.constant 0 : index
      %13 = vector.load %arg5[%c0_12, %c0_13] : memref<1x128xf32, #tpu.memory_space<vmem>>, vector<1x128xf32>
      %14 = vector.broadcast %13 : vector<1x128xf32> to vector<16x128xf32>
      %15 = arith.addf %12, %14 : vector<16x128xf32>
      %c0_14 = arith.constant 0 : index
      %c0_15 = arith.constant 0 : index
      %16 = vector.load %arg6[%c0_14, %c0_15] : memref<16x128xf32, #tpu.memory_space<vmem>>, vector<16x128xf32>
      %17 = arith.addf %15, %16 : vector<16x128xf32>
      %18 = arith.truncf %17 : vector<16x128xf32> to vector<16x128xbf16>
      %c0_16 = arith.constant 0 : index
      %c0_17 = arith.constant 0 : index
      %19 = vector.load %arg7[%c0_16, %c0_17] : memref<16x128xbf16, #tpu.memory_space<vmem>>, vector<16x128xbf16>
      tpu.vector_store %arg7[%c0_16, %c0_17], %18 {strides = array<i32>} : memref<16x128xbf16, #tpu.memory_space<vmem>>, vector<16x128xbf16>,
    } else {
    }
    return
  }
  func.func @transform_0(%arg0: i32, %arg1: i32, %arg2: i32) -> (i32, i32) {
    %c0_i32 = arith.constant 0 : i32
    return %arg0, %arg2 : i32, i32
  }
  func.func @transform_1(%arg0: i32, %arg1: i32, %arg2: i32) -> (i32, i32) {
    %c0_i32 = arith.constant 0 : i32
    return %arg2, %arg1 : i32, i32
  }
  func.func @transform_2(%arg0: i32, %arg1: i32, %arg2: i32) -> (i32, i32) {
    %c0_i32 = arith.constant 0 : i32
    %c0_i32_0 = arith.constant 0 : i32
    return %c0_i32, %arg1 : i32, i32
  }
  func.func @transform_3(%arg0: i32, %arg1: i32, %arg2: i32) -> (i32, i32) {
    %c0_i32 = arith.constant 0 : i32
    return %arg0, %arg1 : i32, i32
  }
  func.func @transform_4(%arg0: i32, %arg1: i32, %arg2: i32) -> (i32, i32) {
    %c0_i32 = arith.constant 0 : i32
    return %arg0, %arg1 : i32, i32
  }
}

module attributes {stable_mosaic.version = 11 : i64} {
  func.func @kernel(%arg0: i32, %arg1: i32, %arg2: i32, %arg3: memref<16x256xbf16, #tpu.memory_space<vmem>>, %arg4: memref<256x128xbf16, #tpu.memory_space<vmem>>, %arg5: memref<1x128xf32, #tpu.memory_space<vmem>>, %arg6: memref<16x128xf32, #tpu.memory_space<vmem>>, %arg7: memref<16x128xf32, #tpu.memory_space<vmem>>) attributes {dimension_semantics = [#tpu.dimension_semantics<parallel>, #tpu.dimension_semantics<parallel>, #tpu.dimension_semantics<arbitrary>], iteration_bounds = array<i64: 1, 1, 1>, scalar_prefetch = 0 : i64, scratch_operands = 1 : i64, tpu.core_type = #tpu.core_type<tc>, window_params = [{transform_indices = @transform_0, window_bounds = array<i64: 16, 256>}, {transform_indices = @transform_1, window_bounds = array<i64: 256, 128>}, {transform_indices = @transform_2, window_bounds = array<i64: 1, 128>}, {transform_indices = @transform_3, window_bounds = array<i64: 16, 128>}]} {
    %c0_i32 = arith.constant 0 : i32
    %0 = arith.cmpi eq, %arg2, %c0_i32 : i32
    %1 = arith.extui %0 : i1 to i32
    %c0_i32_0 = arith.constant 0 : i32
    %2 = arith.cmpi ne, %1, %c0_i32_0 : i32
    scf.if %2 {
      %cst_10 = arith.constant 0.000000e+00 : f32
      %12 = vector.broadcast %cst_10 : f32 to vector<16x128xf32>
      %c0_11 = arith.constant 0 : index
      %c0_12 = arith.constant 0 : index
      %13 = vector.load %arg7[%c0_11, %c0_12] : memref<16x128xf32, #tpu.memory_space<vmem>>, vector<16x128xf32>
      tpu.vector_store %arg7[%c0_11, %c0_12], %12 {strides = array<i32>} : memref<16x128xf32, #tpu.memory_space<vmem>>, vector<16x128xf32>,
    } else {
    }
    %c0 = arith.constant 0 : index
    %c0_1 = arith.constant 0 : index
    %3 = vector.load %arg7[%c0, %c0_1] : memref<16x128xf32, #tpu.memory_space<vmem>>, vector<16x128xf32>
    %c0_2 = arith.constant 0 : index
    %c0_3 = arith.constant 0 : index
    %4 = vector.load %arg3[%c0_2, %c0_3] : memref<16x256xbf16, #tpu.memory_space<vmem>>, vector<16x256xbf16>
    %c0_4 = arith.constant 0 : index
    %c0_5 = arith.constant 0 : index
    %5 = vector.load %arg4[%c0_4, %c0_5] : memref<256x128xbf16, #tpu.memory_space<vmem>>, vector<256x128xbf16>
    %cst = arith.constant dense<0.000000e+00> : vector<16x128xf32>
    %6 = tpu.matmul %4, %5, %cst {dimension_numbers = #tpu.dot_dimension_numbers<[1], [0], [0], [1], [0, 0, 1, 1], [], []>} : vector<16x256xbf16>, vector<256x128xbf16>, vector<16x128xf32> -> vector<16x128xf32>
    %7 = arith.addf %3, %6 : vector<16x128xf32>
    %c0_6 = arith.constant 0 : index
    %c0_7 = arith.constant 0 : index
    %8 = vector.load %arg7[%c0_6, %c0_7] : memref<16x128xf32, #tpu.memory_space<vmem>>, vector<16x128xf32>
    tpu.vector_store %arg7[%c0_6, %c0_7], %7 {strides = array<i32>} : memref<16x128xf32, #tpu.memory_space<vmem>>, vector<16x128xf32>,
    %c0_i32_8 = arith.constant 0 : i32
    %9 = arith.cmpi eq, %arg2, %c0_i32_8 : i32
    %10 = arith.extui %9 : i1 to i32
    %c0_i32_9 = arith.constant 0 : i32
    %11 = arith.cmpi ne, %10, %c0_i32_9 : i32
    scf.if %11 {
      %c0_10 = arith.constant 0 : index
      %c0_11 = arith.constant 0 : index
      %12 = vector.load %arg7[%c0_10, %c0_11] : memref<16x128xf32, #tpu.memory_space<vmem>>, vector<16x128xf32>
      %c0_12 = arith.constant 0 : index
      %c0_13 = arith.constant 0 : index
      %13 = vector.load %arg5[%c0_12, %c0_13] : memref<1x128xf32, #tpu.memory_space<vmem>>, vector<1x128xf32>
      %14 = vector.broadcast %13 : vector<1x128xf32> to vector<16x128xf32>
      %15 = arith.addf %12, %14 : vector<16x128xf32>
      %c0_14 = arith.constant 0 : index
      %c0_15 = arith.constant 0 : index
      %16 = vector.load %arg6[%c0_14, %c0_15] : memref<16x128xf32, #tpu.memory_space<vmem>>, vector<16x128xf32>
      tpu.vector_store %arg6[%c0_14, %c0_15], %15 {strides = array<i32>} : memref<16x128xf32, #tpu.memory_space<vmem>>, vector<16x128xf32>,
    } else {
    }
    return
  }
  func.func @transform_0(%arg0: i32, %arg1: i32, %arg2: i32) -> (i32, i32) {
    %c0_i32 = arith.constant 0 : i32
    return %arg0, %arg2 : i32, i32
  }
  func.func @transform_1(%arg0: i32, %arg1: i32, %arg2: i32) -> (i32, i32) {
    %c0_i32 = arith.constant 0 : i32
    return %arg2, %arg1 : i32, i32
  }
  func.func @transform_2(%arg0: i32, %arg1: i32, %arg2: i32) -> (i32, i32) {
    %c0_i32 = arith.constant 0 : i32
    %c0_i32_0 = arith.constant 0 : i32
    return %c0_i32, %arg1 : i32, i32
  }
  func.func @transform_3(%arg0: i32, %arg1: i32, %arg2: i32) -> (i32, i32) {
    %c0_i32 = arith.constant 0 : i32
    return %arg0, %arg1 : i32, i32
  }
}

module attributes {stable_mosaic.version = 11 : i64} {
  func.func @kernel(%arg0: i32, %arg1: i32, %arg2: i32, %arg3: memref<16x576xbf16, #tpu.memory_space<vmem>>, %arg4: memref<576x128xbf16, #tpu.memory_space<vmem>>, %arg5: memref<1x128xf32, #tpu.memory_space<vmem>>, %arg6: memref<16x128xbf16, #tpu.memory_space<vmem>>, %arg7: memref<16x128xf32, #tpu.memory_space<vmem>>) attributes {dimension_semantics = [#tpu.dimension_semantics<parallel>, #tpu.dimension_semantics<parallel>, #tpu.dimension_semantics<arbitrary>], iteration_bounds = array<i64: 1, 1, 1>, scalar_prefetch = 0 : i64, scratch_operands = 1 : i64, tpu.core_type = #tpu.core_type<tc>, window_params = [{transform_indices = @transform_0, window_bounds = array<i64: 16, 576>}, {transform_indices = @transform_1, window_bounds = array<i64: 576, 128>}, {transform_indices = @transform_2, window_bounds = array<i64: 1, 128>}, {transform_indices = @transform_3, window_bounds = array<i64: 16, 128>}]} {
    %c0_i32 = arith.constant 0 : i32
    %0 = arith.cmpi eq, %arg2, %c0_i32 : i32
    %1 = arith.extui %0 : i1 to i32
    %c0_i32_0 = arith.constant 0 : i32
    %2 = arith.cmpi ne, %1, %c0_i32_0 : i32
    scf.if %2 {
      %cst_10 = arith.constant 0.000000e+00 : f32
      %12 = vector.broadcast %cst_10 : f32 to vector<16x128xf32>
      %c0_11 = arith.constant 0 : index
      %c0_12 = arith.constant 0 : index
      %13 = vector.load %arg7[%c0_11, %c0_12] : memref<16x128xf32, #tpu.memory_space<vmem>>, vector<16x128xf32>
      tpu.vector_store %arg7[%c0_11, %c0_12], %12 {strides = array<i32>} : memref<16x128xf32, #tpu.memory_space<vmem>>, vector<16x128xf32>,
    } else {
    }
    %c0 = arith.constant 0 : index
    %c0_1 = arith.constant 0 : index
    %3 = vector.load %arg7[%c0, %c0_1] : memref<16x128xf32, #tpu.memory_space<vmem>>, vector<16x128xf32>
    %c0_2 = arith.constant 0 : index
    %c0_3 = arith.constant 0 : index
    %4 = vector.load %arg3[%c0_2, %c0_3] : memref<16x576xbf16, #tpu.memory_space<vmem>>, vector<16x576xbf16>
    %c0_4 = arith.constant 0 : index
    %c0_5 = arith.constant 0 : index
    %5 = vector.load %arg4[%c0_4, %c0_5] : memref<576x128xbf16, #tpu.memory_space<vmem>>, vector<576x128xbf16>
    %cst = arith.constant dense<0.000000e+00> : vector<16x128xf32>
    %6 = tpu.matmul %4, %5, %cst {dimension_numbers = #tpu.dot_dimension_numbers<[1], [0], [0], [1], [0, 0, 1, 1], [], []>} : vector<16x576xbf16>, vector<576x128xbf16>, vector<16x128xf32> -> vector<16x128xf32>
    %7 = arith.addf %3, %6 : vector<16x128xf32>
    %c0_6 = arith.constant 0 : index
    %c0_7 = arith.constant 0 : index
    %8 = vector.load %arg7[%c0_6, %c0_7] : memref<16x128xf32, #tpu.memory_space<vmem>>, vector<16x128xf32>
    tpu.vector_store %arg7[%c0_6, %c0_7], %7 {strides = array<i32>} : memref<16x128xf32, #tpu.memory_space<vmem>>, vector<16x128xf32>,
    %c0_i32_8 = arith.constant 0 : i32
    %9 = arith.cmpi eq, %arg2, %c0_i32_8 : i32
    %10 = arith.extui %9 : i1 to i32
    %c0_i32_9 = arith.constant 0 : i32
    %11 = arith.cmpi ne, %10, %c0_i32_9 : i32
    scf.if %11 {
      %c0_10 = arith.constant 0 : index
      %c0_11 = arith.constant 0 : index
      %12 = vector.load %arg7[%c0_10, %c0_11] : memref<16x128xf32, #tpu.memory_space<vmem>>, vector<16x128xf32>
      %c0_12 = arith.constant 0 : index
      %c0_13 = arith.constant 0 : index
      %13 = vector.load %arg5[%c0_12, %c0_13] : memref<1x128xf32, #tpu.memory_space<vmem>>, vector<1x128xf32>
      %14 = vector.broadcast %13 : vector<1x128xf32> to vector<16x128xf32>
      %15 = arith.addf %12, %14 : vector<16x128xf32>
      %cst_14 = arith.constant 0.000000e+00 : f32
      %16 = vector.broadcast %cst_14 : f32 to vector<16x128xf32>
      %17 = arith.maximumf %15, %16 : vector<16x128xf32>
      %18 = arith.truncf %17 : vector<16x128xf32> to vector<16x128xbf16>
      %c0_15 = arith.constant 0 : index
      %c0_16 = arith.constant 0 : index
      %19 = vector.load %arg6[%c0_15, %c0_16] : memref<16x128xbf16, #tpu.memory_space<vmem>>, vector<16x128xbf16>
      tpu.vector_store %arg6[%c0_15, %c0_16], %18 {strides = array<i32>} : memref<16x128xbf16, #tpu.memory_space<vmem>>, vector<16x128xbf16>,
    } else {
    }
    return
  }
  func.func @transform_0(%arg0: i32, %arg1: i32, %arg2: i32) -> (i32, i32) {
    %c0_i32 = arith.constant 0 : i32
    return %arg0, %arg2 : i32, i32
  }
  func.func @transform_1(%arg0: i32, %arg1: i32, %arg2: i32) -> (i32, i32) {
    %c0_i32 = arith.constant 0 : i32
    return %arg2, %arg1 : i32, i32
  }
  func.func @transform_2(%arg0: i32, %arg1: i32, %arg2: i32) -> (i32, i32) {
    %c0_i32 = arith.constant 0 : i32
    %c0_i32_0 = arith.constant 0 : i32
    return %c0_i32, %arg1 : i32, i32
  }
  func.func @transform_3(%arg0: i32, %arg1: i32, %arg2: i32) -> (i32, i32) {
    %c0_i32 = arith.constant 0 : i32
    return %arg0, %arg1 : i32, i32
  }
}

module attributes {stable_mosaic.version = 11 : i64} {
  func.func @_head_kernel(%arg0: memref<2x1x128xbf16, #tpu.memory_space<vmem>>, %arg1: memref<128x1xf32, #tpu.memory_space<vmem>>, %arg2: memref<1x1xf32, #tpu.memory_space<vmem>>, %arg3: memref<2x1xf32, #tpu.memory_space<vmem>>) attributes {dimension_semantics = [], scalar_prefetch = 0 : i64, scratch_operands = 0 : i64, tpu.core_type = #tpu.core_type<tc>} {
    %c0 = arith.constant 0 : index
    %c0_0 = arith.constant 0 : index
    %c0_1 = arith.constant 0 : index
    %0 = vector.load %arg0[%c0, %c0_0, %c0_1] : memref<2x1x128xbf16, #tpu.memory_space<vmem>>, vector<2x1x128xbf16>
    %1 = arith.extf %0 : vector<2x1x128xbf16> to vector<2x1x128xf32>
    %cst = arith.constant 0.000000e+00 : f32
    %2 = vector.broadcast %cst : f32 to vector<2x1x128xf32>
    %3 = arith.maximumf %1, %2 : vector<2x1x128xf32>
    %cst_2 = arith.constant dense<0.000000e+00> : vector<2x128xf32>
    %4 = vector.multi_reduction <add>, %3, %cst_2 [1] : vector<2x1x128xf32> to vector<2x128xf32>
    %cst_3 = arith.constant 1.000000e+00 : f32
    %5 = vector.broadcast %cst_3 : f32 to vector<2x128xf32>
    %6 = arith.divf %4, %5 : vector<2x128xf32>
    %c0_4 = arith.constant 0 : index
    %c0_5 = arith.constant 0 : index
    %7 = vector.load %arg1[%c0_4, %c0_5] : memref<128x1xf32, #tpu.memory_space<vmem>>, vector<128x1xf32>
    %cst_6 = arith.constant dense<0.000000e+00> : vector<2x1xf32>
    %8 = tpu.matmul %6, %7, %cst_6 {dimension_numbers = #tpu.dot_dimension_numbers<[1], [0], [0], [1], [0, 0, 1, 1], [], []>} : vector<2x128xf32>, vector<128x1xf32>, vector<2x1xf32> -> vector<2x1xf32>
    %c0_7 = arith.constant 0 : index
    %c0_8 = arith.constant 0 : index
    %9 = vector.load %arg2[%c0_7, %c0_8] : memref<1x1xf32, #tpu.memory_space<vmem>>, vector<1x1xf32>
    %10 = vector.broadcast %9 : vector<1x1xf32> to vector<2x1xf32>
    %11 = arith.addf %8, %10 : vector<2x1xf32>
    %c0_9 = arith.constant 0 : index
    %c0_10 = arith.constant 0 : index
    %12 = vector.load %arg3[%c0_9, %c0_10] : memref<2x1xf32, #tpu.memory_space<vmem>>, vector<2x1xf32>
    tpu.vector_store %arg3[%c0_9, %c0_10], %11 {strides = array<i32>} : memref<2x1xf32, #tpu.memory_space<vmem>>, vector<2x1xf32>,
    return
  }
}

module attributes {stable_mosaic.version = 11 : i64} {
  func.func @kernel(%arg0: i32, %arg1: i32, %arg2: i32, %arg3: memref<16x1152xbf16, #tpu.memory_space<vmem>>, %arg4: memref<1152x128xbf16, #tpu.memory_space<vmem>>, %arg5: memref<1x128xf32, #tpu.memory_space<vmem>>, %arg6: memref<16x128xf32, #tpu.memory_space<vmem>>, %arg7: memref<16x128xbf16, #tpu.memory_space<vmem>>, %arg8: memref<16x128xf32, #tpu.memory_space<vmem>>) attributes {dimension_semantics = [#tpu.dimension_semantics<parallel>, #tpu.dimension_semantics<parallel>, #tpu.dimension_semantics<arbitrary>], iteration_bounds = array<i64: 1, 1, 1>, scalar_prefetch = 0 : i64, scratch_operands = 1 : i64, tpu.core_type = #tpu.core_type<tc>, window_params = [{transform_indices = @transform_0, window_bounds = array<i64: 16, 1152>}, {transform_indices = @transform_1, window_bounds = array<i64: 1152, 128>}, {transform_indices = @transform_2, window_bounds = array<i64: 1, 128>}, {transform_indices = @transform_3, window_bounds = array<i64: 16, 128>}, {transform_indices = @transform_4, window_bounds = array<i64: 16, 128>}]} {
    %c0_i32 = arith.constant 0 : i32
    %0 = arith.cmpi eq, %arg2, %c0_i32 : i32
    %1 = arith.extui %0 : i1 to i32
    %c0_i32_0 = arith.constant 0 : i32
    %2 = arith.cmpi ne, %1, %c0_i32_0 : i32
    scf.if %2 {
      %cst_10 = arith.constant 0.000000e+00 : f32
      %12 = vector.broadcast %cst_10 : f32 to vector<16x128xf32>
      %c0_11 = arith.constant 0 : index
      %c0_12 = arith.constant 0 : index
      %13 = vector.load %arg8[%c0_11, %c0_12] : memref<16x128xf32, #tpu.memory_space<vmem>>, vector<16x128xf32>
      tpu.vector_store %arg8[%c0_11, %c0_12], %12 {strides = array<i32>} : memref<16x128xf32, #tpu.memory_space<vmem>>, vector<16x128xf32>,
    } else {
    }
    %c0 = arith.constant 0 : index
    %c0_1 = arith.constant 0 : index
    %3 = vector.load %arg8[%c0, %c0_1] : memref<16x128xf32, #tpu.memory_space<vmem>>, vector<16x128xf32>
    %c0_2 = arith.constant 0 : index
    %c0_3 = arith.constant 0 : index
    %4 = vector.load %arg3[%c0_2, %c0_3] : memref<16x1152xbf16, #tpu.memory_space<vmem>>, vector<16x1152xbf16>
    %c0_4 = arith.constant 0 : index
    %c0_5 = arith.constant 0 : index
    %5 = vector.load %arg4[%c0_4, %c0_5] : memref<1152x128xbf16, #tpu.memory_space<vmem>>, vector<1152x128xbf16>
    %cst = arith.constant dense<0.000000e+00> : vector<16x128xf32>
    %6 = tpu.matmul %4, %5, %cst {dimension_numbers = #tpu.dot_dimension_numbers<[1], [0], [0], [1], [0, 0, 1, 1], [], []>} : vector<16x1152xbf16>, vector<1152x128xbf16>, vector<16x128xf32> -> vector<16x128xf32>
    %7 = arith.addf %3, %6 : vector<16x128xf32>
    %c0_6 = arith.constant 0 : index
    %c0_7 = arith.constant 0 : index
    %8 = vector.load %arg8[%c0_6, %c0_7] : memref<16x128xf32, #tpu.memory_space<vmem>>, vector<16x128xf32>
    tpu.vector_store %arg8[%c0_6, %c0_7], %7 {strides = array<i32>} : memref<16x128xf32, #tpu.memory_space<vmem>>, vector<16x128xf32>,
    %c0_i32_8 = arith.constant 0 : i32
    %9 = arith.cmpi eq, %arg2, %c0_i32_8 : i32
    %10 = arith.extui %9 : i1 to i32
    %c0_i32_9 = arith.constant 0 : i32
    %11 = arith.cmpi ne, %10, %c0_i32_9 : i32
    scf.if %11 {
      %c0_10 = arith.constant 0 : index
      %c0_11 = arith.constant 0 : index
      %12 = vector.load %arg8[%c0_10, %c0_11] : memref<16x128xf32, #tpu.memory_space<vmem>>, vector<16x128xf32>
      %c0_12 = arith.constant 0 : index
      %c0_13 = arith.constant 0 : index
      %13 = vector.load %arg5[%c0_12, %c0_13] : memref<1x128xf32, #tpu.memory_space<vmem>>, vector<1x128xf32>
      %14 = vector.broadcast %13 : vector<1x128xf32> to vector<16x128xf32>
      %15 = arith.addf %12, %14 : vector<16x128xf32>
      %c0_14 = arith.constant 0 : index
      %c0_15 = arith.constant 0 : index
      %16 = vector.load %arg6[%c0_14, %c0_15] : memref<16x128xf32, #tpu.memory_space<vmem>>, vector<16x128xf32>
      %17 = arith.addf %15, %16 : vector<16x128xf32>
      %18 = arith.truncf %17 : vector<16x128xf32> to vector<16x128xbf16>
      %c0_16 = arith.constant 0 : index
      %c0_17 = arith.constant 0 : index
      %19 = vector.load %arg7[%c0_16, %c0_17] : memref<16x128xbf16, #tpu.memory_space<vmem>>, vector<16x128xbf16>
      tpu.vector_store %arg7[%c0_16, %c0_17], %18 {strides = array<i32>} : memref<16x128xbf16, #tpu.memory_space<vmem>>, vector<16x128xbf16>,
    } else {
    }
    return
  }
  func.func @transform_0(%arg0: i32, %arg1: i32, %arg2: i32) -> (i32, i32) {
    %c0_i32 = arith.constant 0 : i32
    return %arg0, %arg2 : i32, i32
  }
  func.func @transform_1(%arg0: i32, %arg1: i32, %arg2: i32) -> (i32, i32) {
    %c0_i32 = arith.constant 0 : i32
    return %arg2, %arg1 : i32, i32
  }
  func.func @transform_2(%arg0: i32, %arg1: i32, %arg2: i32) -> (i32, i32) {
    %c0_i32 = arith.constant 0 : i32
    %c0_i32_0 = arith.constant 0 : i32
    return %c0_i32, %arg1 : i32, i32
  }
  func.func @transform_3(%arg0: i32, %arg1: i32, %arg2: i32) -> (i32, i32) {
    %c0_i32 = arith.constant 0 : i32
    return %arg0, %arg1 : i32, i32
  }
  func.func @transform_4(%arg0: i32, %arg1: i32, %arg2: i32) -> (i32, i32) {
    %c0_i32 = arith.constant 0 : i32
    return %arg0, %arg1 : i32, i32
  }
}

</mosaic_0001>

<bundles_post_ra>
// kernel: discriminator_forward.17
= control target key start
LH: loop header
LB: loop body
LE: loop exit
PB: predicated region body
PF: predicated region fallthrough
CT: control target
= control target key end

     0   :  { %s1458_s12 = smov 0   ;;  %s1460_s13 = smov 0   ;;  %s1593_s0 = inlined_call_operand.vmem [shape: bf16[512,32], index: 0, kind: input, shape index: {}]   ;;  %s1594_s1 = inlined_call_operand.vmem [shape: bf16[32,128], index: 1, kind: input, shape index: {}]   ;;  %s1595_s2 = inlined_call_operand.vmem [shape: f32[1,128], index: 2, kind: input, shape index: {}]   ;;  %s1596_s3 = inlined_call_operand.vmem [shape: bf16[512,128], index: 3, kind: output, shape index: {}]  }
   0x1   :  { %s1462_s14 = smov 0  }
   0x2 LB: > { %s32_s15 = sadd.s32 1, %s1432_s13  ;;  %p1113_p0 = scmp.ge.s32.totalorder %s1436_s14, 1  ;;  %s1436_s14 = sphi %s1462_s14, %s13_s14   ;;  %s1432_s13 = sphi %s1460_s13, %s1598_s13   ;;  %s1428_s12 = sphi %s1458_s12, %s1597_s12  }
   0x3   : > { %p34_p1 = scmp.ge.s32.totalorder %s32_s15, 2  ;;  %p188_p2 = scmp.lt.s32.totalorder %s1436_s14, 3 }
   0x5   : > { %s1600_s15 = smov (%p34_p1, %s32_s15), 0  ;;  %p189_p3 = pnand %p1113_p0, %p188_p2 }
   0x6   : > { %s1114_s18 = sshll.u32 (!%p189_p3), %s1428_s12, 5 }
   0x7   : > { %192 = sbr.rel (%p189_p3) target bundleno = 251 (0xfb), region = 32  ;;  %p230_p4 = scmp.lt.s32.totalorder (!%p189_p3), %s1114_s18, 63 }
   0xc   : > { %v1396_v0 = vld [vmem:[%s1594_s1 + $0x8] sm:$0xff]   ;;  %v1397_v1 = vld [vmem:[%s1594_s1] sm:$0xff]   ;;  %s1602_s18 = smov (!%p230_p4, %s1114_s18), 63  ;;  %vm456_vm0 = vcmask 261120  }
   0xd   : > { %1332 = vmatprep.subr.bf16.mxu0 %v1396_v0  ;;  %1368 = vmatprep.subr.bf16.mxu1 %v1396_v0  ;;  %s1115_s21 = sshll.u32 %s1602_s18, 2  ;;  %v1527_v19 = vld [vmem:[%s1595_s2] ss:$0 sm:$0xff] }
   0xe   : > { %1333 = vmatpush3.bf16.msra.mxu0 %v1396_v0  ;;  %1370 = vmatpush3.bf16.msra.mxu1 %v1396_v0  ;;  %s1490_s24 = scalar_lea.vmem %s1593_s0, %s1115_s21  ;;  %s1541_s29 = scalar_lea.vmem %s1596_s3, %s1115_s21 }
   0xf   : > { %1334 = vmatprep.subr.bf16.mxu0 %v1397_v1  ;;  %1369 = vmatprep.subr.bf16.mxu1 %v1397_v1  ;;  %v1398_v2 = vld [vmem:[%s1490_s24] sm:$0xff]   ;;  %v1400_v4 = vld [vmem:[%s1490_s24 + $0x8] sm:$0xff]   ;;  %v1402_v6 = vld [vmem:[%s1490_s24 + $0x10] sm:$0xff]  }
  0x10   : > { %v1399_v3 = vld [vmem:[%s1490_s24 + $0x40] sm:$0xff]   ;;  %1336 = vmatprep.mubr.msk.bf16.mxu0 %vm456_vm0, %v1398_v2  ;;  %v1401_v5 = vld [vmem:[%s1490_s24 + $0x48] sm:$0xff]   ;;  %v1403_v7 = vld [vmem:[%s1490_s24 + $0x50] sm:$0xff]  }
  0x11   : > { %1352 = vmatprep.mubr.msk.bf16.mxu1 %vm456_vm0, %v1399_v3  ;;  %v1404_v8 = vld [vmem:[%s1490_s24 + $0x18] sm:$0xff]   ;;  %v1406_v10 = vld [vmem:[%s1490_s24 + $0x20] sm:$0xff]   ;;  %v1408_v12 = vld [vmem:[%s1490_s24 + $0x28] sm:$0xff]  }
  0x12   : > { %1335 = vmatpush3.bf16.msra.mxu0 %v1397_v1  ;;  %1371 = vmatpush3.bf16.msra.mxu1 %v1397_v1  ;;  %v1405_v9 = vld [vmem:[%s1490_s24 + $0x58] sm:$0xff]   ;;  %v1407_v11 = vld [vmem:[%s1490_s24 + $0x60] sm:$0xff]   ;;  %v1409_v13 = vld [vmem:[%s1490_s24 + $0x68] sm:$0xff]  }
  0x13   : > { %v1410_v14 = vld [vmem:[%s1490_s24 + $0x30] sm:$0xff]   ;;  %v1412_v16 = vld [vmem:[%s1490_s24 + $0x38] sm:$0xff]  }
  0x14   : > { %v1411_v15 = vld [vmem:[%s1490_s24 + $0x70] sm:$0xff]   ;;  %v1413_v17 = vld [vmem:[%s1490_s24 + $0x78] sm:$0xff]  }
  0x15   : > { %1337 = vmatmul.mubr.msk.bf16.vlgmr.msra.gmra.mxu0 %vm456_vm0, %v1400_v4  ;;  %1353 = vmatmul.mubr.msk.bf16.vlgmr.msra.gmra.mxu1 %vm456_vm0, %v1401_v5 }
  0x16   : > { %1340 = vmatprep.mubr.msk.bf16.mxu0 %vm456_vm0, %v1402_v6  ;;  %1356 = vmatprep.mubr.msk.bf16.mxu1 %vm456_vm0, %v1403_v7 }
  0x1d   : > { %1341 = vmatmul.mubr.msk.bf16.gmra.mxu0 %vm456_vm0, %v1404_v8  ;;  %1357 = vmatmul.mubr.msk.bf16.gmra.mxu1 %vm456_vm0, %v1405_v9 }
  0x1e   : > { %1344 = vmatprep.mubr.msk.bf16.mxu0 %vm456_vm0, %v1406_v10  ;;  %1360 = vmatprep.mubr.msk.bf16.mxu1 %vm456_vm0, %v1407_v11 }
  0x25   : > { %1345 = vmatmul.mubr.msk.bf16.gmra.mxu0 %vm456_vm0, %v1408_v12  ;;  %1361 = vmatmul.mubr.msk.bf16.gmra.mxu1 %vm456_vm0, %v1409_v13 }
  0x26   : > { %1348 = vmatprep.mubr.msk.bf16.mxu0 %vm456_vm0, %v1410_v14  ;;  %1364 = vmatprep.mubr.msk.bf16.mxu1 %vm456_vm0, %v1411_v15 }
  0x2d   : > { %1349 = vmatmul.mubr.msk.bf16.gmra.mxu0 %vm456_vm0, %v1412_v16  ;;  %1365 = vmatmul.mubr.msk.bf16.gmra.mxu1 %vm456_vm0, %v1413_v17 }
  0xd5   : > { %v1338_v18 = vpop.f32.mrf.mxu0  ;;  %v1354_v20 = vpop.f32.mrf.mxu1 }
  0xd6   : > { %v774_v22 = vadd.f32 %v1338_v18, %v1527_v19  ;;  %v790_v24 = vadd.f32 %v1354_v20, %v1527_v19 }
  0xd7   : > { %v539_v21 = vpop.f32.mrf.mxu0  ;;  %v603_v23 = vpop.f32.mrf.mxu1 }
  0xd8   : > { %v772_v26 = vadd.f32 %v1527_v19, %v539_v21  ;;  %v788_v29 = vadd.f32 %v1527_v19, %v603_v23  ;;  %v806_v32 = vmax.f32 %v774_v22, 0.0  ;;  %v822_v36 = vmax.f32 %v790_v24, 0.0 }
  0xd9   : > { %v1339_v25 = vpop.f32.mrf.mxu0  ;;  %v1355_v28 = vpop.f32.mrf.mxu1 }
  0xda   : > { %v775_v27 = vadd.f32 %v1339_v25, %v1527_v19  ;;  %v791_v30 = vadd.f32 %v1355_v28, %v1527_v19  ;;  %v804_v40 = vmax.f32 %v772_v26, 0.0  ;;  %v820_v44 = vmax.f32 %v788_v29, 0.0 }
  0xdb   : > { %v542_v31 = vpop.f32.mrf.mxu0  ;;  %v606_v35 = vpop.f32.mrf.mxu1 }
  0xdc   : > { %v807_v33 = vmax.f32 %v775_v27, 0.0  ;;  %v773_v34 = vadd.f32 %v1527_v19, %v542_v31  ;;  %v823_v37 = vmax.f32 %v791_v30, 0.0  ;;  %v789_v38 = vadd.f32 %v1527_v19, %v606_v35 }
  0xdd   : > { %v1342_v39 = vpop.f32.mrf.mxu0  ;;  %v1358_v43 = vpop.f32.mrf.mxu1 }
  0xde   : > { %v1227_v41 = vpack.c.bf16 %v807_v33, %v806_v32  ;;  %v805_v42 = vmax.f32 %v773_v34, 0.0  ;;  %v1267_v45 = vpack.c.bf16 %v823_v37, %v822_v36  ;;  %v821_v46 = vmax.f32 %v789_v38, 0.0 }
  0xdf   : > { %v555_v47 = vpop.f32.mrf.mxu0  ;;  %v778_v49 = vadd.f32 %v1342_v39, %v1527_v19  ;;  %v619_v50 = vpop.f32.mrf.mxu1  ;;  %v794_v52 = vadd.f32 %v1358_v43, %v1527_v19 }
  0xe0   : > { %1299 = vst [vmem:[%s1541_s29 + $0x8] sm:$0xff] %v1227_v41   ;;  %v1222_v48 = vpack.c.bf16 %v805_v42, %v804_v40  ;;  %1307 = vst [vmem:[%s1541_s29 + $0x48] sm:$0xff] %v1267_v45   ;;  %v1262_v51 = vpack.c.bf16 %v821_v46, %v820_v44  ;;  %v776_v54 = vadd.f32 %v1527_v19, %v555_v47 }
  0xe1   : > { %v1343_v53 = vpop.f32.mrf.mxu0  ;;  %v1359_v56 = vpop.f32.mrf.mxu1  ;;  %v792_v57 = vadd.f32 %v1527_v19, %v619_v50  ;;  %v810_v60 = vmax.f32 %v778_v49, 0.0  ;;  %v826_v0 = vmax.f32 %v794_v52, 0.0 }
  0xe2   : > { %1223 = vst [vmem:[%s1541_s29] sm:$0xff] %v1222_v48   ;;  %v779_v55 = vadd.f32 %v1343_v53, %v1527_v19  ;;  %1306 = vst [vmem:[%s1541_s29 + $0x40] sm:$0xff] %v1262_v51   ;;  %v795_v58 = vadd.f32 %v1359_v56, %v1527_v19  ;;  %v808_v4 = vmax.f32 %v776_v54, 0.0 }
  0xe3   : > { %v558_v59 = vpop.f32.mrf.mxu0  ;;  %v622_v63 = vpop.f32.mrf.mxu1  ;;  %v824_v8 = vmax.f32 %v792_v57, 0.0 }
  0xe4   : > { %v811_v61 = vmax.f32 %v779_v55, 0.0  ;;  %v777_v62 = vadd.f32 %v1527_v19, %v558_v59  ;;  %v827_v1 = vmax.f32 %v795_v58, 0.0  ;;  %v793_v2 = vadd.f32 %v1527_v19, %v622_v63 }
  0xe5   : > { %v1346_v3 = vpop.f32.mrf.mxu0  ;;  %v1362_v7 = vpop.f32.mrf.mxu1 }
  0xe6   : > { %v1237_v5 = vpack.c.bf16 %v811_v61, %v810_v60  ;;  %v809_v6 = vmax.f32 %v777_v62, 0.0  ;;  %v1277_v9 = vpack.c.bf16 %v827_v1, %v826_v0  ;;  %v825_v10 = vmax.f32 %v793_v2, 0.0 }
  0xe7   : > { %v571_v11 = vpop.f32.mrf.mxu0  ;;  %v782_v13 = vadd.f32 %v1346_v3, %v1527_v19  ;;  %v635_v14 = vpop.f32.mrf.mxu1  ;;  %v798_v16 = vadd.f32 %v1362_v7, %v1527_v19 }
  0xe8   : > { %1301 = vst [vmem:[%s1541_s29 + $0x18] sm:$0xff] %v1237_v5   ;;  %v1232_v12 = vpack.c.bf16 %v809_v6, %v808_v4  ;;  %1309 = vst [vmem:[%s1541_s29 + $0x58] sm:$0xff] %v1277_v9   ;;  %v1272_v15 = vpack.c.bf16 %v825_v10, %v824_v8  ;;  %v780_v18 = vadd.f32 %v1527_v19, %v571_v11 }
  0xe9   : > { %v1347_v17 = vpop.f32.mrf.mxu0  ;;  %v1363_v21 = vpop.f32.mrf.mxu1  ;;  %v796_v22 = vadd.f32 %v1527_v19, %v635_v14  ;;  %v814_v25 = vmax.f32 %v782_v13, 0.0  ;;  %v830_v29 = vmax.f32 %v798_v16, 0.0 }
  0xea   : > { %1300 = vst [vmem:[%s1541_s29 + $0x10] sm:$0xff] %v1232_v12   ;;  %v783_v20 = vadd.f32 %v1347_v17, %v1527_v19  ;;  %1308 = vst [vmem:[%s1541_s29 + $0x50] sm:$0xff] %v1272_v15   ;;  %v799_v23 = vadd.f32 %v1363_v21, %v1527_v19  ;;  %v812_v33 = vmax.f32 %v780_v18, 0.0 }
  0xeb   : > { %v574_v24 = vpop.f32.mrf.mxu0  ;;  %v638_v28 = vpop.f32.mrf.mxu1  ;;  %v828_v37 = vmax.f32 %v796_v22, 0.0 }
  0xec   : > { %v815_v26 = vmax.f32 %v783_v20, 0.0  ;;  %v781_v27 = vadd.f32 %v1527_v19, %v574_v24  ;;  %v831_v30 = vmax.f32 %v799_v23, 0.0  ;;  %v797_v31 = vadd.f32 %v1527_v19, %v638_v28 }
  0xed   : > { %v1350_v32 = vpop.f32.mrf.mxu0  ;;  %v1366_v36 = vpop.f32.mrf.mxu1 }
  0xee   : > { %v1247_v34 = vpack.c.bf16 %v815_v26, %v814_v25  ;;  %v813_v35 = vmax.f32 %v781_v27, 0.0  ;;  %v1287_v38 = vpack.c.bf16 %v831_v30, %v830_v29  ;;  %v829_v39 = vmax.f32 %v797_v31, 0.0 }
  0xef   : > { %v587_v40 = vpop.f32.mrf.mxu0  ;;  %v786_v42 = vadd.f32 %v1350_v32, %v1527_v19  ;;  %v651_v43 = vpop.f32.mrf.mxu1  ;;  %v802_v45 = vadd.f32 %v1366_v36, %v1527_v19 }
  0xf0   : > { %1303 = vst [vmem:[%s1541_s29 + $0x28] sm:$0xff] %v1247_v34   ;;  %v1242_v41 = vpack.c.bf16 %v813_v35, %v812_v33  ;;  %1311 = vst [vmem:[%s1541_s29 + $0x68] sm:$0xff] %v1287_v38   ;;  %v1282_v44 = vpack.c.bf16 %v829_v39, %v828_v37  ;;  %v784_v47 = vadd.f32 %v1527_v19, %v587_v40 }
  0xf1   : > { %v1351_v46 = vpop.f32.mrf.mxu0  ;;  %v1367_v49 = vpop.f32.mrf.mxu1  ;;  %v800_v50 = vadd.f32 %v1527_v19, %v651_v43  ;;  %v818_v53 = vmax.f32 %v786_v42, 0.0  ;;  %v834_v57 = vmax.f32 %v802_v45, 0.0 }
  0xf2   : > { %1302 = vst [vmem:[%s1541_s29 + $0x20] sm:$0xff] %v1242_v41   ;;  %v787_v48 = vadd.f32 %v1351_v46, %v1527_v19  ;;  %1310 = vst [vmem:[%s1541_s29 + $0x60] sm:$0xff] %v1282_v44   ;;  %v803_v51 = vadd.f32 %v1367_v49, %v1527_v19  ;;  %v816_v60 = vmax.f32 %v784_v47, 0.0 }
  0xf3   : > { %v590_v52 = vpop.f32.mrf.mxu0  ;;  %v654_v56 = vpop.f32.mrf.mxu1  ;;  %v832_v63 = vmax.f32 %v800_v50, 0.0 }
  0xf4   : > { %v819_v54 = vmax.f32 %v787_v48, 0.0  ;;  %v785_v55 = vadd.f32 %v1527_v19, %v590_v52  ;;  %v835_v58 = vmax.f32 %v803_v51, 0.0  ;;  %v801_v59 = vadd.f32 %v1527_v19, %v654_v56 }
  0xf6   : > { %v1257_v61 = vpack.c.bf16 %v819_v54, %v818_v53  ;;  %v817_v62 = vmax.f32 %v785_v55, 0.0  ;;  %v1297_v0 = vpack.c.bf16 %v835_v58, %v834_v57  ;;  %v833_v1 = vmax.f32 %v801_v59, 0.0 }
  0xf8   : > { %1305 = vst [vmem:[%s1541_s29 + $0x38] sm:$0xff] %v1257_v61   ;;  %v1252_v2 = vpack.c.bf16 %v817_v62, %v816_v60  ;;  %1313 = vst [vmem:[%s1541_s29 + $0x78] sm:$0xff] %v1297_v0   ;;  %v1292_v3 = vpack.c.bf16 %v833_v1, %v832_v63 }
  0xfa   : > { %1304 = vst [vmem:[%s1541_s29 + $0x30] sm:$0xff] %v1252_v2   ;;  %1312 = vst [vmem:[%s1541_s29 + $0x70] sm:$0xff] %v1292_v3  }
  0xfb PF: > { %s13_s14 = sadd.s32 1, %s1436_s14   ;;  %s1597_s12 = smov %s1432_s13 }
  0xfc   : > { %p10_p5 = scmp.ge.s32.totalorder %s13_s14, 4   ;;  %s1598_s13 = smov %s1600_s15 }
  0xfe   :  { %12 = sbr.rel (!%p10_p5) target bundleno = 2 (0x2), region = 76 }

// kernel: discriminator_forward.16
= control target key start
LH: loop header
LB: loop body
LE: loop exit
PB: predicated region body
PF: predicated region fallthrough
CT: control target
= control target key end

     0   :  { %s1124_s12 = smov 0   ;;  %s1126_s13 = smov 0   ;;  %s1269_s0 = inlined_call_operand.vmem [shape: bf16[512,16], index: 0, kind: input, shape index: {}]   ;;  %s1270_s1 = inlined_call_operand.vmem [shape: bf16[16,128], index: 1, kind: input, shape index: {}]   ;;  %s1271_s2 = inlined_call_operand.vmem [shape: f32[1,128], index: 2, kind: input, shape index: {}]   ;;  %s1272_s3 = inlined_call_operand.vmem [shape: f32[512,128], index: 3, kind: output, shape index: {}]  }
   0x1   :  { %s1128_s14 = smov 0  }
   0x2 LB: > { %s32_s15 = sadd.s32 1, %s1098_s13  ;;  %p945_p0 = scmp.ge.s32.totalorder %s1102_s14, 1  ;;  %s1102_s14 = sphi %s1128_s14, %s13_s14   ;;  %s1098_s13 = sphi %s1126_s13, %s1274_s13   ;;  %s1094_s12 = sphi %s1124_s12, %s1273_s12  }
   0x3   : > { %p34_p1 = scmp.ge.s32.totalorder %s32_s15, 2  ;;  %p188_p2 = scmp.lt.s32.totalorder %s1102_s14, 3 }
   0x5   : > { %s1276_s15 = smov (%p34_p1, %s32_s15), 0  ;;  %p189_p3 = pnand %p945_p0, %p188_p2 }
   0x6   : > { %s946_s18 = sshll.u32 (!%p189_p3), %s1094_s12, 5 }
   0x7   : > { %192 = sbr.rel (%p189_p3) target bundleno = 244 (0xf4), region = 32  ;;  %p230_p4 = scmp.lt.s32.totalorder (!%p189_p3), %s946_s18, 63 }
   0xc   : > { %v1063_v0 = vld [vmem:[%s1270_s1] sm:$0xff]   ;;  %s1278_s18 = smov (!%p230_p4, %s946_s18), 63  ;;  %vm448_vm0 = vcmask 130048  }
   0xd   : > { %1003 = vmatprep.subr.bf16.mxu0 %v1063_v0  ;;  %1037 = vmatprep.subr.bf16.mxu1 %v1063_v0  ;;  %s947_s19 = sshll.u32 %s1278_s18, 2  ;;  %s949_s23 = sshll.u32 %s1278_s18, 3  ;;  %v1189_v17 = vld [vmem:[%s1271_s2] ss:$0 sm:$0xff] }
   0xe   : > { %1004 = vmatpush3.bf16.msra.mxu0 %v1063_v0  ;;  %1038 = vmatpush3.bf16.msra.mxu1 %v1063_v0  ;;  %s1151_s22 = scalar_lea.vmem %s1269_s0, %s947_s19  ;;  %s1194_s28 = scalar_lea.vmem %s1272_s3, %s949_s23 }
   0xf   : > { %v1064_v1 = vld [vmem:[%s1151_s22] sm:$0xff]   ;;  %v1066_v3 = vld [vmem:[%s1151_s22 + $0x8] sm:$0xff]   ;;  %v1068_v5 = vld [vmem:[%s1151_s22 + $0x10] sm:$0xff]  }
  0x10   : > { %v1065_v2 = vld [vmem:[%s1151_s22 + $0x40] sm:$0xff]   ;;  %1005 = vmatprep.mubr.msk.bf16.mxu0 %vm448_vm0, %v1064_v1  ;;  %v1067_v4 = vld [vmem:[%s1151_s22 + $0x48] sm:$0xff]   ;;  %v1069_v6 = vld [vmem:[%s1151_s22 + $0x50] sm:$0xff]  }
  0x11   : > { %1021 = vmatprep.mubr.msk.bf16.mxu1 %vm448_vm0, %v1065_v2  ;;  %1006 = vmatmul.mubr.msk.bf16.vlgmr.msra.gmra.mxu0 %vm448_vm0, %v1066_v3  ;;  %v1070_v7 = vld [vmem:[%s1151_s22 + $0x18] sm:$0xff]   ;;  %v1072_v9 = vld [vmem:[%s1151_s22 + $0x20] sm:$0xff]   ;;  %v1074_v11 = vld [vmem:[%s1151_s22 + $0x28] sm:$0xff]  }
  0x12   : > { %1022 = vmatmul.mubr.msk.bf16.vlgmr.msra.gmra.mxu1 %vm448_vm0, %v1067_v4  ;;  %1009 = vmatprep.mubr.msk.bf16.mxu0 %vm448_vm0, %v1068_v5  ;;  %v1071_v8 = vld [vmem:[%s1151_s22 + $0x58] sm:$0xff]   ;;  %v1073_v10 = vld [vmem:[%s1151_s22 + $0x60] sm:$0xff]   ;;  %v1075_v12 = vld [vmem:[%s1151_s22 + $0x68] sm:$0xff]  }
  0x13   : > { %1025 = vmatprep.mubr.msk.bf16.mxu1 %vm448_vm0, %v1069_v6  ;;  %v1076_v13 = vld [vmem:[%s1151_s22 + $0x30] sm:$0xff]   ;;  %v1078_v15 = vld [vmem:[%s1151_s22 + $0x38] sm:$0xff]  }
  0x14   : > { %v1077_v14 = vld [vmem:[%s1151_s22 + $0x70] sm:$0xff]   ;;  %v1079_v16 = vld [vmem:[%s1151_s22 + $0x78] sm:$0xff]  }
  0x19   : > { %1010 = vmatmul.mubr.msk.bf16.gmra.mxu0 %vm448_vm0, %v1070_v7 }
  0x1a   : > { %1026 = vmatmul.mubr.msk.bf16.gmra.mxu1 %vm448_vm0, %v1071_v8  ;;  %1013 = vmatprep.mubr.msk.bf16.mxu0 %vm448_vm0, %v1072_v9 }
  0x1b   : > { %1029 = vmatprep.mubr.msk.bf16.mxu1 %vm448_vm0, %v1073_v10 }
  0x21   : > { %1014 = vmatmul.mubr.msk.bf16.gmra.mxu0 %vm448_vm0, %v1074_v11 }
  0x22   : > { %1030 = vmatmul.mubr.msk.bf16.gmra.mxu1 %vm448_vm0, %v1075_v12  ;;  %1017 = vmatprep.mubr.msk.bf16.mxu0 %vm448_vm0, %v1076_v13 }
  0x23   : > { %1033 = vmatprep.mubr.msk.bf16.mxu1 %vm448_vm0, %v1077_v14 }
  0x29   : > { %1018 = vmatmul.mubr.msk.bf16.gmra.mxu0 %vm448_vm0, %v1078_v15 }
  0x2a   : > { %1034 = vmatmul.mubr.msk.bf16.gmra.mxu1 %vm448_vm0, %v1079_v16 }
  0xd1   : > { %v1007_v18 = vpop.f32.mrf.mxu0 }
  0xd2   : > { %v766_v19 = vadd.f32 %v1007_v18, %v1189_v17  ;;  %v1023_v20 = vpop.f32.mrf.mxu1 }
  0xd3   : > { %v782_v21 = vadd.f32 %v1023_v20, %v1189_v17  ;;  %v531_v22 = vpop.f32.mrf.mxu0 }
  0xd4   : > { %798 = vst [vmem:[%s1194_s28 + $0x10] sm:$0xff] %v766_v19  ;;  %v764_v23 = vadd.f32 %v1189_v17, %v531_v22  ;;  %v595_v24 = vpop.f32.mrf.mxu1 }
  0xd5   : > { %814 = vst [vmem:[%s1194_s28 + $0x90] sm:$0xff] %v782_v21  ;;  %v780_v25 = vadd.f32 %v1189_v17, %v595_v24  ;;  %v1008_v26 = vpop.f32.mrf.mxu0 }
  0xd6   : > { %796 = vst [vmem:[%s1194_s28] sm:$0xff] %v764_v23  ;;  %v767_v27 = vadd.f32 %v1008_v26, %v1189_v17  ;;  %v1024_v28 = vpop.f32.mrf.mxu1 }
  0xd7   : > { %812 = vst [vmem:[%s1194_s28 + $0x80] sm:$0xff] %v780_v25  ;;  %v783_v29 = vadd.f32 %v1024_v28, %v1189_v17  ;;  %v534_v30 = vpop.f32.mrf.mxu0 }
  0xd8   : > { %799 = vst [vmem:[%s1194_s28 + $0x18] sm:$0xff] %v767_v27  ;;  %v765_v31 = vadd.f32 %v1189_v17, %v534_v30  ;;  %v598_v32 = vpop.f32.mrf.mxu1 }
  0xd9   : > { %815 = vst [vmem:[%s1194_s28 + $0x98] sm:$0xff] %v783_v29  ;;  %v781_v33 = vadd.f32 %v1189_v17, %v598_v32  ;;  %v1011_v34 = vpop.f32.mrf.mxu0 }
  0xda   : > { %797 = vst [vmem:[%s1194_s28 + $0x8] sm:$0xff] %v765_v31  ;;  %v770_v35 = vadd.f32 %v1011_v34, %v1189_v17  ;;  %v1027_v36 = vpop.f32.mrf.mxu1 }
  0xdb   : > { %813 = vst [vmem:[%s1194_s28 + $0x88] sm:$0xff] %v781_v33  ;;  %v786_v37 = vadd.f32 %v1027_v36, %v1189_v17  ;;  %v547_v38 = vpop.f32.mrf.mxu0 }
  0xdc   : > { %802 = vst [vmem:[%s1194_s28 + $0x30] sm:$0xff] %v770_v35  ;;  %v768_v39 = vadd.f32 %v1189_v17, %v547_v38  ;;  %v611_v40 = vpop.f32.mrf.mxu1 }
  0xdd   : > { %818 = vst [vmem:[%s1194_s28 + $0xb0] sm:$0xff] %v786_v37  ;;  %v784_v41 = vadd.f32 %v1189_v17, %v611_v40  ;;  %v1012_v42 = vpop.f32.mrf.mxu0 }
  0xde   : > { %800 = vst [vmem:[%s1194_s28 + $0x20] sm:$0xff] %v768_v39  ;;  %v771_v43 = vadd.f32 %v1012_v42, %v1189_v17  ;;  %v1028_v44 = vpop.f32.mrf.mxu1 }
  0xdf   : > { %816 = vst [vmem:[%s1194_s28 + $0xa0] sm:$0xff] %v784_v41  ;;  %v787_v45 = vadd.f32 %v1028_v44, %v1189_v17  ;;  %v550_v46 = vpop.f32.mrf.mxu0 }
  0xe0   : > { %803 = vst [vmem:[%s1194_s28 + $0x38] sm:$0xff] %v771_v43  ;;  %v769_v47 = vadd.f32 %v1189_v17, %v550_v46  ;;  %v614_v48 = vpop.f32.mrf.mxu1 }
  0xe1   : > { %819 = vst [vmem:[%s1194_s28 + $0xb8] sm:$0xff] %v787_v45  ;;  %v785_v49 = vadd.f32 %v1189_v17, %v614_v48  ;;  %v1015_v50 = vpop.f32.mrf.mxu0 }
  0xe2   : > { %801 = vst [vmem:[%s1194_s28 + $0x28] sm:$0xff] %v769_v47  ;;  %v774_v51 = vadd.f32 %v1015_v50, %v1189_v17  ;;  %v1031_v52 = vpop.f32.mrf.mxu1 }
  0xe3   : > { %817 = vst [vmem:[%s1194_s28 + $0xa8] sm:$0xff] %v785_v49  ;;  %v790_v53 = vadd.f32 %v1031_v52, %v1189_v17  ;;  %v563_v54 = vpop.f32.mrf.mxu0 }
  0xe4   : > { %806 = vst [vmem:[%s1194_s28 + $0x50] sm:$0xff] %v774_v51  ;;  %v772_v55 = vadd.f32 %v1189_v17, %v563_v54  ;;  %v627_v56 = vpop.f32.mrf.mxu1 }
  0xe5   : > { %822 = vst [vmem:[%s1194_s28 + $0xd0] sm:$0xff] %v790_v53  ;;  %v788_v57 = vadd.f32 %v1189_v17, %v627_v56  ;;  %v1016_v58 = vpop.f32.mrf.mxu0 }
  0xe6   : > { %804 = vst [vmem:[%s1194_s28 + $0x40] sm:$0xff] %v772_v55  ;;  %v775_v59 = vadd.f32 %v1016_v58, %v1189_v17  ;;  %v1032_v60 = vpop.f32.mrf.mxu1 }
  0xe7   : > { %820 = vst [vmem:[%s1194_s28 + $0xc0] sm:$0xff] %v788_v57  ;;  %v791_v61 = vadd.f32 %v1032_v60, %v1189_v17  ;;  %v566_v62 = vpop.f32.mrf.mxu0 }
  0xe8   : > { %807 = vst [vmem:[%s1194_s28 + $0x58] sm:$0xff] %v775_v59  ;;  %v773_v63 = vadd.f32 %v1189_v17, %v566_v62  ;;  %v630_v0 = vpop.f32.mrf.mxu1 }
  0xe9   : > { %823 = vst [vmem:[%s1194_s28 + $0xd8] sm:$0xff] %v791_v61  ;;  %v789_v1 = vadd.f32 %v1189_v17, %v630_v0  ;;  %v1019_v2 = vpop.f32.mrf.mxu0 }
  0xea   : > { %805 = vst [vmem:[%s1194_s28 + $0x48] sm:$0xff] %v773_v63  ;;  %v778_v3 = vadd.f32 %v1019_v2, %v1189_v17  ;;  %v1035_v4 = vpop.f32.mrf.mxu1 }
  0xeb   : > { %821 = vst [vmem:[%s1194_s28 + $0xc8] sm:$0xff] %v789_v1  ;;  %v794_v5 = vadd.f32 %v1035_v4, %v1189_v17  ;;  %v579_v6 = vpop.f32.mrf.mxu0 }
  0xec   : > { %810 = vst [vmem:[%s1194_s28 + $0x70] sm:$0xff] %v778_v3  ;;  %v776_v7 = vadd.f32 %v1189_v17, %v579_v6  ;;  %v643_v8 = vpop.f32.mrf.mxu1 }
  0xed   : > { %826 = vst [vmem:[%s1194_s28 + $0xf0] sm:$0xff] %v794_v5  ;;  %v792_v9 = vadd.f32 %v1189_v17, %v643_v8  ;;  %v1020_v10 = vpop.f32.mrf.mxu0 }
  0xee   : > { %808 = vst [vmem:[%s1194_s28 + $0x60] sm:$0xff] %v776_v7  ;;  %v779_v11 = vadd.f32 %v1020_v10, %v1189_v17  ;;  %v1036_v12 = vpop.f32.mrf.mxu1 }
  0xef   : > { %824 = vst [vmem:[%s1194_s28 + $0xe0] sm:$0xff] %v792_v9  ;;  %v795_v13 = vadd.f32 %v1036_v12, %v1189_v17  ;;  %v582_v14 = vpop.f32.mrf.mxu0 }
  0xf0   : > { %811 = vst [vmem:[%s1194_s28 + $0x78] sm:$0xff] %v779_v11  ;;  %v777_v15 = vadd.f32 %v1189_v17, %v582_v14  ;;  %v646_v16 = vpop.f32.mrf.mxu1 }
  0xf1   : > { %827 = vst [vmem:[%s1194_s28 + $0xf8] sm:$0xff] %v795_v13  ;;  %v793_v18 = vadd.f32 %v1189_v17, %v646_v16 }
  0xf2   : > { %809 = vst [vmem:[%s1194_s28 + $0x68] sm:$0xff] %v777_v15 }
  0xf3   : > { %825 = vst [vmem:[%s1194_s28 + $0xe8] sm:$0xff] %v793_v18 }
  0xf4 PF: > { %s13_s14 = sadd.s32 1, %s1102_s14   ;;  %s1273_s12 = smov %s1098_s13 }
  0xf5   : > { %p10_p5 = scmp.ge.s32.totalorder %s13_s14, 4   ;;  %s1274_s13 = smov %s1276_s15 }
  0xf7   :  { %12 = sbr.rel (!%p10_p5) target bundleno = 2 (0x2), region = 76 }

// kernel: discriminator_forward.19
= control target key start
LH: loop header
LB: loop body
LE: loop exit
PB: predicated region body
PF: predicated region fallthrough
CT: control target
= control target key end

     0   :  { %s683_s12 = smov 0   ;;  %s685_s13 = smov 0   ;;  %s725_s0 = inlined_call_operand.vmem [shape: bf16[128,32], index: 0, kind: input, shape index: {}]   ;;  %s726_s1 = inlined_call_operand.vmem [shape: bf16[32,128], index: 1, kind: input, shape index: {}]   ;;  %s727_s2 = inlined_call_operand.vmem [shape: f32[1,128], index: 2, kind: input, shape index: {}]   ;;  %s728_s3 = inlined_call_operand.vmem [shape: f32[128,128], index: 3, kind: output, shape index: {}]  }
   0x1   :  { %s687_s14 = smov 0  }
   0x2 LB: > { %s32_s15 = sadd.s32 1, %s657_s13  ;;  %p569_p0 = scmp.ge.s32.totalorder %s661_s14, 1  ;;  %s661_s14 = sphi %s687_s14, %s13_s14   ;;  %s657_s13 = sphi %s685_s13, %s730_s13   ;;  %s653_s12 = sphi %s683_s12, %s729_s12  }
   0x3   : > { %p34_p1 = scmp.ge.s32.totalorder %s32_s15, 2  ;;  %p188_p2 = scmp.lt.s32.totalorder %s661_s14, 3 }
   0x5   : > { %s732_s15 = smov (%p34_p1, %s32_s15), 0  ;;  %p189_p3 = pnand %p569_p0, %p188_p2 }
   0x6   : > { %s570_s18 = sshll.u32 (!%p189_p3), %s653_s12, 3 }
   0x7   : > { %192 = sbr.rel (%p189_p3) target bundleno = 223 (0xdf), region = 32  ;;  %p230_p4 = scmp.lt.s32.totalorder (!%p189_p3), %s570_s18, 15 }
   0xc   : > { %v633_v0 = vld [vmem:[%s726_s1 + $0x8] sm:$0xff]   ;;  %v634_v1 = vld [vmem:[%s726_s1] sm:$0xff]   ;;  %s734_s18 = smov (!%p230_p4, %s570_s18), 15  ;;  %vm324_vm0 = vcmask 261120  }
   0xd   : > { %593 = vmatprep.subr.bf16.mxu0 %v633_v0  ;;  %605 = vmatprep.subr.bf16.mxu1 %v633_v0  ;;  %s571_s21 = sshll.u32 %s734_s18, 2  ;;  %s573_s25 = sshll.u32 %s734_s18, 3  ;;  %v584_v6 = vld [vmem:[%s727_s2] ss:$0 sm:$0xff] }
   0xe   : > { %594 = vmatpush3.bf16.msra.mxu0 %v633_v0  ;;  %607 = vmatpush3.bf16.msra.mxu1 %v633_v0  ;;  %s236_s24 = scalar_lea.vmem %s725_s0, %s571_s21  ;;  %s257_s30 = scalar_lea.vmem %s728_s3, %s573_s25 }
   0xf   : > { %595 = vmatprep.subr.bf16.mxu0 %v634_v1  ;;  %606 = vmatprep.subr.bf16.mxu1 %v634_v1  ;;  %v635_v2 = vld [vmem:[%s236_s24] sm:$0xff]   ;;  %v636_v3 = vld [vmem:[%s236_s24 + $0x10] sm:$0xff]   ;;  %v637_v4 = vld [vmem:[%s236_s24 + $0x8] sm:$0xff]  }
  0x10   : > { %597 = vmatprep.mubr.msk.bf16.mxu0 %vm324_vm0, %v635_v2  ;;  %601 = vmatprep.mubr.msk.bf16.mxu1 %vm324_vm0, %v636_v3  ;;  %v638_v5 = vld [vmem:[%s236_s24 + $0x18] sm:$0xff]  }
  0x12   : > { %596 = vmatpush3.bf16.msra.mxu0 %v634_v1  ;;  %608 = vmatpush3.bf16.msra.mxu1 %v634_v1 }
  0x15   : > { %598 = vmatmul.mubr.msk.bf16.vlgmr.msra.gmra.mxu0 %vm324_vm0, %v637_v4  ;;  %602 = vmatmul.mubr.msk.bf16.vlgmr.msra.gmra.mxu1 %vm324_vm0, %v638_v5 }
  0xd5   : > { %v599_v7 = vpop.f32.mrf.mxu0  ;;  %v603_v9 = vpop.f32.mrf.mxu1 }
  0xd6   : > { %v438_v8 = vadd.f32 %v599_v7, %v584_v6  ;;  %v442_v10 = vadd.f32 %v603_v9, %v584_v6 }
  0xd7   : > { %v371_v11 = vpop.f32.mrf.mxu0  ;;  %v387_v13 = vpop.f32.mrf.mxu1 }
  0xd8   : > { %446 = vst [vmem:[%s257_s30 + $0x10] sm:$0xff] %v438_v8  ;;  %v436_v12 = vadd.f32 %v584_v6, %v371_v11  ;;  %450 = vst [vmem:[%s257_s30 + $0x30] sm:$0xff] %v442_v10  ;;  %v440_v14 = vadd.f32 %v584_v6, %v387_v13 }
  0xd9   : > { %v600_v15 = vpop.f32.mrf.mxu0  ;;  %v604_v17 = vpop.f32.mrf.mxu1 }
  0xda   : > { %444 = vst [vmem:[%s257_s30] sm:$0xff] %v436_v12  ;;  %v439_v16 = vadd.f32 %v600_v15, %v584_v6  ;;  %448 = vst [vmem:[%s257_s30 + $0x20] sm:$0xff] %v440_v14  ;;  %v443_v18 = vadd.f32 %v604_v17, %v584_v6 }
  0xdb   : > { %v374_v19 = vpop.f32.mrf.mxu0  ;;  %v390_v21 = vpop.f32.mrf.mxu1 }
  0xdc   : > { %447 = vst [vmem:[%s257_s30 + $0x18] sm:$0xff] %v439_v16  ;;  %v437_v20 = vadd.f32 %v584_v6, %v374_v19  ;;  %451 = vst [vmem:[%s257_s30 + $0x38] sm:$0xff] %v443_v18  ;;  %v441_v22 = vadd.f32 %v584_v6, %v390_v21 }
  0xde   : > { %445 = vst [vmem:[%s257_s30 + $0x8] sm:$0xff] %v437_v20  ;;  %449 = vst [vmem:[%s257_s30 + $0x28] sm:$0xff] %v441_v22 }
  0xdf PF: > { %s13_s14 = sadd.s32 1, %s661_s14   ;;  %s729_s12 = smov %s657_s13 }
  0xe0   : > { %p10_p5 = scmp.ge.s32.totalorder %s13_s14, 4   ;;  %s730_s13 = smov %s732_s15 }
  0xe2   :  { %12 = sbr.rel (!%p10_p5) target bundleno = 2 (0x2), region = 76 }

// kernel: discriminator_forward.18
= control target key start
LH: loop header
LB: loop body
LE: loop exit
PB: predicated region body
PF: predicated region fallthrough
CT: control target
= control target key end

     0   :  { %s2109_s15 = smov 0   ;;  %s2111_s16 = smov 0   ;;  %s2440_s0 = inlined_call_operand.vmem [shape: bf16[576,24], index: 0, kind: input, shape index: {}]   ;;  %s2441_s1 = inlined_call_operand.vmem [shape: bf16[3,24,128], index: 1, kind: input, shape index: {}]   ;;  %s2442_s2 = inlined_call_operand.vmem [shape: f32[1,128], index: 2, kind: input, shape index: {}]   ;;  %s2443_s3 = inlined_call_operand.vmem [shape: f32[512,128], index: 3, kind: input, shape index: {}]   ;;  %s2444_s4 = inlined_call_operand.vmem [shape: bf16[512,128], index: 4, kind: output, shape index: {}]  }
   0x1   :  { %s2113_s17 = smov 0  }
   0x2 LB: > { %s26_s18 = sadd.s32 1, %s2078_s16  ;;  %p1566_p0 = scmp.ge.s32.totalorder %s2082_s17, 1  ;;  %s2082_s17 = sphi %s2113_s17, %s14_s17   ;;  %s2078_s16 = sphi %s2111_s16, %s2446_s16   ;;  %s2074_s15 = sphi %s2109_s15, %s2445_s15  }
   0x3   : > { %p28_p1 = scmp.ge.s32.totalorder %s26_s18, 2  ;;  %p210_p2 = scmp.lt.s32.totalorder %s2082_s17, 3 }
   0x5   : > { %s2448_s18 = smov (%p28_p1, %s26_s18), 0  ;;  %p211_p3 = pnand %p1566_p0, %p210_p2 }
   0x6   : > { %s254_s23 = smul.u32 (!%p211_p3), 36, %s2074_s15  ;;  %s1568_s10 = sshll.u32 (!%p211_p3), %s2074_s15, 5 }
   0x7   : > { %214 = sbr.rel (%p211_p3) target bundleno = 319 (0x13f), region = 36  ;;  %p268_p5 = scmp.lt.s32.totalorder (!%p211_p3), %s1568_s10, 63 }
   0x8   : > { %p255_p4 = scmp.lt.s32.totalorder (!%p211_p3), %s254_s23, 71 }
   0xc   : > { %v2021_v0 = vld [vmem:[%s2441_s1 + $0x14] ss:$0 sps:$4 sm:$0xff]   ;;  %vm465_vm0 = vcmask 1043456   ;;  %v2022_v1 = vld [vmem:[%s2441_s1 + $0xc] sm:$0xff]   ;;  %v2025_v3 = vld [vmem:[%s2441_s1 + $0x8] ss:$0 sps:$4 sm:$0xff]  }
   0xd   : > { %1994 = vmatprep.subr.msk.bf16.mxu1 %vm465_vm0, %v2021_v0  ;;  %1993 = vmatprep.subr.msk.bf16.mxu0 %vm465_vm0, %v2021_v0  ;;  %v467_v2 = vsel %vm465_vm0, %v2021_v0, 0  ;;  %v2028_v4 = vld [vmem:[%s2441_s1 + $0x20] ss:$0 sps:$4 sm:$0xff]   ;;  %s2450_s23 = smov (!%p255_p4, %s254_s23), 71  ;;  %vm416_vm1 = vcmask 195584   ;;  %v2038_v10 = vld [vmem:[%s2441_s1 + $0x18] sm:$0xff]  }
   0xe   : > { %1991 = vmatpush3.bf16.msra.mxu1 %v467_v2  ;;  %1882 = vmatpush3.bf16.msra.mxu0 %v467_v2  ;;  %s1567_s28 = sshll.u32 %s2450_s23, 2  ;;  %v2035_v7 = vld [vmem:[%s2441_s1] sm:$0xff]   ;;  %v985_v9 = vsel %vm465_vm0, %v2028_v4, 0  ;;  %v648_v12 = vsel %vm465_vm0, %v2025_v3, 0  ;;  %s2452_s10 = smov (!%p268_p5, %s1568_s10), 63 }
   0xf   : > { %1990 = vmatprep.subr.bf16.mxu1 %v2022_v1  ;;  %1883 = vmatprep.subr.bf16.mxu0 %v2022_v1  ;;  %s2148_s5 = scalar_lea.vmem %s2440_s0, %s1567_s28  ;;  %s1569_s11 = sshll.u32 %s2452_s10, 3 }
  0x10   : > { %v2023_v5 = vld [vmem:[%s2148_s5 + $0x8] sm:$0xff]   ;;  %v2026_v8 = vld [vmem:[%s2148_s5 + $0x10] sm:$0xff]   ;;  %v2029_v13 = vld [vmem:[%s2148_s5 + $0x18] sm:$0xff]   ;;  %s2317_s19 = scalar_lea.vmem %s2443_s3, %s1569_s11  ;;  %s1571_s20 = sshll.u32 %s2452_s10, 2 }
  0x11   : > { %v2154_v6 = vld [vmem:[%s2148_s5 + $0x48] sm:$0xff]   ;;  %1885 = vmatprep.mubr.msk.bf16.mxu0 %vm416_vm1, %v2023_v5  ;;  %v2168_v11 = vld [vmem:[%s2148_s5 + $0x50] sm:$0xff]   ;;  %v2176_v14 = vld [vmem:[%s2148_s5 + $0x58] sm:$0xff]   ;;  %s2331_s23 = scalar_lea.vmem %s2444_s4, %s1571_s20 }
  0x12   : > { %1992 = vmatpush3.bf16.msra.mxu1 %v2022_v1  ;;  %1884 = vmatpush3.bf16.msra.mxu0 %v2022_v1  ;;  %v2031_v15 = vld [vmem:[%s2148_s5 + $0x20] sm:$0xff]   ;;  %v2033_v17 = vld [vmem:[%s2148_s5 + $0x28] sm:$0xff]   ;;  %v2036_v19 = vld [vmem:[%s2148_s5 + $0x30] sm:$0xff]  }
  0x13   : > { %1995 = vmatprep.subr.msk.bf16.mxu1 %vm465_vm0, %v2025_v3  ;;  %1996 = vmatprep.subr.msk.bf16.mxu0 %vm465_vm0, %v2028_v4  ;;  %v2032_v16 = vld [vmem:[%s2148_s5 + $0x60] sm:$0xff]   ;;  %v2034_v18 = vld [vmem:[%s2148_s5 + $0x68] sm:$0xff]   ;;  %v2037_v20 = vld [vmem:[%s2148_s5 + $0x70] sm:$0xff]  }
  0x14   : > { %1901 = vmatprep.mubr.msk.bf16.mxu1 %vm416_vm1, %v2154_v6  ;;  %v2039_v21 = vld [vmem:[%s2148_s5 + $0x38] sm:$0xff]   ;;  %v2041_v23 = vld [vmem:[%s2148_s5 + $0x40] sm:$0xff]   ;;  %v2044_v25 = vld [vmem:[%s2148_s5 + $0x10] sm:$0xff]  }
  0x15   : > { %1886 = vmatmul.mubr.msk.bf16.vlgmr.msra.gmra.mxu0 %vm416_vm1, %v2026_v8  ;;  %1902 = vmatmul.mubr.msk.bf16.vlgmr.msra.gmra.mxu1 %vm416_vm1, %v2168_v11  ;;  %v2040_v22 = vld [vmem:[%s2148_s5 + $0x78] sm:$0xff]   ;;  %v2042_v24 = vld [vmem:[%s2148_s5 + $0x80] sm:$0xff]   ;;  %v2047_v29 = vld [vmem:[%s2148_s5 + $0x28] sm:$0xff]  }
  0x16   : > { %1954 = vmatpush3.bf16.msra.mxu0 %v985_v9  ;;  %1918 = vmatpush3.bf16.msra.mxu1 %v648_v12  ;;  %v2043_v26 = vld [vmem:[%s2148_s5] sm:$0xff]   ;;  %v2045_v27 = vld [vmem:[%s2148_s5 + $0x18] sm:$0xff]   ;;  %v2048_v30 = vld [vmem:[%s2148_s5 + $0x30] sm:$0xff]  }
  0x17   : > { %1889 = vmatprep.mubr.msk.bf16.mxu0 %vm416_vm1, %v2029_v13  ;;  %1905 = vmatprep.mubr.msk.bf16.mxu1 %vm416_vm1, %v2176_v14  ;;  %v2046_v28 = vld [vmem:[%s2148_s5 + $0x20] sm:$0xff]   ;;  %v2049_v31 = vld [vmem:[%s2148_s5 + $0x38] sm:$0xff]   ;;  %v2051_v33 = vld [vmem:[%s2148_s5 + $0x48] sm:$0xff]  }
  0x18   : > { %1919 = vmatprep.subr.bf16.mxu1 %v2035_v7  ;;  %1955 = vmatprep.subr.bf16.mxu0 %v2038_v10  ;;  %v2050_v32 = vld [vmem:[%s2148_s5 + $0x40] sm:$0xff]   ;;  %v2052_v34 = vld [vmem:[%s2148_s5 + $0x50] sm:$0xff]   ;;  %v2053_v35 = vld [vmem:[%s2148_s5 + $0x58] sm:$0xff]  }
  0x19   : > { %v2054_v36 = vld [vmem:[%s2148_s5 + $0x60] sm:$0xff]   ;;  %v2055_v37 = vld [vmem:[%s2148_s5 + $0x68] sm:$0xff]   ;;  %v2056_v38 = vld [vmem:[%s2148_s5 + $0x70] sm:$0xff]  }
  0x1a   : > { %1956 = vmatpush3.bf16.msra.mxu0 %v2038_v10  ;;  %1920 = vmatpush3.bf16.msra.mxu1 %v2035_v7  ;;  %v2057_v39 = vld [vmem:[%s2148_s5 + $0x78] sm:$0xff]   ;;  %v2058_v40 = vld [vmem:[%s2148_s5 + $0x80] sm:$0xff]   ;;  %v2059_v41 = vld [vmem:[%s2148_s5 + $0x88] sm:$0xff]  }
  0x1d   : > { %1890 = vmatmul.mubr.msk.bf16.gmra.mxu0 %vm416_vm1, %v2031_v15  ;;  %1906 = vmatmul.mubr.msk.bf16.gmra.mxu1 %vm416_vm1, %v2032_v16 }
  0x1e   : > { %1893 = vmatprep.mubr.msk.bf16.mxu0 %vm416_vm1, %v2033_v17  ;;  %1909 = vmatprep.mubr.msk.bf16.mxu1 %vm416_vm1, %v2034_v18 }
  0x25   : > { %1894 = vmatmul.mubr.msk.bf16.gmra.mxu0 %vm416_vm1, %v2036_v19  ;;  %1910 = vmatmul.mubr.msk.bf16.gmra.mxu1 %vm416_vm1, %v2037_v20 }
  0x26   : > { %1897 = vmatprep.mubr.msk.bf16.mxu0 %vm416_vm1, %v2039_v21  ;;  %1913 = vmatprep.mubr.msk.bf16.mxu1 %vm416_vm1, %v2040_v22 }
  0x2d   : > { %1898 = vmatmul.mubr.msk.bf16.gmra.mxu0 %vm416_vm1, %v2041_v23  ;;  %1914 = vmatmul.mubr.msk.bf16.gmra.mxu1 %vm416_vm1, %v2042_v24 }
  0x2e   : > { %1957 = vmatprep.mubr.msk.bf16.mxu0 %vm416_vm1, %v2044_v25  ;;  %1921 = vmatprep.mubr.msk.bf16.mxu1 %vm416_vm1, %v2043_v26 }
  0x35   : > { %1958 = vmatmul.mubr.msk.bf16.vlgmr.msra.gmra.mxu0 %vm416_vm1, %v2045_v27  ;;  %1922 = vmatmul.mubr.msk.bf16.vlgmr.msra.gmra.mxu1 %vm416_vm1, %v2023_v5 }
  0x36   : > { %1961 = vmatprep.mubr.msk.bf16.mxu0 %vm416_vm1, %v2046_v28  ;;  %1925 = vmatprep.mubr.msk.bf16.mxu1 %vm416_vm1, %v2026_v8  ;;  %v1221_v28 = vld [vmem:[%s2317_s19 + $0x10] sm:$0xff] }
  0x3d   : > { %1962 = vmatmul.mubr.msk.bf16.gmra.mxu0 %vm416_vm1, %v2047_v29  ;;  %1926 = vmatmul.mubr.msk.bf16.gmra.mxu1 %vm416_vm1, %v2029_v13  ;;  %v1222_v29 = vld [vmem:[%s2317_s19 + $0x18] sm:$0xff] }
  0x3e   : > { %1965 = vmatprep.mubr.msk.bf16.mxu0 %vm416_vm1, %v2048_v30  ;;  %1929 = vmatprep.mubr.msk.bf16.mxu1 %vm416_vm1, %v2031_v15 }
  0x45   : > { %1966 = vmatmul.mubr.msk.bf16.gmra.mxu0 %vm416_vm1, %v2049_v31  ;;  %1930 = vmatmul.mubr.msk.bf16.gmra.mxu1 %vm416_vm1, %v2033_v17 }
  0x46   : > { %1969 = vmatprep.mubr.msk.bf16.mxu0 %vm416_vm1, %v2050_v32  ;;  %1933 = vmatprep.mubr.msk.bf16.mxu1 %vm416_vm1, %v2036_v19 }
  0x4d   : > { %1970 = vmatmul.mubr.msk.bf16.gmra.mxu0 %vm416_vm1, %v2051_v33  ;;  %1934 = vmatmul.mubr.msk.bf16.gmra.mxu1 %vm416_vm1, %v2039_v21 }
  0x4e   : > { %1973 = vmatprep.mubr.msk.bf16.mxu0 %vm416_vm1, %v2052_v34  ;;  %1937 = vmatprep.mubr.msk.bf16.mxu1 %vm416_vm1, %v2041_v23 }
  0x55   : > { %1974 = vmatmul.mubr.msk.bf16.gmra.mxu0 %vm416_vm1, %v2053_v35  ;;  %1938 = vmatmul.mubr.msk.bf16.gmra.mxu1 %vm416_vm1, %v2154_v6 }
  0x56   : > { %1977 = vmatprep.mubr.msk.bf16.mxu0 %vm416_vm1, %v2054_v36  ;;  %1941 = vmatprep.mubr.msk.bf16.mxu1 %vm416_vm1, %v2168_v11  ;;  %v1219_v36 = vld [vmem:[%s2317_s19] sm:$0xff] }
  0x5d   : > { %1978 = vmatmul.mubr.msk.bf16.gmra.mxu0 %vm416_vm1, %v2055_v37  ;;  %1942 = vmatmul.mubr.msk.bf16.gmra.mxu1 %vm416_vm1, %v2176_v14  ;;  %v1220_v37 = vld [vmem:[%s2317_s19 + $0x8] sm:$0xff] }
  0x5e   : > { %1981 = vmatprep.mubr.msk.bf16.mxu0 %vm416_vm1, %v2056_v38  ;;  %1945 = vmatprep.mubr.msk.bf16.mxu1 %vm416_vm1, %v2032_v16 }
  0x65   : > { %1982 = vmatmul.mubr.msk.bf16.gmra.mxu0 %vm416_vm1, %v2057_v39  ;;  %1946 = vmatmul.mubr.msk.bf16.gmra.mxu1 %vm416_vm1, %v2034_v18  ;;  %v2312_v18 = vld [vmem:[%s2442_s2] ss:$0 sm:$0xff] }
  0x66   : > { %1985 = vmatprep.mubr.msk.bf16.mxu0 %vm416_vm1, %v2058_v40  ;;  %1949 = vmatprep.mubr.msk.bf16.mxu1 %vm416_vm1, %v2037_v20 }
  0x6d   : > { %1986 = vmatmul.mubr.msk.bf16.gmra.mxu0 %vm416_vm1, %v2059_v41  ;;  %1950 = vmatmul.mubr.msk.bf16.gmra.mxu1 %vm416_vm1, %v2040_v22 }
  0xd5   : > { %v1887_v42 = vpop.f32.mrf.mxu0  ;;  %v2253_v43 = vpop.f32.mrf.mxu1 }
  0xd7   : > { %v503_v44 = vpop.f32.mrf.mxu0  ;;  %v2255_v45 = vpop.f32.mrf.mxu1 }
  0xd9   : > { %v1888_v46 = vpop.f32.mrf.mxu0  ;;  %v2257_v47 = vpop.f32.mrf.mxu1 }
  0xdb   : > { %v506_v48 = vpop.f32.mrf.mxu0  ;;  %v2259_v49 = vpop.f32.mrf.mxu1 }
  0xdd   : > { %v1891_v50 = vpop.f32.mrf.mxu0  ;;  %v2261_v51 = vpop.f32.mrf.mxu1 }
  0xdf   : > { %v519_v52 = vpop.f32.mrf.mxu0  ;;  %v2263_v53 = vpop.f32.mrf.mxu1 }
  0xe1   : > { %v2265_v54 = vpop.f32.mrf.mxu0  ;;  %v2267_v55 = vpop.f32.mrf.mxu1 }
  0xe3   : > { %v2269_v56 = vpop.f32.mrf.mxu0  ;;  %v2271_v57 = vpop.f32.mrf.mxu1 }
  0xe5   : > { %v2273_v58 = vpop.f32.mrf.mxu0  ;;  %v2275_v59 = vpop.f32.mrf.mxu1 }
  0xe7   : > { %v2277_v60 = vpop.f32.mrf.mxu0  ;;  %v2279_v61 = vpop.f32.mrf.mxu1 }
  0xe9   : > { %v2281_v62 = vpop.f32.mrf.mxu0  ;;  %v2283_v63 = vpop.f32.mrf.mxu1 }
  0xeb   : > { %v2285_v0 = vpop.f32.mrf.mxu0  ;;  %v2287_v1 = vpop.f32.mrf.mxu1 }
  0xed   : > { %v2289_v2 = vpop.f32.mrf.mxu0  ;;  %v2292_v3 = vpop.f32.mrf.mxu1 }
  0xef   : > { %v2294_v4 = vpop.f32.mrf.mxu0  ;;  %v2296_v5 = vpop.f32.mrf.mxu1 }
  0xf1   : > { %v2298_v6 = vpop.f32.mrf.mxu0  ;;  %v2300_v7 = vpop.f32.mrf.mxu1 }
  0xf3   : > { %v2302_v8 = vpop.f32.mrf.mxu0  ;;  %v2304_v9 = vpop.f32.mrf.mxu1 }
  0xf5   : > { %v1959_v10 = vpop.f32.mrf.mxu0  ;;  %v1923_v11 = vpop.f32.mrf.mxu1 }
  0xf6   : > { %v693_v12 = vadd.f32 %v1923_v11, %v1887_v42 }
  0xf7   : > { %v1021_v13 = vpop.f32.mrf.mxu0  ;;  %v684_v14 = vpop.f32.mrf.mxu1 }
  0xf8   : > { %v1150_v15 = vadd.f32 %v1959_v10, %v693_v12  ;;  %v685_v16 = vadd.f32 %v684_v14, %v503_v44 }
  0xf9   : > { %v1960_v17 = vpop.f32.mrf.mxu0  ;;  %v1924_v19 = vpop.f32.mrf.mxu1 }
  0xfa   : > { %v1148_v20 = vadd.f32 %v1021_v13, %v685_v16  ;;  %v696_v21 = vadd.f32 %v1924_v19, %v1888_v46  ;;  %v1189_v24 = vadd.f32 %v2312_v18, %v1150_v15 }
  0xfb   : > { %v1024_v22 = vpop.f32.mrf.mxu0  ;;  %v687_v23 = vpop.f32.mrf.mxu1 }
  0xfc   : > { %v1151_v25 = vadd.f32 %v1960_v17, %v696_v21  ;;  %v688_v26 = vadd.f32 %v687_v23, %v506_v48  ;;  %v1187_v31 = vadd.f32 %v2312_v18, %v1148_v20  ;;  %v1253_v39 = vadd.f32 %v1221_v28, %v1189_v24  ;;  %v1226_v24 = vld [vmem:[%s2317_s19 + $0x38] sm:$0xff] }
  0xfd   : > { %v1963_v27 = vpop.f32.mrf.mxu0  ;;  %v1927_v30 = vpop.f32.mrf.mxu1 }
  0xfe   : > { %v1190_v32 = vadd.f32 %v2312_v18, %v1151_v25  ;;  %v1149_v33 = vadd.f32 %v1024_v22, %v688_v26  ;;  %v709_v34 = vadd.f32 %v1927_v30, %v1891_v50  ;;  %v1251_v50 = vadd.f32 %v1219_v36, %v1187_v31  ;;  %v1225_v22 = vld [vmem:[%s2317_s19 + $0x30] sm:$0xff] }
  0xff   : > { %v1037_v35 = vpop.f32.mrf.mxu0  ;;  %v700_v38 = vpop.f32.mrf.mxu1 }
 0x100   : > { %v1254_v40 = vadd.f32 %v1222_v29, %v1190_v32  ;;  %v1188_v41 = vadd.f32 %v2312_v18, %v1149_v33  ;;  %v701_v42 = vadd.f32 %v700_v38, %v519_v52  ;;  %v1154_v46 = vadd.f32 %v1963_v27, %v709_v34  ;;  %v1223_v27 = vld [vmem:[%s2317_s19 + $0x20] sm:$0xff]  ;;  %v1224_v29 = vld [vmem:[%s2317_s19 + $0x28] sm:$0xff] }
 0x101   : > { %v1964_v44 = vpop.f32.mrf.mxu0  ;;  %v1928_v48 = vpop.f32.mrf.mxu1 }
 0x102   : > { %v1740_v10 = vpack.c.bf16 %v1254_v40, %v1253_v39  ;;  %v1252_v11 = vadd.f32 %v1220_v37, %v1188_v41  ;;  %v1152_v12 = vadd.f32 %v1037_v35, %v701_v42  ;;  %v712_v14 = vadd.f32 %v1928_v48, %v2265_v54 }
 0x103   : > { %v1040_v13 = vpop.f32.mrf.mxu0  ;;  %v703_v52 = vpop.f32.mrf.mxu1  ;;  %v1193_v19 = vadd.f32 %v2312_v18, %v1154_v46 }
 0x104   : > { %1812 = vst [vmem:[%s2331_s23 + $0x8] sm:$0xff] %v1740_v10   ;;  %v1735_v15 = vpack.c.bf16 %v1252_v11, %v1251_v50  ;;  %v704_v16 = vadd.f32 %v703_v52, %v2269_v56  ;;  %v1155_v20 = vadd.f32 %v1964_v44, %v712_v14  ;;  %v1191_v23 = vadd.f32 %v2312_v18, %v1152_v12  ;;  %v1229_v50 = vld [vmem:[%s2317_s19 + $0x50] sm:$0xff]  ;;  %v1230_v10 = vld [vmem:[%s2317_s19 + $0x58] sm:$0xff] }
 0x105   : > { %v1967_v17 = vpop.f32.mrf.mxu0  ;;  %v1931_v21 = vpop.f32.mrf.mxu1  ;;  %v1257_v34 = vadd.f32 %v1225_v22, %v1193_v19  ;;  %v1227_v19 = vld [vmem:[%s2317_s19 + $0x40] sm:$0xff] }
 0x106   : > { %1736 = vst [vmem:[%s2331_s23] sm:$0xff] %v1735_v15   ;;  %v1153_v25 = vadd.f32 %v1040_v13, %v704_v16  ;;  %v725_v54 = vadd.f32 %v1931_v21, %v2273_v58  ;;  %v1194_v28 = vadd.f32 %v2312_v18, %v1155_v20  ;;  %v1255_v37 = vadd.f32 %v1223_v27, %v1191_v23  ;;  %v1228_v21 = vld [vmem:[%s2317_s19 + $0x48] sm:$0xff] }
 0x107   : > { %v1053_v26 = vpop.f32.mrf.mxu0  ;;  %v716_v30 = vpop.f32.mrf.mxu1 }
 0x108   : > { %v1192_v56 = vadd.f32 %v2312_v18, %v1153_v25  ;;  %v1158_v31 = vadd.f32 %v1967_v17, %v725_v54  ;;  %v717_v32 = vadd.f32 %v716_v30, %v2277_v60  ;;  %v1258_v35 = vadd.f32 %v1226_v24, %v1194_v28 }
 0x109   : > { %v1968_v33 = vpop.f32.mrf.mxu0  ;;  %v1932_v36 = vpop.f32.mrf.mxu1 }
 0x10a   : > { %v1256_v58 = vadd.f32 %v1224_v29, %v1192_v56  ;;  %v728_v38 = vadd.f32 %v1932_v36, %v2281_v62  ;;  %v1750_v40 = vpack.c.bf16 %v1258_v35, %v1257_v34  ;;  %v1156_v41 = vadd.f32 %v1053_v26, %v717_v32  ;;  %v1233_v34 = vld [vmem:[%s2317_s19 + $0x70] sm:$0xff]  ;;  %v1234_v35 = vld [vmem:[%s2317_s19 + $0x78] sm:$0xff] }
 0x10b   : > { %v1056_v39 = vpop.f32.mrf.mxu0  ;;  %v719_v42 = vpop.f32.mrf.mxu1  ;;  %v1197_v46 = vadd.f32 %v2312_v18, %v1158_v31 }
 0x10c   : > { %v1745_v44 = vpack.c.bf16 %v1256_v58, %v1255_v37  ;;  %v1159_v60 = vadd.f32 %v1968_v33, %v728_v38  ;;  %1814 = vst [vmem:[%s2331_s23 + $0x18] sm:$0xff] %v1750_v40   ;;  %v720_v11 = vadd.f32 %v719_v42, %v2285_v0  ;;  %v1195_v52 = vadd.f32 %v2312_v18, %v1156_v41  ;;  %v1231_v40 = vld [vmem:[%s2317_s19 + $0x60] sm:$0xff]  ;;  %v1232_v41 = vld [vmem:[%s2317_s19 + $0x68] sm:$0xff] }
 0x10d   : > { %v1971_v48 = vpop.f32.mrf.mxu0  ;;  %v1935_v12 = vpop.f32.mrf.mxu1  ;;  %v1261_v17 = vadd.f32 %v1229_v50, %v1197_v46 }
 0x10e   : > { %1813 = vst [vmem:[%s2331_s23 + $0x10] sm:$0xff] %v1745_v44   ;;  %v1198_v62 = vadd.f32 %v2312_v18, %v1159_v60  ;;  %v741_v13 = vadd.f32 %v1935_v12, %v2289_v2  ;;  %v1157_v15 = vadd.f32 %v1056_v39, %v720_v11  ;;  %v1259_v28 = vadd.f32 %v1227_v19, %v1195_v52 }
 0x10f   : > { %v1069_v14 = vpop.f32.mrf.mxu0  ;;  %v732_v16 = vpop.f32.mrf.mxu1 }
 0x110   : > { %v1262_v20 = vadd.f32 %v1230_v10, %v1198_v62  ;;  %v1162_v22 = vadd.f32 %v1971_v48, %v741_v13  ;;  %v733_v23 = vadd.f32 %v732_v16, %v2294_v4  ;;  %v1196_v24 = vadd.f32 %v2312_v18, %v1157_v15 }
 0x111   : > { %v1972_v0 = vpop.f32.mrf.mxu0  ;;  %v1936_v25 = vpop.f32.mrf.mxu1 }
 0x112   : > { %v1760_v2 = vpack.c.bf16 %v1262_v20, %v1261_v17  ;;  %v1160_v54 = vadd.f32 %v1069_v14, %v733_v23  ;;  %v744_v26 = vadd.f32 %v1936_v25, %v2298_v6  ;;  %v1260_v29 = vadd.f32 %v1228_v21, %v1196_v24  ;;  %v1237_v21 = vld [vmem:[%s2317_s19 + $0x90] sm:$0xff]  ;;  %v1238_v23 = vld [vmem:[%s2317_s19 + $0x98] sm:$0xff]  ;;  %v1235_v25 = vld [vmem:[%s2317_s19 + $0x80] sm:$0xff] }
 0x113   : > { %v1072_v27 = vpop.f32.mrf.mxu0  ;;  %v735_v30 = vpop.f32.mrf.mxu1  ;;  %v1201_v4 = vadd.f32 %v2312_v18, %v1162_v22 }
 0x114   : > { %1816 = vst [vmem:[%s2331_s23 + $0x28] sm:$0xff] %v1760_v2   ;;  %v1163_v56 = vadd.f32 %v1972_v0, %v744_v26  ;;  %v736_v31 = vadd.f32 %v735_v30, %v2302_v8  ;;  %v1755_v33 = vpack.c.bf16 %v1260_v29, %v1259_v28  ;;  %v1199_v6 = vadd.f32 %v2312_v18, %v1160_v54  ;;  %v1236_v54 = vld [vmem:[%s2317_s19 + $0x88] sm:$0xff] }
 0x115   : > { %v1975_v32 = vpop.f32.mrf.mxu0  ;;  %v1939_v36 = vpop.f32.mrf.mxu1  ;;  %v1265_v44 = vadd.f32 %v1233_v34, %v1201_v4 }
 0x116   : > { %v1202_v37 = vadd.f32 %v2312_v18, %v1163_v56  ;;  %v1161_v58 = vadd.f32 %v1072_v27, %v736_v31  ;;  %v757_v38 = vadd.f32 %v1939_v36, %v2253_v43  ;;  %1815 = vst [vmem:[%s2331_s23 + $0x20] sm:$0xff] %v1755_v33   ;;  %v1263_v11 = vadd.f32 %v1231_v40, %v1199_v6 }
 0x117   : > { %v1085_v39 = vpop.f32.mrf.mxu0  ;;  %v748_v42 = vpop.f32.mrf.mxu1 }
 0x118   : > { %v1266_v8 = vadd.f32 %v1234_v35, %v1202_v37  ;;  %v1200_v46 = vadd.f32 %v2312_v18, %v1161_v58  ;;  %v749_v60 = vadd.f32 %v748_v42, %v2255_v45  ;;  %v1166_v50 = vadd.f32 %v1975_v32, %v757_v38  ;;  %v1241_v38 = vld [vmem:[%s2317_s19 + $0xb0] sm:$0xff] }
 0x119   : > { %v1976_v48 = vpop.f32.mrf.mxu0  ;;  %v1940_v10 = vpop.f32.mrf.mxu1 }
 0x11a   : > { %v1770_v12 = vpack.c.bf16 %v1266_v8, %v1265_v44  ;;  %v1264_v43 = vadd.f32 %v1232_v41, %v1200_v46  ;;  %v1164_v62 = vadd.f32 %v1085_v39, %v749_v60  ;;  %v760_v14 = vadd.f32 %v1940_v10, %v2257_v47  ;;  %v1242_v39 = vld [vmem:[%s2317_s19 + $0xb8] sm:$0xff] }
 0x11b   : > { %v1088_v13 = vpop.f32.mrf.mxu0  ;;  %v751_v52 = vpop.f32.mrf.mxu1  ;;  %v1205_v17 = vadd.f32 %v2312_v18, %v1166_v50  ;;  %v1239_v50 = vld [vmem:[%s2317_s19 + $0xa0] sm:$0xff] }
 0x11c   : > { %1818 = vst [vmem:[%s2331_s23 + $0x38] sm:$0xff] %v1770_v12   ;;  %v1765_v15 = vpack.c.bf16 %v1264_v43, %v1263_v11  ;;  %v752_v45 = vadd.f32 %v751_v52, %v2259_v49  ;;  %v1167_v19 = vadd.f32 %v1976_v48, %v760_v14  ;;  %v1203_v22 = vadd.f32 %v2312_v18, %v1164_v62  ;;  %v1240_v11 = vld [vmem:[%s2317_s19 + $0xa8] sm:$0xff] }
 0x11d   : > { %v1979_v16 = vpop.f32.mrf.mxu0  ;;  %v1943_v20 = vpop.f32.mrf.mxu1  ;;  %v1269_v30 = vadd.f32 %v1237_v21, %v1205_v17 }
 0x11e   : > { %1817 = vst [vmem:[%s2331_s23 + $0x30] sm:$0xff] %v1765_v15   ;;  %v1165_v0 = vadd.f32 %v1088_v13, %v752_v45  ;;  %v773_v47 = vadd.f32 %v1943_v20, %v2261_v51  ;;  %v1206_v2 = vadd.f32 %v2312_v18, %v1167_v19  ;;  %v1267_v31 = vadd.f32 %v1235_v25, %v1203_v22 }
 0x11f   : > { %v1101_v24 = vpop.f32.mrf.mxu0  ;;  %v764_v26 = vpop.f32.mrf.mxu1 }
 0x120   : > { %v1204_v49 = vadd.f32 %v2312_v18, %v1165_v0  ;;  %v1170_v27 = vadd.f32 %v1979_v16, %v773_v47  ;;  %v765_v28 = vadd.f32 %v764_v26, %v2263_v53  ;;  %v1270_v4 = vadd.f32 %v1238_v23, %v1206_v2  ;;  %v1245_v23 = vld [vmem:[%s2317_s19 + $0xd0] sm:$0xff]  ;;  %v1246_v0 = vld [vmem:[%s2317_s19 + $0xd8] sm:$0xff]  ;;  %v1243_v26 = vld [vmem:[%s2317_s19 + $0xc0] sm:$0xff] }
 0x121   : > { %v1980_v29 = vpop.f32.mrf.mxu0  ;;  %v1944_v56 = vpop.f32.mrf.mxu1 }
 0x122   : > { %v1268_v51 = vadd.f32 %v1236_v54, %v1204_v49  ;;  %v776_v32 = vadd.f32 %v1944_v56, %v2267_v55  ;;  %v1780_v34 = vpack.c.bf16 %v1270_v4, %v1269_v30  ;;  %v1168_v35 = vadd.f32 %v1101_v24, %v765_v28  ;;  %v1244_v49 = vld [vmem:[%s2317_s19 + $0xc8] sm:$0xff] }
 0x123   : > { %v1104_v33 = vpop.f32.mrf.mxu0  ;;  %v767_v36 = vpop.f32.mrf.mxu1  ;;  %v1209_v37 = vadd.f32 %v2312_v18, %v1170_v27 }
 0x124   : > { %v1775_v6 = vpack.c.bf16 %v1268_v51, %v1267_v31  ;;  %v1171_v53 = vadd.f32 %v1980_v29, %v776_v32  ;;  %1820 = vst [vmem:[%s2331_s23 + $0x48] sm:$0xff] %v1780_v34   ;;  %v768_v40 = vadd.f32 %v767_v36, %v2271_v57  ;;  %v1207_v8 = vadd.f32 %v2312_v18, %v1168_v35 }
 0x125   : > { %v1983_v58 = vpop.f32.mrf.mxu0  ;;  %v1947_v41 = vpop.f32.mrf.mxu1  ;;  %v1273_v48 = vadd.f32 %v1241_v38, %v1209_v37 }
 0x126   : > { %1819 = vst [vmem:[%s2331_s23 + $0x40] sm:$0xff] %v1775_v6   ;;  %v1210_v55 = vadd.f32 %v2312_v18, %v1171_v53  ;;  %v789_v42 = vadd.f32 %v1947_v41, %v2275_v59  ;;  %v1169_v46 = vadd.f32 %v1104_v33, %v768_v40  ;;  %v1271_v45 = vadd.f32 %v1239_v50, %v1207_v8  ;;  %v1247_v41 = vld [vmem:[%s2317_s19 + $0xe0] sm:$0xff] }
 0x127   : > { %v1117_v44 = vpop.f32.mrf.mxu0  ;;  %v780_v60 = vpop.f32.mrf.mxu1 }
 0x128   : > { %v1274_v10 = vadd.f32 %v1242_v39, %v1210_v55  ;;  %v1174_v12 = vadd.f32 %v1983_v58, %v789_v42  ;;  %v781_v43 = vadd.f32 %v780_v60, %v2279_v61  ;;  %v1208_v62 = vadd.f32 %v2312_v18, %v1169_v46  ;;  %v1249_v58 = vld [vmem:[%s2317_s19 + $0xf0] sm:$0xff]  ;;  %v1250_v39 = vld [vmem:[%s2317_s19 + $0xf8] sm:$0xff]  ;;  %v1248_v55 = vld [vmem:[%s2317_s19 + $0xe8] sm:$0xff] }
 0x129   : > { %v1984_v57 = vpop.f32.mrf.mxu0  ;;  %v1948_v13 = vpop.f32.mrf.mxu1 }
 0x12a   : > { %v1790_v59 = vpack.c.bf16 %v1274_v10, %v1273_v48  ;;  %v1172_v14 = vadd.f32 %v1117_v44, %v781_v43  ;;  %v792_v52 = vadd.f32 %v1948_v13, %v2283_v63  ;;  %v1272_v16 = vadd.f32 %v1240_v11, %v1208_v62 }
 0x12b   : > { %v1120_v15 = vpop.f32.mrf.mxu0  ;;  %v783_v17 = vpop.f32.mrf.mxu1  ;;  %v1213_v61 = vadd.f32 %v2312_v18, %v1174_v12 }
 0x12c   : > { %1822 = vst [vmem:[%s2331_s23 + $0x58] sm:$0xff] %v1790_v59   ;;  %v1175_v19 = vadd.f32 %v1984_v57, %v792_v52  ;;  %v784_v20 = vadd.f32 %v783_v17, %v2287_v1  ;;  %v1785_v22 = vpack.c.bf16 %v1272_v16, %v1271_v45  ;;  %v1211_v63 = vadd.f32 %v2312_v18, %v1172_v14 }
 0x12d   : > { %v1987_v21 = vpop.f32.mrf.mxu0  ;;  %v1951_v47 = vpop.f32.mrf.mxu1  ;;  %v1277_v28 = vadd.f32 %v1245_v23, %v1213_v61 }
 0x12e   : > { %v1214_v24 = vadd.f32 %v2312_v18, %v1175_v19  ;;  %v1173_v25 = vadd.f32 %v1120_v15, %v784_v20  ;;  %v805_v2 = vadd.f32 %v1951_v47, %v2292_v3  ;;  %1821 = vst [vmem:[%s2331_s23 + $0x50] sm:$0xff] %v1785_v22   ;;  %v1275_v51 = vadd.f32 %v1243_v26, %v1211_v63 }
 0x12f   : > { %v1133_v54 = vpop.f32.mrf.mxu0  ;;  %v796_v27 = vpop.f32.mrf.mxu1 }
 0x130   : > { %v1278_v1 = vadd.f32 %v1246_v0, %v1214_v24  ;;  %v1212_v29 = vadd.f32 %v2312_v18, %v1173_v25  ;;  %v797_v30 = vadd.f32 %v796_v27, %v2296_v5  ;;  %v1178_v4 = vadd.f32 %v1987_v21, %v805_v2 }
 0x131   : > { %v1952_v56 = vpop.f32.mrf.mxu1  ;;  %v1988_v31 = vpop.f32.mrf.mxu0 }
 0x132   : > { %v1800_v3 = vpack.c.bf16 %v1278_v1, %v1277_v28  ;;  %v1276_v32 = vadd.f32 %v1244_v49, %v1212_v29  ;;  %v1176_v33 = vadd.f32 %v1133_v54, %v797_v30  ;;  %v808_v34 = vadd.f32 %v1952_v56, %v2300_v7 }
 0x133   : > { %v799_v35 = vpop.f32.mrf.mxu1  ;;  %v1217_v5 = vadd.f32 %v2312_v18, %v1178_v4  ;;  %v1136_v53 = vpop.f32.mrf.mxu0 }
 0x134   : > { %1824 = vst [vmem:[%s2331_s23 + $0x68] sm:$0xff] %v1800_v3   ;;  %v1795_v36 = vpack.c.bf16 %v1276_v32, %v1275_v51  ;;  %v800_v6 = vadd.f32 %v799_v35, %v2304_v9  ;;  %v1179_v37 = vadd.f32 %v1988_v31, %v808_v34  ;;  %v1215_v38 = vadd.f32 %v2312_v18, %v1176_v33 }
 0x135   : > { %v1281_v44 = vadd.f32 %v1249_v58, %v1217_v5 }
 0x136   : > { %1823 = vst [vmem:[%s2331_s23 + $0x60] sm:$0xff] %v1795_v36   ;;  %v1177_v40 = vadd.f32 %v1136_v53, %v800_v6  ;;  %v1218_v7 = vadd.f32 %v2312_v18, %v1179_v37  ;;  %v1279_v8 = vadd.f32 %v1247_v41, %v1215_v38 }
 0x138   : > { %v1216_v42 = vadd.f32 %v2312_v18, %v1177_v40  ;;  %v1282_v9 = vadd.f32 %v1250_v39, %v1218_v7 }
 0x13a   : > { %v1280_v46 = vadd.f32 %v1248_v55, %v1216_v42  ;;  %v1810_v60 = vpack.c.bf16 %v1282_v9, %v1281_v44 }
 0x13c   : > { %v1805_v48 = vpack.c.bf16 %v1280_v46, %v1279_v8  ;;  %1826 = vst [vmem:[%s2331_s23 + $0x78] sm:$0xff] %v1810_v60  }
 0x13e   : > { %1825 = vst [vmem:[%s2331_s23 + $0x70] sm:$0xff] %v1805_v48  }
 0x13f PF: > { %s14_s17 = sadd.s32 1, %s2082_s17   ;;  %s2445_s15 = smov %s2078_s16 }
 0x140   : > { %p11_p6 = scmp.ge.s32.totalorder %s14_s17, 4   ;;  %s2446_s16 = smov %s2448_s18 }
 0x142   :  { %13 = sbr.rel (!%p11_p6) target bundleno = 2 (0x2), region = 77 }

// kernel: discriminator_forward.20
= control target key start
LH: loop header
LB: loop body
LE: loop exit
PB: predicated region body
PF: predicated region fallthrough
CT: control target
= control target key end

     0   :  { %s807_s12 = smov 0   ;;  %s809_s13 = smov 0   ;;  %s869_s0 = inlined_call_operand.vmem [shape: bf16[128,80], index: 0, kind: input, shape index: {}]   ;;  %s870_s1 = inlined_call_operand.vmem [shape: bf16[80,128], index: 1, kind: input, shape index: {}]   ;;  %s871_s2 = inlined_call_operand.vmem [shape: f32[1,128], index: 2, kind: input, shape index: {}]   ;;  %s872_s3 = inlined_call_operand.vmem [shape: bf16[128,128], index: 3, kind: output, shape index: {}]  }
   0x1   :  { %s811_s14 = smov 0  }
   0x2 LB: > { %s32_s15 = sadd.s32 1, %s781_s13  ;;  %p633_p0 = scmp.ge.s32.totalorder %s785_s14, 1  ;;  %s785_s14 = sphi %s811_s14, %s13_s14   ;;  %s781_s13 = sphi %s809_s13, %s874_s13   ;;  %s777_s12 = sphi %s807_s12, %s873_s12  }
   0x3   : > { %p34_p1 = scmp.ge.s32.totalorder %s32_s15, 2  ;;  %p188_p2 = scmp.lt.s32.totalorder %s785_s14, 3 }
   0x5   : > { %s876_s15 = smov (%p34_p1, %s32_s15), 0  ;;  %p189_p3 = pnand %p633_p0, %p188_p2 }
   0x6   : > { %s634_s18 = sshll.u32 (!%p189_p3), %s777_s12, 3 }
   0x7   : > { %192 = sbr.rel (%p189_p3) target bundleno = 239 (0xef), region = 32  ;;  %p230_p4 = scmp.lt.s32.totalorder (!%p189_p3), %s634_s18, 15 }
   0xc   : > { %v754_v0 = vld [vmem:[%s870_s1 + $0x20] sm:$0xff]   ;;  %v755_v1 = vld [vmem:[%s870_s1 + $0x18] sm:$0xff]   ;;  %s878_s18 = smov (!%p230_p4, %s634_s18), 15  ;;  %v756_v2 = vld [vmem:[%s870_s1 + $0x10] sm:$0xff]   ;;  %vm348_vm0 = vcmask 654336  }
   0xd   : > { %702 = vmatprep.subr.bf16.mxu0 %v754_v0  ;;  %720 = vmatprep.subr.bf16.mxu1 %v754_v0  ;;  %s635_s23 = sshll.u32 %s878_s18, 2  ;;  %v757_v3 = vld [vmem:[%s870_s1 + $0x8] sm:$0xff]   ;;  %v758_v6 = vld [vmem:[%s870_s1] sm:$0xff]  }
   0xe   : > { %703 = vmatpush3.bf16.msra.mxu0 %v754_v0  ;;  %725 = vmatpush3.bf16.msra.mxu1 %v754_v0  ;;  %s236_s28 = scalar_lea.vmem %s869_s0, %s635_s23  ;;  %v651_v9 = vld [vmem:[%s871_s2] ss:$0 sm:$0xff]  ;;  %s257_s8 = scalar_lea.vmem %s872_s3, %s635_s23 }
   0xf   : > { %704 = vmatprep.subr.bf16.mxu0 %v755_v1  ;;  %721 = vmatprep.subr.bf16.mxu1 %v755_v1  ;;  %v759_v4 = vld [vmem:[%s236_s28] sm:$0xff]   ;;  %v760_v5 = vld [vmem:[%s236_s28 + $0x10] sm:$0xff]   ;;  %v761_v7 = vld [vmem:[%s236_s28 + $0x8] sm:$0xff]  }
  0x10   : > { %712 = vmatprep.mubr.msk.bf16.mxu0 %vm348_vm0, %v759_v4  ;;  %716 = vmatprep.mubr.msk.bf16.mxu1 %vm348_vm0, %v760_v5  ;;  %v762_v8 = vld [vmem:[%s236_s28 + $0x18] sm:$0xff]  }
  0x12   : > { %705 = vmatpush3.bf16.msra.mxu0 %v755_v1  ;;  %726 = vmatpush3.bf16.msra.mxu1 %v755_v1 }
  0x13   : > { %706 = vmatprep.subr.bf16.mxu0 %v756_v2  ;;  %722 = vmatprep.subr.bf16.mxu1 %v756_v2 }
  0x16   : > { %707 = vmatpush3.bf16.msra.mxu0 %v756_v2  ;;  %727 = vmatpush3.bf16.msra.mxu1 %v756_v2 }
  0x17   : > { %708 = vmatprep.subr.bf16.mxu0 %v757_v3  ;;  %723 = vmatprep.subr.bf16.mxu1 %v757_v3 }
  0x1a   : > { %709 = vmatpush3.bf16.msra.mxu0 %v757_v3  ;;  %728 = vmatpush3.bf16.msra.mxu1 %v757_v3 }
  0x1b   : > { %710 = vmatprep.subr.bf16.mxu0 %v758_v6  ;;  %724 = vmatprep.subr.bf16.mxu1 %v758_v6 }
  0x1e   : > { %711 = vmatpush3.bf16.msra.mxu0 %v758_v6  ;;  %729 = vmatpush3.bf16.msra.mxu1 %v758_v6 }
  0x21   : > { %713 = vmatmul.mubr.msk.bf16.vlgmr.msra.gmra.mxu0 %vm348_vm0, %v761_v7  ;;  %717 = vmatmul.mubr.msk.bf16.vlgmr.msra.gmra.mxu1 %vm348_vm0, %v762_v8 }
  0xe1   : > { %v714_v10 = vpop.f32.mrf.mxu0  ;;  %v718_v11 = vpop.f32.mrf.mxu1 }
  0xe2   : > { %v462_v12 = vadd.f32 %v714_v10, %v651_v9  ;;  %v466_v13 = vadd.f32 %v718_v11, %v651_v9 }
  0xe3   : > { %v395_v14 = vpop.f32.mrf.mxu0  ;;  %v411_v15 = vpop.f32.mrf.mxu1 }
  0xe4   : > { %v460_v16 = vadd.f32 %v651_v9, %v395_v14  ;;  %v464_v17 = vadd.f32 %v651_v9, %v411_v15  ;;  %v470_v22 = vmax.f32 %v462_v12, 0.0  ;;  %v474_v23 = vmax.f32 %v466_v13, 0.0 }
  0xe5   : > { %v715_v18 = vpop.f32.mrf.mxu0  ;;  %v719_v19 = vpop.f32.mrf.mxu1 }
  0xe6   : > { %v463_v20 = vadd.f32 %v715_v18, %v651_v9  ;;  %v467_v21 = vadd.f32 %v719_v19, %v651_v9  ;;  %v468_v30 = vmax.f32 %v460_v16, 0.0  ;;  %v472_v31 = vmax.f32 %v464_v17, 0.0 }
  0xe7   : > { %v398_v24 = vpop.f32.mrf.mxu0  ;;  %v414_v25 = vpop.f32.mrf.mxu1 }
  0xe8   : > { %v471_v26 = vmax.f32 %v463_v20, 0.0  ;;  %v475_v27 = vmax.f32 %v467_v21, 0.0  ;;  %v461_v28 = vadd.f32 %v651_v9, %v398_v24  ;;  %v465_v29 = vadd.f32 %v651_v9, %v414_v25 }
  0xea   : > { %v678_v32 = vpack.c.bf16 %v471_v26, %v470_v22  ;;  %v688_v33 = vpack.c.bf16 %v475_v27, %v474_v23  ;;  %v469_v34 = vmax.f32 %v461_v28, 0.0  ;;  %v473_v35 = vmax.f32 %v465_v29, 0.0 }
  0xec   : > { %690 = vst [vmem:[%s257_s8 + $0x8] sm:$0xff] %v678_v32   ;;  %692 = vst [vmem:[%s257_s8 + $0x18] sm:$0xff] %v688_v33   ;;  %v673_v36 = vpack.c.bf16 %v469_v34, %v468_v30  ;;  %v683_v37 = vpack.c.bf16 %v473_v35, %v472_v31 }
  0xee   : > { %674 = vst [vmem:[%s257_s8] sm:$0xff] %v673_v36   ;;  %691 = vst [vmem:[%s257_s8 + $0x10] sm:$0xff] %v683_v37  }
  0xef PF: > { %s13_s14 = sadd.s32 1, %s785_s14   ;;  %s873_s12 = smov %s781_s13 }
  0xf0   : > { %p10_p5 = scmp.ge.s32.totalorder %s13_s14, 4   ;;  %s874_s13 = smov %s876_s15 }
  0xf2   :  { %12 = sbr.rel (!%p10_p5) target bundleno = 2 (0x2), region = 76 }

// kernel: discriminator_forward.21
= control target key start
LH: loop header
LB: loop body
LE: loop exit
PB: predicated region body
PF: predicated region fallthrough
CT: control target
= control target key end

     0   :  { %s1113_s15 = smov 0   ;;  %s1115_s16 = smov 0   ;;  %s1224_s0 = inlined_call_operand.vmem [shape: bf16[160,48], index: 0, kind: input, shape index: {}]   ;;  %s1225_s1 = inlined_call_operand.vmem [shape: bf16[3,48,128], index: 1, kind: input, shape index: {}]   ;;  %s1226_s2 = inlined_call_operand.vmem [shape: f32[1,128], index: 2, kind: input, shape index: {}]   ;;  %s1227_s3 = inlined_call_operand.vmem [shape: f32[128,128], index: 3, kind: input, shape index: {}]   ;;  %s1228_s4 = inlined_call_operand.vmem [shape: bf16[128,128], index: 4, kind: output, shape index: {}]  }
   0x1   :  { %s1117_s17 = smov 0  }
   0x2 LB: > { %s26_s18 = sadd.s32 1, %s1082_s16  ;;  %p857_p0 = scmp.ge.s32.totalorder %s1086_s17, 1  ;;  %s1086_s17 = sphi %s1117_s17, %s14_s17   ;;  %s1082_s16 = sphi %s1115_s16, %s1230_s16   ;;  %s1078_s15 = sphi %s1113_s15, %s1229_s15  }
   0x3   : > { %p28_p1 = scmp.ge.s32.totalorder %s26_s18, 2  ;;  %p210_p2 = scmp.lt.s32.totalorder %s1086_s17, 3 }
   0x5   : > { %s1232_s18 = smov (%p28_p1, %s26_s18), 0  ;;  %p211_p3 = pnand %p857_p0, %p210_p2 }
   0x6   : > { %s254_s21 = smul.u32 (!%p211_p3), 10, %s1078_s15  ;;  %s859_s20 = sshll.u32 (!%p211_p3), %s1078_s15, 3 }
   0x7   : > { %214 = sbr.rel (%p211_p3) target bundleno = 249 (0xf9), region = 36  ;;  %p268_p5 = scmp.lt.s32.totalorder (!%p211_p3), %s859_s20, 15 }
   0x8   : > { %p255_p4 = scmp.lt.s32.totalorder (!%p211_p3), %s254_s21, 19 }
   0xc   : > { %v1043_v0 = vld [vmem:[%s1225_s1 + $0x28] sm:$0xff]   ;;  %v1044_v1 = vld [vmem:[%s1225_s1 + $0x10] sm:$0xff]   ;;  %v1045_v2 = vld [vmem:[%s1225_s1 + $0x20] sm:$0xff]   ;;  %s1234_s21 = smov (!%p255_p4, %s254_s21), 19  ;;  %vm346_vm0 = vcmask 392192   ;;  %s1236_s20 = smov (!%p268_p5, %s859_s20), 15 }
   0xd   : > { %971 = vmatprep.subr.bf16.mxu0 %v1043_v0  ;;  %985 = vmatprep.subr.bf16.mxu1 %v1044_v1  ;;  %v1046_v3 = vld [vmem:[%s1225_s1 + $0x8] sm:$0xff]   ;;  %v1047_v4 = vld [vmem:[%s1225_s1 + $0x18] sm:$0xff]   ;;  %v1048_v5 = vld [vmem:[%s1225_s1] sm:$0xff]   ;;  %s858_s6 = sshll.u32 %s1234_s21, 2  ;;  %s860_s21 = sshll.u32 %s1236_s20, 3 }
   0xe   : > { %972 = vmatpush3.bf16.msra.mxu0 %v1043_v0  ;;  %986 = vmatpush3.bf16.msra.mxu1 %v1044_v1  ;;  %s1155_s9 = scalar_lea.vmem %s1224_s0, %s858_s6  ;;  %v1053_v12 = vld [vmem:[%s1225_s1 + $0x40] sm:$0xff]   ;;  %v1054_v18 = vld [vmem:[%s1225_s1 + $0x38] sm:$0xff]   ;;  %v1059_v23 = vld [vmem:[%s1225_s1 + $0x30] sm:$0xff]   ;;  %s1201_s25 = scalar_lea.vmem %s1227_s3, %s860_s21 }
   0xf   : > { %973 = vmatprep.subr.bf16.mxu0 %v1045_v2  ;;  %987 = vmatprep.subr.bf16.mxu1 %v1046_v3  ;;  %v287_v6 = vld [vmem:[%s1155_s9 + $0x4] sm:$0xf]  ;;  %v288_v7 = vld [vmem:[%s1155_s9 + $0x8] sm:$0xf]  ;;  %v289_v8 = vld [vmem:[%s1155_s9 + $0xc] sm:$0xf] }
  0x10   : > { %v290_v9 = vld [vmem:[%s1155_s9 + $0x10] sm:$0xf]  ;;  %v869_v10 = vcombine.low %v287_v6, %v288_v7  ;;  %v286_v11 = vld [vmem:[%s1155_s9] sm:$0xf]  ;;  %v291_v15 = vld [vmem:[%s1155_s9 + $0x14] sm:$0xf]  ;;  %v881_v17 = vcombine.low %v288_v7, %v289_v8 }
  0x11   : > { %v870_v13 = vcombine.low %v289_v8, %v290_v9  ;;  %v880_v14 = vcombine.low %v286_v11, %v287_v6  ;;  %v292_v16 = vld [vmem:[%s1155_s9 + $0x18] sm:$0xf]  ;;  %v882_v20 = vcombine.low %v290_v9, %v291_v15  ;;  %v293_v21 = vld [vmem:[%s1155_s9 + $0x1c] sm:$0xf]  ;;  %v300_v22 = vld [vmem:[%s1155_s9 + $0x20] sm:$0xf] }
  0x12   : > { %974 = vmatpush3.bf16.msra.mxu0 %v1045_v2  ;;  %988 = vmatpush3.bf16.msra.mxu1 %v1046_v3  ;;  %v871_v19 = vcombine.low %v291_v15, %v292_v16  ;;  %v872_v24 = vcombine.low %v293_v21, %v300_v22  ;;  %v883_v25 = vcombine.low %v292_v16, %v293_v21  ;;  %v1060_v26 = vld [vmem:[%s1155_s9 + $0x8] sm:$0xff]   ;;  %v1061_v27 = vld [vmem:[%s1155_s9 + $0x18] sm:$0xff]   ;;  %v1062_v28 = vld [vmem:[%s1155_s9 + $0x10] sm:$0xff]   ;;  %s862_s26 = sshll.u32 %s1236_s20, 2 }
  0x13   : > { %975 = vmatprep.subr.bf16.mxu0 %v1047_v4  ;;  %989 = vmatprep.subr.bf16.mxu1 %v1048_v5  ;;  %v1063_v29 = vld [vmem:[%s1155_s9 + $0x20] sm:$0xff]   ;;  %v680_v3 = vld [vmem:[%s1201_s25 + $0x10] sm:$0xff]  ;;  %v685_v11 = vld [vmem:[%s1201_s25 + $0x38] sm:$0xff]  ;;  %s283_s29 = scalar_lea.vmem %s1228_s4, %s862_s26 }
  0x14   : > { %977 = vmatprep.mubr.msk.bf16.mxu0 %vm346_vm0, %v869_v10  ;;  %991 = vmatprep.mubr.msk.bf16.mxu1 %vm346_vm0, %v880_v14  ;;  %v908_v53 = vld [vmem:[%s1226_s2] ss:$0 sm:$0xff]  ;;  %v684_v8 = vld [vmem:[%s1201_s25 + $0x30] sm:$0xff] }
  0x15   : > { %v678_v14 = vld [vmem:[%s1201_s25] sm:$0xff] }
  0x16   : > { %976 = vmatpush3.bf16.msra.mxu0 %v1047_v4  ;;  %990 = vmatpush3.bf16.msra.mxu1 %v1048_v5  ;;  %v681_v5 = vld [vmem:[%s1201_s25 + $0x18] sm:$0xff] }
  0x17   : > { %999 = vmatprep.subr.bf16.mxu0 %v1053_v12  ;;  %1013 = vmatprep.subr.bf16.mxu1 %v1053_v12 }
  0x19   : > { %978 = vmatmul.mubr.msk.bf16.vlgmr.msra.gmra.mxu0 %vm346_vm0, %v870_v13  ;;  %992 = vmatmul.mubr.msk.bf16.vlgmr.msra.gmra.mxu1 %vm346_vm0, %v881_v17  ;;  %v679_v17 = vld [vmem:[%s1201_s25 + $0x8] sm:$0xff] }
  0x1a   : > { %1000 = vmatpush3.bf16.msra.mxu0 %v1053_v12  ;;  %1016 = vmatpush3.bf16.msra.mxu1 %v1053_v12 }
  0x1b   : > { %1001 = vmatprep.subr.bf16.mxu0 %v1054_v18  ;;  %1014 = vmatprep.subr.bf16.mxu1 %v1054_v18 }
  0x1c   : > { %981 = vmatprep.mubr.msk.bf16.mxu0 %vm346_vm0, %v871_v19  ;;  %995 = vmatprep.mubr.msk.bf16.mxu1 %vm346_vm0, %v882_v20  ;;  %v682_v20 = vld [vmem:[%s1201_s25 + $0x20] sm:$0xff] }
  0x1e   : > { %1002 = vmatpush3.bf16.msra.mxu0 %v1054_v18  ;;  %1017 = vmatpush3.bf16.msra.mxu1 %v1054_v18 }
  0x1f   : > { %1003 = vmatprep.subr.bf16.mxu0 %v1059_v23  ;;  %1015 = vmatprep.subr.bf16.mxu1 %v1059_v23 }
  0x21   : > { %982 = vmatmul.mubr.msk.bf16.gmra.mxu0 %vm346_vm0, %v872_v24  ;;  %996 = vmatmul.mubr.msk.bf16.gmra.mxu1 %vm346_vm0, %v883_v25 }
  0x22   : > { %1004 = vmatpush3.bf16.msra.mxu0 %v1059_v23  ;;  %1018 = vmatpush3.bf16.msra.mxu1 %v1059_v23  ;;  %v683_v23 = vld [vmem:[%s1201_s25 + $0x28] sm:$0xff] }
  0x23   : > { %1005 = vmatprep.mubr.msk.bf16.mxu0 %vm346_vm0, %v1060_v26  ;;  %1009 = vmatprep.mubr.msk.bf16.mxu1 %vm346_vm0, %v1061_v27 }
  0x29   : > { %1006 = vmatmul.mubr.msk.bf16.vlgmr.msra.gmra.mxu0 %vm346_vm0, %v1062_v28  ;;  %1010 = vmatmul.mubr.msk.bf16.vlgmr.msra.gmra.mxu1 %vm346_vm0, %v1063_v29 }
  0xd9   : > { %v979_v30 = vpop.f32.mrf.mxu0  ;;  %v993_v31 = vpop.f32.mrf.mxu1 }
  0xda   : > { %v503_v45 = vadd.f32 %v993_v31, %v979_v30 }
  0xdb   : > { %v393_v32 = vpop.f32.mrf.mxu0  ;;  %v494_v33 = vpop.f32.mrf.mxu1 }
  0xdc   : > { %v495_v49 = vadd.f32 %v494_v33, %v393_v32 }
  0xdd   : > { %v980_v34 = vpop.f32.mrf.mxu0  ;;  %v994_v35 = vpop.f32.mrf.mxu1 }
  0xde   : > { %v506_v56 = vadd.f32 %v994_v35, %v980_v34 }
  0xdf   : > { %v396_v36 = vpop.f32.mrf.mxu0  ;;  %v497_v37 = vpop.f32.mrf.mxu1 }
  0xe0   : > { %v498_v62 = vadd.f32 %v497_v37, %v396_v36 }
  0xe1   : > { %v983_v38 = vpop.f32.mrf.mxu0  ;;  %v997_v39 = vpop.f32.mrf.mxu1 }
  0xe2   : > { %v519_v47 = vadd.f32 %v997_v39, %v983_v38 }
  0xe3   : > { %v409_v40 = vpop.f32.mrf.mxu0  ;;  %v510_v41 = vpop.f32.mrf.mxu1 }
  0xe4   : > { %v511_v52 = vadd.f32 %v510_v41, %v409_v40 }
  0xe5   : > { %v984_v42 = vpop.f32.mrf.mxu0  ;;  %v998_v43 = vpop.f32.mrf.mxu1 }
  0xe6   : > { %v522_v59 = vadd.f32 %v998_v43, %v984_v42 }
  0xe7   : > { %v412_v44 = vpop.f32.mrf.mxu0  ;;  %v513_v46 = vpop.f32.mrf.mxu1 }
  0xe8   : > { %v514_v2 = vadd.f32 %v513_v46, %v412_v44 }
  0xe9   : > { %v1007_v48 = vpop.f32.mrf.mxu0  ;;  %v1011_v51 = vpop.f32.mrf.mxu1 }
  0xea   : > { %v657_v50 = vadd.f32 %v1007_v48, %v503_v45  ;;  %v661_v54 = vadd.f32 %v1011_v51, %v519_v47 }
  0xeb   : > { %v624_v55 = vpop.f32.mrf.mxu0  ;;  %v640_v58 = vpop.f32.mrf.mxu1 }
  0xec   : > { %v655_v57 = vadd.f32 %v624_v55, %v495_v49  ;;  %v659_v60 = vadd.f32 %v640_v58, %v511_v52  ;;  %v672_v63 = vadd.f32 %v908_v53, %v657_v50  ;;  %v676_v4 = vadd.f32 %v908_v53, %v661_v54 }
  0xed   : > { %v1008_v61 = vpop.f32.mrf.mxu0  ;;  %v1012_v1 = vpop.f32.mrf.mxu1 }
  0xee   : > { %v658_v0 = vadd.f32 %v1008_v61, %v506_v56  ;;  %v662_v6 = vadd.f32 %v1012_v1, %v522_v59  ;;  %v670_v9 = vadd.f32 %v908_v53, %v655_v57  ;;  %v674_v15 = vadd.f32 %v908_v53, %v659_v60 }
  0xef   : > { %v627_v7 = vpop.f32.mrf.mxu0  ;;  %v643_v13 = vpop.f32.mrf.mxu1  ;;  %v688_v19 = vadd.f32 %v680_v3, %v672_v63  ;;  %v692_v24 = vadd.f32 %v684_v8, %v676_v4 }
  0xf0   : > { %v673_v10 = vadd.f32 %v908_v53, %v658_v0  ;;  %v656_v12 = vadd.f32 %v627_v7, %v498_v62  ;;  %v677_v16 = vadd.f32 %v908_v53, %v662_v6  ;;  %v660_v18 = vadd.f32 %v643_v13, %v514_v2 }
  0xf1   : > { %v686_v27 = vadd.f32 %v678_v14, %v670_v9  ;;  %v690_v30 = vadd.f32 %v682_v20, %v674_v15 }
  0xf2   : > { %v689_v21 = vadd.f32 %v681_v5, %v673_v10  ;;  %v671_v22 = vadd.f32 %v908_v53, %v656_v12  ;;  %v693_v25 = vadd.f32 %v685_v11, %v677_v16  ;;  %v675_v26 = vadd.f32 %v908_v53, %v660_v18 }
  0xf4   : > { %v935_v28 = vpack.c.bf16 %v689_v21, %v688_v19  ;;  %v687_v29 = vadd.f32 %v679_v17, %v671_v22  ;;  %v945_v31 = vpack.c.bf16 %v693_v25, %v692_v24  ;;  %v691_v32 = vadd.f32 %v683_v23, %v675_v26 }
  0xf6   : > { %947 = vst [vmem:[%s283_s29 + $0x8] sm:$0xff] %v935_v28   ;;  %v930_v33 = vpack.c.bf16 %v687_v29, %v686_v27  ;;  %949 = vst [vmem:[%s283_s29 + $0x18] sm:$0xff] %v945_v31   ;;  %v940_v34 = vpack.c.bf16 %v691_v32, %v690_v30 }
  0xf8   : > { %931 = vst [vmem:[%s283_s29] sm:$0xff] %v930_v33   ;;  %948 = vst [vmem:[%s283_s29 + $0x10] sm:$0xff] %v940_v34  }
  0xf9 PF: > { %s14_s17 = sadd.s32 1, %s1086_s17   ;;  %s1229_s15 = smov %s1082_s16 }
  0xfa   : > { %p11_p6 = scmp.ge.s32.totalorder %s14_s17, 4   ;;  %s1230_s16 = smov %s1232_s18 }
  0xfc   :  { %13 = sbr.rel (!%p11_p6) target bundleno = 2 (0x2), region = 77 }

// kernel: discriminator_forward.22
= control target key start
LH: loop header
LB: loop body
LE: loop exit
PB: predicated region body
PF: predicated region fallthrough
CT: control target
= control target key end

     0   :  { %s597_s12 = smov 0   ;;  %s599_s13 = smov 0   ;;  %s645_s0 = inlined_call_operand.vmem [shape: bf16[32,64], index: 0, kind: input, shape index: {}]   ;;  %s646_s1 = inlined_call_operand.vmem [shape: bf16[64,128], index: 1, kind: input, shape index: {}]   ;;  %s647_s2 = inlined_call_operand.vmem [shape: f32[1,128], index: 2, kind: input, shape index: {}]   ;;  %s648_s3 = inlined_call_operand.vmem [shape: f32[32,128], index: 3, kind: output, shape index: {}]  }
   0x1   :  { %s601_s14 = smov 0  }
   0x2 LB: > { %s32_s15 = sadd.s32 1, %s569_s13  ;;  %p489_p0 = scmp.ge.s32.totalorder %s573_s14, 1  ;;  %s573_s14 = sphi %s601_s14, %s13_s14   ;;  %s569_s13 = sphi %s599_s13, %s650_s13   ;;  %s565_s12 = sphi %s597_s12, %s649_s12  }
   0x3   : > { %p34_p1 = scmp.ge.s32.totalorder %s32_s15, 2  ;;  %p188_p2 = scmp.lt.s32.totalorder %s573_s14, 3 }
   0x5   : > { %s652_s15 = smov (%p34_p1, %s32_s15), 0  ;;  %p189_p3 = pnand %p489_p0, %p188_p2 }
   0x6   : > { %s490_s20 = sshll.u32 (!%p189_p3), %s565_s12, 1 }
   0x7   : > { %192 = sbr.rel (%p189_p3) target bundleno = 229 (0xe5), region = 32  ;;  %p230_p4 = scmp.lt.s32.totalorder (!%p189_p3), %s490_s20, 3 }
   0xc   : > { %v546_v0 = vld [vmem:[%s646_s1 + $0x18] sm:$0xff]   ;;  %v575_v1 = vmov 0.0   ;;  %v547_v2 = vld [vmem:[%s646_s1 + $0x10] sm:$0xff]   ;;  %vm576_vm0 = vmmov 0   ;;  %s654_s20 = smov (!%p230_p4, %s490_s20), 3  ;;  %v548_v3 = vld [vmem:[%s646_s1 + $0x8] sm:$0xff]  }
   0xd   : > { %508 = vmatprep.subr.bf16.mxu0 %v575_v1  ;;  %516 = vmatprep.mubr.msk.bf16.mxu0 %vm576_vm0, %v575_v1  ;;  %s491_s23 = sshll.u32 %s654_s20, 2  ;;  %v549_v4 = vld [vmem:[%s646_s1] sm:$0xff]   ;;  %vm307_vm1 = vcmask 523264   ;;  %s493_s29 = sshll.u32 %s654_s20, 3 }
   0xe   : > { %509 = vmatpush3.bf16.msra.mxu0 %v546_v0  ;;  %s236_s26 = scalar_lea.vmem %s645_s0, %s491_s23  ;;  %v500_v6 = vld [vmem:[%s647_s2] ss:$0 sm:$0xff]  ;;  %s257_s7 = scalar_lea.vmem %s648_s3, %s493_s29 }
   0xf   : > { %510 = vmatprep.subr.bf16.mxu0 %v575_v1  ;;  %v550_v5 = vld [vmem:[%s236_s26] sm:$0xff]  }
  0x12   : > { %511 = vmatpush3.bf16.msra.mxu0 %v547_v2 }
  0x13   : > { %512 = vmatprep.subr.bf16.mxu0 %v575_v1 }
  0x16   : > { %513 = vmatpush3.bf16.msra.mxu0 %v548_v3 }
  0x17   : > { %514 = vmatprep.subr.bf16.mxu0 %v575_v1 }
  0x1a   : > { %515 = vmatpush3.bf16.msra.mxu0 %v549_v4 }
  0x1d   : > { %517 = vmatmul.mubr.msk.bf16.vlgmr.msra.gmra.mxu0 %vm307_vm1, %v550_v5 }
  0xdd   : > { %v345_v7 = vpop.f32.mrf.mxu0 }
  0xde   : > { %v368_v8 = vadd.f32 %v500_v6, %v345_v7 }
  0xdf   : > { %v518_v9 = vpop.f32.mrf.mxu0 }
  0xe0   : > { %370 = vst [vmem:[%s257_s7] sm:$0xff] %v368_v8 }
  0xe1   : > { %v348_v10 = vpop.f32.mrf.mxu0 }
  0xe2   : > { %v369_v11 = vadd.f32 %v500_v6, %v348_v10 }
  0xe3   : > { %v519_v12 = vpop.f32.mrf.mxu0 }
  0xe4   : > { %371 = vst [vmem:[%s257_s7 + $0x8] sm:$0xff] %v369_v11 }
  0xe5 PF: > { %s13_s14 = sadd.s32 1, %s573_s14   ;;  %s649_s12 = smov %s569_s13 }
  0xe6   : > { %p10_p5 = scmp.ge.s32.totalorder %s13_s14, 4   ;;  %s650_s13 = smov %s652_s15 }
  0xe8   :  { %12 = sbr.rel (!%p10_p5) target bundleno = 2 (0x2), region = 76 }

// kernel: discriminator_forward.23
= control target key start
LH: loop header
LB: loop body
LE: loop exit
PB: predicated region body
PF: predicated region fallthrough
CT: control target
= control target key end

     0   :  { %s667_s12 = smov 0   ;;  %s669_s13 = smov 0   ;;  %s734_s0 = inlined_call_operand.vmem [shape: bf16[32,144], index: 0, kind: input, shape index: {}]   ;;  %s735_s1 = inlined_call_operand.vmem [shape: bf16[144,128], index: 1, kind: input, shape index: {}]   ;;  %s736_s2 = inlined_call_operand.vmem [shape: f32[1,128], index: 2, kind: input, shape index: {}]   ;;  %s737_s3 = inlined_call_operand.vmem [shape: bf16[32,128], index: 3, kind: output, shape index: {}]  }
   0x1   :  { %s671_s14 = smov 0  }
   0x2 LB: > { %s32_s15 = sadd.s32 1, %s640_s13  ;;  %p554_p0 = scmp.ge.s32.totalorder %s644_s14, 1  ;;  %s644_s14 = sphi %s671_s14, %s13_s14   ;;  %s640_s13 = sphi %s669_s13, %s739_s13   ;;  %s636_s12 = sphi %s667_s12, %s738_s12  }
   0x3   : > { %p34_p1 = scmp.ge.s32.totalorder %s32_s15, 2  ;;  %p191_p2 = scmp.lt.s32.totalorder %s644_s14, 3 }
   0x5   : > { %s741_s15 = smov (%p34_p1, %s32_s15), 0  ;;  %p192_p3 = pnand %p554_p0, %p191_p2 }
   0x6   : > { %s555_s18 = sshll.u32 (!%p192_p3), %s636_s12, 1 }
   0x7   : > { %195 = sbr.rel (%p192_p3) target bundleno = 253 (0xfd), region = 32  ;;  %p236_p4 = scmp.lt.s32.totalorder (!%p192_p3), %s555_s18, 3 }
   0xc   : > { %v610_v0 = vld [vmem:[%s735_s1 + $0x38] sm:$0xff]   ;;  %v646_v1 = vmov 0   ;;  %v611_v2 = vld [vmem:[%s735_s1 + $0x30] sm:$0xff]   ;;  %s743_s18 = smov (!%p236_p4, %s555_s18), 3  ;;  %v612_v3 = vld [vmem:[%s735_s1 + $0x28] sm:$0xff]   ;;  %vm359_vm0 = vcmask 130048  }
   0xd   : > { %363 = vmatprep.subr.bf16.mxu0 %v646_v1  ;;  %s577_s23 = sshll.u32 %s743_s18, 3  ;;  %v613_v4 = vld [vmem:[%s735_s1 + $0x20] sm:$0xff]   ;;  %v614_v6 = vld [vmem:[%s735_s1 + $0x18] sm:$0xff]   ;;  %v615_v7 = vld [vmem:[%s735_s1 + $0x10] sm:$0xff]   ;;  %s559_s17 = sshll.u32 %s743_s18, 2 }
   0xe   : > { %364 = vmatpush1.bf16.msra.mxu0 %v610_v0  ;;  %s243_s26 = scalar_lea.vmem %s734_s0, %s577_s23  ;;  %v616_v8 = vld [vmem:[%s735_s1 + $0x8] sm:$0xff]   ;;  %v617_v9 = vld [vmem:[%s735_s1] sm:$0xff]   ;;  %s265_s21 = scalar_lea.vmem %s737_s3, %s559_s17 }
   0xf   : > { %365 = vmatprep.subr.bf16.mxu0 %v646_v1  ;;  %v621_v5 = vld [vmem:[%s243_s26 + $0x4] ss:$8 sps:$4 sm:$0xff]   ;;  %v619_v11 = vld [vmem:[%s243_s26] ss:$8 sps:$4 sm:$0xff]  }
  0x10   : > { %571 = vmatprep.mubr.msk.bf16.mxu0 %vm359_vm0, %v621_v5  ;;  %v618_v10 = vld [vmem:[%s735_s1 + $0x40] sm:$0xff]  }
  0x11   : > { %v572_v13 = vld [vmem:[%s736_s2] ss:$0 sm:$0xff] }
  0x12   : > { %366 = vmatpush1.bf16.msra.mxu0 %v611_v2 }
  0x13   : > { %367 = vmatprep.subr.bf16.mxu0 %v646_v1 }
  0x16   : > { %368 = vmatpush1.bf16.msra.mxu0 %v612_v3 }
  0x17   : > { %369 = vmatprep.subr.bf16.mxu0 %v646_v1 }
  0x1a   : > { %370 = vmatpush1.bf16.msra.mxu0 %v613_v4 }
  0x1b   : > { %371 = vmatprep.subr.bf16.mxu0 %v646_v1 }
  0x1e   : > { %372 = vmatpush1.bf16.msra.mxu0 %v614_v6 }
  0x1f   : > { %373 = vmatprep.subr.bf16.mxu0 %v646_v1 }
  0x22   : > { %374 = vmatpush1.bf16.msra.mxu0 %v615_v7 }
  0x23   : > { %375 = vmatprep.subr.bf16.mxu0 %v646_v1 }
  0x26   : > { %376 = vmatpush1.bf16.msra.mxu0 %v616_v8 }
  0x27   : > { %377 = vmatprep.subr.bf16.mxu0 %v646_v1 }
  0x2a   : > { %378 = vmatpush1.bf16.msra.mxu0 %v617_v9 }
  0x2b   : > { %393 = vmatprep.subr.bf16.mxu0 %v646_v1 }
  0x2e   : > { %394 = vmatpush2.bf16.msra.mxu0 %v618_v10 }
  0x31   : > { %396 = vmatmul.mubr.bf16.vlgmr.msra.gmra.mxu0 %v619_v11 }
  0xf1   : > { %v397_v12 = vpop.f32.mrf.mxu0 }
  0xf2   : > { %v420_v15 = vadd.f32 %v572_v13, %v397_v12 }
  0xf3   : > { %v399_v14 = vpop.f32.mrf.mxu0 }
  0xf4   : > { %v422_v19 = vmax.f32 %v420_v15, 0.0 }
  0xf5   : > { %v400_v16 = vpop.f32.mrf.mxu0 }
  0xf6   : > { %v421_v17 = vadd.f32 %v572_v13, %v400_v16 }
  0xf7   : > { %v402_v18 = vpop.f32.mrf.mxu0 }
  0xf8   : > { %v423_v20 = vmax.f32 %v421_v17, 0.0 }
  0xfa   : > { %v583_v21 = vpack.c.bf16 %v423_v20, %v422_v19 }
  0xfc   : > { %584 = vst [vmem:[%s265_s21] sm:$0xff] %v583_v21  }
  0xfd PF: > { %s13_s14 = sadd.s32 1, %s644_s14   ;;  %s738_s12 = smov %s640_s13 }
  0xfe   : > { %p10_p5 = scmp.ge.s32.totalorder %s13_s14, 4   ;;  %s739_s13 = smov %s741_s15 }
 0x100   :  { %12 = sbr.rel (!%p10_p5) target bundleno = 2 (0x2), region = 76 }

// kernel: discriminator_forward.25
= control target key start
LH: loop header
LB: loop body
LE: loop exit
PB: predicated region body
PF: predicated region fallthrough
CT: control target
= control target key end

     0   :  { %v210_v0 = vmov 0.0   ;;  %vm211_vm0 = vmmov 0   ;;  %s268_s1 = inlined_call_operand.vmem [shape: bf16[128,128], index: 1, kind: input, shape index: {}]   ;;  %s269_s0 = inlined_call_operand.vmem [shape: bf16[16,128], index: 0, kind: input, shape index: {}]   ;;  %s270_s2 = inlined_call_operand.vmem [shape: f32[1,128], index: 2, kind: input, shape index: {}]   ;;  %s271_s3 = inlined_call_operand.vmem [shape: f32[16,128], index: 3, kind: output, shape index: {}]  }
   0x1   :  { %179 = vmatprep.subr.bf16.mxu0 %v210_v0  ;;  %v201_v1 = vld [vmem:[%s268_s1 + $0x38] sm:$0xff]   ;;  %195 = vmatprep.mubr.msk.bf16.mxu0 %vm211_vm0, %v210_v0  ;;  %v202_v2 = vld [vmem:[%s268_s1 + $0x30] sm:$0xff]   ;;  %v203_v3 = vld [vmem:[%s268_s1 + $0x28] sm:$0xff]  }
   0x2   :  { %180 = vmatpush3.bf16.msra.mxu0 %v201_v1  ;;  %v204_v4 = vld [vmem:[%s268_s1 + $0x20] sm:$0xff]   ;;  %v205_v5 = vld [vmem:[%s268_s1 + $0x18] sm:$0xff]   ;;  %v206_v6 = vld [vmem:[%s268_s1 + $0x10] sm:$0xff]  }
   0x3   :  { %181 = vmatprep.subr.bf16.mxu0 %v210_v0  ;;  %v207_v7 = vld [vmem:[%s268_s1 + $0x8] sm:$0xff]   ;;  %v208_v8 = vld [vmem:[%s268_s1] sm:$0xff]  }
   0x4   :  { %v209_v9 = vld [vmem:[%s269_s0] sm:$0xff]  }
   0x5   :  { %v169_v10 = vld [vmem:[%s270_s2] ss:$0 sm:$0xff] }
   0x6   :  { %182 = vmatpush3.bf16.msra.mxu0 %v202_v2 }
   0x7   :  { %183 = vmatprep.subr.bf16.mxu0 %v210_v0 }
   0xa   :  { %184 = vmatpush3.bf16.msra.mxu0 %v203_v3 }
   0xb   :  { %185 = vmatprep.subr.bf16.mxu0 %v210_v0 }
   0xe   :  { %186 = vmatpush3.bf16.msra.mxu0 %v204_v4 }
   0xf   :  { %187 = vmatprep.subr.bf16.mxu0 %v210_v0 }
  0x12   :  { %188 = vmatpush3.bf16.msra.mxu0 %v205_v5 }
  0x13   :  { %189 = vmatprep.subr.bf16.mxu0 %v210_v0 }
  0x16   :  { %190 = vmatpush3.bf16.msra.mxu0 %v206_v6 }
  0x17   :  { %191 = vmatprep.subr.bf16.mxu0 %v210_v0 }
  0x1a   :  { %192 = vmatpush3.bf16.msra.mxu0 %v207_v7 }
  0x1b   :  { %193 = vmatprep.subr.bf16.mxu0 %v210_v0 }
  0x1e   :  { %194 = vmatpush3.bf16.msra.mxu0 %v208_v8 }
  0x21   :  { %196 = vmatmul.mubr.bf16.vlgmr.msra.gmra.mxu0 %v209_v9 }
  0xe1   :  { %v129_v11 = vpop.f32.mrf.mxu0 }
  0xe2   :  { %v152_v12 = vadd.f32 %v169_v10, %v129_v11 }
  0xe3   :  { %v197_v13 = vpop.f32.mrf.mxu0 }
  0xe4   :  { %154 = vst [vmem:[%s271_s3] sm:$0xff] %v152_v12 }
  0xe5   :  { %v132_v14 = vpop.f32.mrf.mxu0 }
  0xe6   :  { %v153_v15 = vadd.f32 %v169_v10, %v132_v14 }
  0xe7   :  { %v198_v16 = vpop.f32.mrf.mxu0 }
  0xe8   :  { %155 = vst [vmem:[%s271_s3 + $0x8] sm:$0xff] %v153_v15 }

// kernel: discriminator_forward.24
= control target key start
LH: loop header
LB: loop body
LE: loop exit
PB: predicated region body
PF: predicated region fallthrough
CT: control target
= control target key end

     0   :  { %s926_s15 = smov 0   ;;  %s928_s16 = smov 0   ;;  %s1024_s0 = inlined_call_operand.vmem [shape: bf16[32,288], index: 0, kind: input, shape index: {}]   ;;  %s1025_s1 = inlined_call_operand.vmem [shape: bf16[288,128], index: 1, kind: input, shape index: {}]   ;;  %s1026_s2 = inlined_call_operand.vmem [shape: f32[1,128], index: 2, kind: input, shape index: {}]   ;;  %s1027_s3 = inlined_call_operand.vmem [shape: f32[32,128], index: 3, kind: input, shape index: {}]   ;;  %s1028_s4 = inlined_call_operand.vmem [shape: bf16[32,128], index: 4, kind: output, shape index: {}]  }
   0x1   :  { %s930_s17 = smov 0  }
   0x2 LB: > { %s33_s18 = sadd.s32 1, %s893_s16  ;;  %p752_p0 = scmp.ge.s32.totalorder %s897_s17, 1  ;;  %s897_s17 = sphi %s930_s17, %s14_s17   ;;  %s893_s16 = sphi %s928_s16, %s1030_s16   ;;  %s889_s15 = sphi %s926_s15, %s1029_s15  }
   0x3   : > { %p35_p1 = scmp.ge.s32.totalorder %s33_s18, 2  ;;  %p232_p2 = scmp.lt.s32.totalorder %s897_s17, 3 }
   0x5   : > { %s1032_s18 = smov (%p35_p1, %s33_s18), 0  ;;  %p233_p3 = pnand %p752_p0, %p232_p2 }
   0x6   : > { %s753_s25 = sshll.u32 (!%p233_p3), %s889_s15, 1 }
   0x7   : > { %236 = sbr.rel (%p233_p3) target bundleno = 255 (0xff), region = 36  ;;  %p287_p4 = scmp.lt.s32.totalorder (!%p233_p3), %s753_s25, 3 }
   0xc   : > { %v853_v0 = vld [vmem:[%s1025_s1 + $0x78] sm:$0xff]   ;;  %v899_v2 = vmov 0.0   ;;  %v855_v3 = vld [vmem:[%s1025_s1 + $0x70] sm:$0xff]   ;;  %vm900_vm0 = vmmov 0   ;;  %v857_v5 = vld [vmem:[%s1025_s1 + $0x68] sm:$0xff]   ;;  %s1034_s25 = smov (!%p287_p4, %s753_s25), 3 }
   0xd   : > { %v854_v1 = vld [vmem:[%s1025_s1 + $0x38] sm:$0xff]   ;;  %818 = vmatprep.subr.bf16.mxu1 %v899_v2  ;;  %793 = vmatprep.subr.bf16.mxu0 %v853_v0  ;;  %v856_v4 = vld [vmem:[%s1025_s1 + $0x30] sm:$0xff]   ;;  %v858_v6 = vld [vmem:[%s1025_s1 + $0x28] sm:$0xff]   ;;  %s826_s12 = smul.u32 12, %s1034_s25  ;;  %vm499_vm1 = vcmask 261120   ;;  %s758_s21 = sshll.u32 %s1034_s25, 2 }
   0xe   : > { %822 = vmatprep.mubr.msk.bf16.mxu1 %vm900_vm0, %v899_v2  ;;  %794 = vmatpush3.bf16.msra.mxu0 %v854_v1  ;;  %v859_v7 = vld [vmem:[%s1025_s1 + $0x60] sm:$0xff]   ;;  %v861_v9 = vld [vmem:[%s1025_s1 + $0x58] sm:$0xff]   ;;  %v865_v10 = vld [vmem:[%s1025_s1 + $0x88] sm:$0xff]  }
   0xf   : > { %795 = vmatprep.subr.bf16.mxu0 %v855_v3  ;;  %v860_v8 = vld [vmem:[%s1025_s1 + $0x20] sm:$0xff]   ;;  %v862_v11 = vld [vmem:[%s1025_s1 + $0x18] sm:$0xff]   ;;  %819 = vmatpush3.bf16.msra.mxu1 %v865_v10  ;;  %s294_s24 = scalar_lea.vmem %s1024_s0, %s826_s12  ;;  %v863_v13 = vld [vmem:[%s1025_s1 + $0x50] sm:$0xff]   ;;  %s756_s12 = sshll.u32 %s1034_s25, 3 }
  0x10   : > { %820 = vmatprep.subr.bf16.mxu1 %v899_v2  ;;  %v868_v12 = vld [vmem:[%s1025_s1 + $0x80] sm:$0xff]   ;;  %v871_v14 = vld [vmem:[%s294_s24 + $0x8] ss:$12 sps:$4 sm:$0xff]   ;;  %s316_s20 = scalar_lea.vmem %s1027_s3, %s756_s12 }
  0x11   : > { %v864_v15 = vld [vmem:[%s1025_s1 + $0x10] sm:$0xff]   ;;  %v866_v16 = vld [vmem:[%s1025_s1 + $0x48] sm:$0xff]   ;;  %v869_v19 = vld [vmem:[%s1025_s1 + $0x40] sm:$0xff]  }
  0x12   : > { %796 = vmatpush3.bf16.msra.mxu0 %v856_v4  ;;  %v874_v17 = vld [vmem:[%s294_s24 + $0x4] ss:$12 sps:$4 sm:$0xff]   ;;  %v867_v18 = vld [vmem:[%s1025_s1 + $0x8] sm:$0xff]   ;;  %v781_v31 = vld [vmem:[%s1026_s2] ss:$0 sm:$0xff] }
  0x13   : > { %797 = vmatprep.subr.bf16.mxu0 %v857_v5  ;;  %821 = vmatpush3.bf16.msra.mxu1 %v868_v12  ;;  %v870_v20 = vld [vmem:[%s1025_s1] sm:$0xff]   ;;  %v604_v37 = vld [vmem:[%s316_s20 + $0x8] sm:$0xff] }
  0x14   : > { %535 = vmatprep.mubr.bf16.mxu0 %v874_v17  ;;  %v872_v21 = vld [vmem:[%s294_s24] ss:$12 sps:$4 sm:$0xff]   ;;  %s325_s24 = scalar_lea.vmem %s1028_s4, %s758_s21 }
  0x15   : > { %v603_v36 = vld [vmem:[%s316_s20] sm:$0xff] }
  0x16   : > { %798 = vmatpush3.bf16.msra.mxu0 %v858_v6  ;;  %823 = vmatmul.mubr.msk.bf16.vlgmr.msra.gmra.mxu1 %vm499_vm1, %v871_v14 }
  0x17   : > { %799 = vmatprep.subr.bf16.mxu0 %v859_v7 }
  0x1a   : > { %800 = vmatpush3.bf16.msra.mxu0 %v860_v8 }
  0x1b   : > { %801 = vmatprep.subr.bf16.mxu0 %v861_v9 }
  0x1e   : > { %802 = vmatpush3.bf16.msra.mxu0 %v862_v11 }
  0x1f   : > { %803 = vmatprep.subr.bf16.mxu0 %v863_v13 }
  0x22   : > { %804 = vmatpush3.bf16.msra.mxu0 %v864_v15 }
  0x23   : > { %805 = vmatprep.subr.bf16.mxu0 %v866_v16 }
  0x26   : > { %806 = vmatpush3.bf16.msra.mxu0 %v867_v18 }
  0x27   : > { %807 = vmatprep.subr.bf16.mxu0 %v869_v19 }
  0x2a   : > { %808 = vmatpush3.bf16.msra.mxu0 %v870_v20 }
  0x2d   : > { %536 = vmatmul.mubr.bf16.vlgmr.msra.gmra.mxu0 %v872_v21 }
  0xd6   : > { %v578_v22 = vpop.f32.mrf.mxu1 }
  0xd8   : > { %v824_v23 = vpop.f32.mrf.mxu1 }
  0xda   : > { %v581_v24 = vpop.f32.mrf.mxu1 }
  0xdc   : > { %v825_v25 = vpop.f32.mrf.mxu1 }
  0xed   : > { %v809_v26 = vpop.f32.mrf.mxu0 }
  0xef   : > { %v810_v27 = vpop.f32.mrf.mxu0 }
  0xf0   : > { %v811_v28 = vadd.f32 %v810_v27, %v809_v26 }
  0xf1   : > { %v812_v29 = vpop.f32.mrf.mxu0 }
  0xf2   : > { %v579_v30 = vadd.f32 %v811_v28, %v578_v22 }
  0xf3   : > { %v813_v32 = vpop.f32.mrf.mxu0 }
  0xf4   : > { %v814_v33 = vadd.f32 %v813_v32, %v812_v29  ;;  %v601_v34 = vadd.f32 %v781_v31, %v579_v30 }
  0xf6   : > { %v582_v35 = vadd.f32 %v814_v33, %v581_v24  ;;  %v605_v39 = vadd.f32 %v603_v36, %v601_v34 }
  0xf8   : > { %v602_v38 = vadd.f32 %v781_v31, %v582_v35 }
  0xfa   : > { %v606_v40 = vadd.f32 %v604_v37, %v602_v38 }
  0xfc   : > { %v791_v41 = vpack.c.bf16 %v606_v40, %v605_v39 }
  0xfe   : > { %792 = vst [vmem:[%s325_s24] sm:$0xff] %v791_v41  }
  0xff PF: > { %s14_s17 = sadd.s32 1, %s897_s17   ;;  %s1029_s15 = smov %s893_s16 }
 0x100   : > { %p11_p5 = scmp.ge.s32.totalorder %s14_s17, 4   ;;  %s1030_s16 = smov %s1032_s18 }
 0x102   :  { %13 = sbr.rel (!%p11_p5) target bundleno = 2 (0x2), region = 83 }

// kernel: discriminator_forward.26
= control target key start
LH: loop header
LB: loop body
LE: loop exit
PB: predicated region body
PF: predicated region fallthrough
CT: control target
= control target key end

     0   :  { %v395_v1 = vmov 0.0   ;;  %vm396_vm0 = vmmov 0   ;;  %vm186_vm1 = vcmask 261120   ;;  %s486_s1 = inlined_call_operand.vmem [shape: bf16[288,128], index: 1, kind: input, shape index: {}]   ;;  %s487_s0 = inlined_call_operand.vmem [shape: bf16[16,288], index: 0, kind: input, shape index: {}]   ;;  %s488_s2 = inlined_call_operand.vmem [shape: f32[1,128], index: 2, kind: input, shape index: {}]   ;;  %s489_s3 = inlined_call_operand.vmem [shape: bf16[16,128], index: 3, kind: output, shape index: {}]  }
   0x1   :  { %v373_v0 = vld [vmem:[%s486_s1 + $0x78] sm:$0xff]   ;;  %363 = vmatprep.subr.bf16.mxu1 %v395_v1  ;;  %367 = vmatprep.mubr.msk.bf16.mxu1 %vm396_vm0, %v395_v1  ;;  %v375_v3 = vld [vmem:[%s486_s1 + $0x70] sm:$0xff]   ;;  %v377_v5 = vld [vmem:[%s486_s1 + $0x68] sm:$0xff]  }
   0x2   :  { %v374_v2 = vld [vmem:[%s486_s1 + $0x38] sm:$0xff]   ;;  %338 = vmatprep.subr.bf16.mxu0 %v373_v0  ;;  %v376_v4 = vld [vmem:[%s486_s1 + $0x30] sm:$0xff]   ;;  %v378_v6 = vld [vmem:[%s486_s1 + $0x28] sm:$0xff]  }
   0x3   :  { %339 = vmatpush3.bf16.msra.mxu0 %v374_v2  ;;  %v379_v7 = vld [vmem:[%s486_s1 + $0x60] sm:$0xff]   ;;  %v381_v9 = vld [vmem:[%s486_s1 + $0x58] sm:$0xff]   ;;  %v385_v10 = vld [vmem:[%s486_s1 + $0x88] sm:$0xff]  }
   0x4   :  { %340 = vmatprep.subr.bf16.mxu0 %v375_v3  ;;  %v380_v8 = vld [vmem:[%s486_s1 + $0x20] sm:$0xff]   ;;  %v382_v11 = vld [vmem:[%s486_s1 + $0x18] sm:$0xff]   ;;  %364 = vmatpush3.bf16.msra.mxu1 %v385_v10  ;;  %v383_v13 = vld [vmem:[%s486_s1 + $0x50] sm:$0xff]  }
   0x5   :  { %365 = vmatprep.subr.bf16.mxu1 %v395_v1  ;;  %v388_v12 = vld [vmem:[%s486_s1 + $0x80] sm:$0xff]   ;;  %v391_v14 = vld [vmem:[%s487_s0 + $0x8] ss:$12 sps:$4 sm:$0xff]  }
   0x6   :  { %v384_v15 = vld [vmem:[%s486_s1 + $0x10] sm:$0xff]   ;;  %v386_v16 = vld [vmem:[%s486_s1 + $0x48] sm:$0xff]   ;;  %v389_v19 = vld [vmem:[%s486_s1 + $0x40] sm:$0xff]  }
   0x7   :  { %341 = vmatpush3.bf16.msra.mxu0 %v376_v4  ;;  %v394_v17 = vld [vmem:[%s487_s0 + $0x4] ss:$12 sps:$4 sm:$0xff]   ;;  %v387_v18 = vld [vmem:[%s486_s1 + $0x8] sm:$0xff]   ;;  %v328_v31 = vld [vmem:[%s488_s2] ss:$0 sm:$0xff] }
   0x8   :  { %342 = vmatprep.subr.bf16.mxu0 %v377_v5  ;;  %366 = vmatpush3.bf16.msra.mxu1 %v388_v12  ;;  %v390_v20 = vld [vmem:[%s486_s1] sm:$0xff]  }
   0x9   :  { %222 = vmatprep.mubr.bf16.mxu0 %v394_v17  ;;  %v392_v21 = vld [vmem:[%s487_s0] ss:$12 sps:$4 sm:$0xff]  }
   0xb   :  { %343 = vmatpush3.bf16.msra.mxu0 %v378_v6  ;;  %368 = vmatmul.mubr.msk.bf16.vlgmr.msra.gmra.mxu1 %vm186_vm1, %v391_v14 }
   0xc   :  { %344 = vmatprep.subr.bf16.mxu0 %v379_v7 }
   0xf   :  { %345 = vmatpush3.bf16.msra.mxu0 %v380_v8 }
  0x10   :  { %346 = vmatprep.subr.bf16.mxu0 %v381_v9 }
  0x13   :  { %347 = vmatpush3.bf16.msra.mxu0 %v382_v11 }
  0x14   :  { %348 = vmatprep.subr.bf16.mxu0 %v383_v13 }
  0x17   :  { %349 = vmatpush3.bf16.msra.mxu0 %v384_v15 }
  0x18   :  { %350 = vmatprep.subr.bf16.mxu0 %v386_v16 }
  0x1b   :  { %351 = vmatpush3.bf16.msra.mxu0 %v387_v18 }
  0x1c   :  { %352 = vmatprep.subr.bf16.mxu0 %v389_v19 }
  0x1f   :  { %353 = vmatpush3.bf16.msra.mxu0 %v390_v20 }
  0x22   :  { %223 = vmatmul.mubr.bf16.vlgmr.msra.gmra.mxu0 %v392_v21 }
  0xcb   :  { %v265_v22 = vpop.f32.mrf.mxu1 }
  0xcd   :  { %v369_v23 = vpop.f32.mrf.mxu1 }
  0xcf   :  { %v268_v24 = vpop.f32.mrf.mxu1 }
  0xd1   :  { %v370_v25 = vpop.f32.mrf.mxu1 }
  0xe2   :  { %v354_v26 = vpop.f32.mrf.mxu0 }
  0xe4   :  { %v355_v27 = vpop.f32.mrf.mxu0 }
  0xe5   :  { %v356_v28 = vadd.f32 %v355_v27, %v354_v26 }
  0xe6   :  { %v357_v29 = vpop.f32.mrf.mxu0 }
  0xe7   :  { %v266_v30 = vadd.f32 %v356_v28, %v265_v22 }
  0xe8   :  { %v358_v32 = vpop.f32.mrf.mxu0 }
  0xe9   :  { %v359_v33 = vadd.f32 %v358_v32, %v357_v29  ;;  %v288_v34 = vadd.f32 %v328_v31, %v266_v30 }
  0xeb   :  { %v269_v35 = vadd.f32 %v359_v33, %v268_v24  ;;  %v290_v37 = vmax.f32 %v288_v34, 0.0 }
  0xed   :  { %v289_v36 = vadd.f32 %v328_v31, %v269_v35 }
  0xef   :  { %v291_v38 = vmax.f32 %v289_v36, 0.0 }
  0xf1   :  { %v336_v39 = vpack.c.bf16 %v291_v38, %v290_v37 }
  0xf3   :  { %337 = vst [vmem:[%s489_s3] sm:$0xff] %v336_v39  }

// kernel: discriminator_forward.28
= control target key start
LH: loop header
LB: loop body
LE: loop exit
PB: predicated region body
PF: predicated region fallthrough
CT: control target
= control target key end

     0   :  { %s371_s1 = inlined_call_operand.vmem [shape: bf16[256,128], index: 1, kind: input, shape index: {}]   ;;  %s372_s0 = inlined_call_operand.vmem [shape: bf16[16,256], index: 0, kind: input, shape index: {}]   ;;  %s373_s2 = inlined_call_operand.vmem [shape: f32[1,128], index: 2, kind: input, shape index: {}]   ;;  %s374_s3 = inlined_call_operand.vmem [shape: f32[16,128], index: 3, kind: output, shape index: {}]  }
   0x1   :  { %v269_v0 = vld [vmem:[%s371_s1 + $0x78] sm:$0xff]   ;;  %v271_v2 = vld [vmem:[%s371_s1 + $0x70] sm:$0xff]   ;;  %v273_v4 = vld [vmem:[%s371_s1 + $0x68] sm:$0xff]  }
   0x2   :  { %v270_v1 = vld [vmem:[%s371_s1 + $0x38] sm:$0xff]   ;;  %247 = vmatprep.subr.bf16.mxu0 %v269_v0  ;;  %v272_v3 = vld [vmem:[%s371_s1 + $0x30] sm:$0xff]   ;;  %v274_v5 = vld [vmem:[%s371_s1 + $0x28] sm:$0xff]  }
   0x3   :  { %248 = vmatpush3.bf16.msra.mxu0 %v270_v1  ;;  %v275_v6 = vld [vmem:[%s371_s1 + $0x60] sm:$0xff]   ;;  %v277_v8 = vld [vmem:[%s371_s1 + $0x58] sm:$0xff]   ;;  %v279_v10 = vld [vmem:[%s371_s1 + $0x50] sm:$0xff]  }
   0x4   :  { %249 = vmatprep.subr.bf16.mxu0 %v271_v2  ;;  %v276_v7 = vld [vmem:[%s371_s1 + $0x20] sm:$0xff]   ;;  %v278_v9 = vld [vmem:[%s371_s1 + $0x18] sm:$0xff]   ;;  %v280_v12 = vld [vmem:[%s371_s1 + $0x10] sm:$0xff]  }
   0x5   :  { %v287_v11 = vld [vmem:[%s372_s0 + $0x4] ss:$8 sps:$4 sm:$0xff]   ;;  %v285_v17 = vld [vmem:[%s372_s0] ss:$8 sps:$4 sm:$0xff]  }
   0x6   :  { %195 = vmatprep.mubr.bf16.mxu0 %v287_v11  ;;  %v281_v13 = vld [vmem:[%s371_s1 + $0x48] sm:$0xff]   ;;  %v283_v15 = vld [vmem:[%s371_s1 + $0x40] sm:$0xff]  }
   0x7   :  { %250 = vmatpush3.bf16.msra.mxu0 %v272_v3  ;;  %v282_v14 = vld [vmem:[%s371_s1 + $0x8] sm:$0xff]   ;;  %v284_v16 = vld [vmem:[%s371_s1] sm:$0xff]  }
   0x8   :  { %251 = vmatprep.subr.bf16.mxu0 %v273_v4  ;;  %v246_v20 = vld [vmem:[%s373_s2] ss:$0 sm:$0xff] }
   0xb   :  { %252 = vmatpush3.bf16.msra.mxu0 %v274_v5 }
   0xc   :  { %253 = vmatprep.subr.bf16.mxu0 %v275_v6 }
   0xf   :  { %254 = vmatpush3.bf16.msra.mxu0 %v276_v7 }
  0x10   :  { %255 = vmatprep.subr.bf16.mxu0 %v277_v8 }
  0x13   :  { %256 = vmatpush3.bf16.msra.mxu0 %v278_v9 }
  0x14   :  { %257 = vmatprep.subr.bf16.mxu0 %v279_v10 }
  0x17   :  { %258 = vmatpush3.bf16.msra.mxu0 %v280_v12 }
  0x18   :  { %259 = vmatprep.subr.bf16.mxu0 %v281_v13 }
  0x1b   :  { %260 = vmatpush3.bf16.msra.mxu0 %v282_v14 }
  0x1c   :  { %261 = vmatprep.subr.bf16.mxu0 %v283_v15 }
  0x1f   :  { %262 = vmatpush3.bf16.msra.mxu0 %v284_v16 }
  0x22   :  { %196 = vmatmul.mubr.bf16.vlgmr.msra.gmra.mxu0 %v285_v17 }
  0xe2   :  { %v263_v18 = vpop.f32.mrf.mxu0 }
  0xe4   :  { %v264_v19 = vpop.f32.mrf.mxu0 }
  0xe5   :  { %v265_v21 = vadd.f32 %v264_v19, %v263_v18 }
  0xe6   :  { %v266_v22 = vpop.f32.mrf.mxu0 }
  0xe7   :  { %v220_v23 = vadd.f32 %v265_v21, %v246_v20 }
  0xe8   :  { %v267_v24 = vpop.f32.mrf.mxu0 }
  0xe9   :  { %222 = vst [vmem:[%s374_s3] sm:$0xff] %v220_v23  ;;  %v268_v25 = vadd.f32 %v267_v24, %v266_v22 }
  0xeb   :  { %v221_v26 = vadd.f32 %v268_v25, %v246_v20 }
  0xed   :  { %223 = vst [vmem:[%s374_s3 + $0x8] sm:$0xff] %v221_v26 }

// kernel: discriminator_forward.27
= control target key start
LH: loop header
LB: loop body
LE: loop exit
PB: predicated region body
PF: predicated region fallthrough
CT: control target
= control target key end

     0   :  { %v666_v34 = vmov 0.0   ;;  %vm667_vm0 = vmmov 0   ;;  %vm345_vm1 = vcmask 523264   ;;  %s828_s1 = inlined_call_operand.vmem [shape: bf16[576,128], index: 1, kind: input, shape index: {}]   ;;  %s829_s0 = inlined_call_operand.vmem [shape: bf16[16,576], index: 0, kind: input, shape index: {}]   ;;  %s830_s2 = inlined_call_operand.vmem [shape: f32[1,128], index: 2, kind: input, shape index: {}]   ;;  %s831_s3 = inlined_call_operand.vmem [shape: f32[16,128], index: 3, kind: input, shape index: {}]   ;;  %s832_s4 = inlined_call_operand.vmem [shape: bf16[16,128], index: 4, kind: output, shape index: {}]  }
   0x1   :  { %v623_v0 = vld [vmem:[%s828_s1 + $0x78] sm:$0xff]   ;;  %v627_v4 = vld [vmem:[%s828_s1 + $0x70] sm:$0xff]   ;;  %v631_v8 = vld [vmem:[%s828_s1 + $0x68] sm:$0xff]  }
   0x2   :  { %v624_v1 = vld [vmem:[%s828_s1 + $0xf8] sm:$0xff]   ;;  %560 = vmatprep.subr.bf16.mxu0 %v623_v0  ;;  %v628_v5 = vld [vmem:[%s828_s1 + $0xf0] sm:$0xff]   ;;  %v632_v9 = vld [vmem:[%s828_s1 + $0xe8] sm:$0xff]  }
   0x3   :  { %v625_v2 = vld [vmem:[%s828_s1 + $0x38] sm:$0xff]   ;;  %582 = vmatprep.subr.bf16.mxu1 %v624_v1  ;;  %v629_v6 = vld [vmem:[%s828_s1 + $0x30] sm:$0xff]   ;;  %v633_v10 = vld [vmem:[%s828_s1 + $0x28] sm:$0xff]  }
   0x4   :  { %v626_v3 = vld [vmem:[%s828_s1 + $0xb8] sm:$0xff]   ;;  %561 = vmatpush3.bf16.msra.mxu0 %v625_v2  ;;  %v630_v7 = vld [vmem:[%s828_s1 + $0xb0] sm:$0xff]   ;;  %v634_v11 = vld [vmem:[%s828_s1 + $0xa8] sm:$0xff]  }
   0x5   :  { %583 = vmatpush3.bf16.msra.mxu1 %v626_v3  ;;  %562 = vmatprep.subr.bf16.mxu0 %v627_v4  ;;  %v635_v12 = vld [vmem:[%s828_s1 + $0x60] sm:$0xff]   ;;  %v639_v16 = vld [vmem:[%s828_s1 + $0x58] sm:$0xff]   ;;  %v643_v20 = vld [vmem:[%s828_s1 + $0x50] sm:$0xff]  }
   0x6   :  { %584 = vmatprep.subr.bf16.mxu1 %v628_v5  ;;  %v636_v13 = vld [vmem:[%s828_s1 + $0xe0] sm:$0xff]   ;;  %v640_v17 = vld [vmem:[%s828_s1 + $0xd8] sm:$0xff]   ;;  %v644_v21 = vld [vmem:[%s828_s1 + $0xd0] sm:$0xff]  }
   0x7   :  { %v637_v14 = vld [vmem:[%s828_s1 + $0x20] sm:$0xff]   ;;  %v641_v18 = vld [vmem:[%s828_s1 + $0x18] sm:$0xff]   ;;  %v645_v22 = vld [vmem:[%s828_s1 + $0x10] sm:$0xff]  }
   0x8   :  { %563 = vmatpush3.bf16.msra.mxu0 %v629_v6  ;;  %v638_v15 = vld [vmem:[%s828_s1 + $0xa0] sm:$0xff]   ;;  %v642_v19 = vld [vmem:[%s828_s1 + $0x98] sm:$0xff]   ;;  %v646_v23 = vld [vmem:[%s828_s1 + $0x90] sm:$0xff]  }
   0x9   :  { %585 = vmatpush3.bf16.msra.mxu1 %v630_v7  ;;  %564 = vmatprep.subr.bf16.mxu0 %v631_v8  ;;  %v647_v24 = vld [vmem:[%s828_s1 + $0x48] sm:$0xff]   ;;  %v651_v28 = vld [vmem:[%s828_s1 + $0x40] sm:$0xff]   ;;  %v661_v37 = vld [vmem:[%s828_s1 + $0x118] sm:$0xff]  }
   0xa   :  { %586 = vmatprep.subr.bf16.mxu1 %v632_v9  ;;  %v648_v25 = vld [vmem:[%s828_s1 + $0xc8] sm:$0xff]   ;;  %v652_v29 = vld [vmem:[%s828_s1 + $0xc0] sm:$0xff]   ;;  %v662_v38 = vld [vmem:[%s828_s1 + $0x110] sm:$0xff]  }
   0xb   :  { %v649_v26 = vld [vmem:[%s828_s1 + $0x8] sm:$0xff]   ;;  %v653_v30 = vld [vmem:[%s828_s1] sm:$0xff]  }
   0xc   :  { %565 = vmatpush3.bf16.msra.mxu0 %v633_v10  ;;  %v650_v27 = vld [vmem:[%s828_s1 + $0x88] sm:$0xff]   ;;  %v654_v31 = vld [vmem:[%s828_s1 + $0x80] sm:$0xff]  }
   0xd   :  { %587 = vmatpush3.bf16.msra.mxu1 %v634_v11  ;;  %566 = vmatprep.subr.bf16.mxu0 %v635_v12  ;;  %v655_v32 = vld [vmem:[%s829_s0] ss:$20 sps:$4 sm:$0xff]   ;;  %v657_v33 = vld [vmem:[%s829_s0 + $0x4] ss:$20 sps:$4 sm:$0xff]   ;;  %v658_v35 = vld [vmem:[%s829_s0 + $0x8] ss:$20 sps:$4 sm:$0xff]  }
   0xe   :  { %588 = vmatprep.subr.bf16.mxu1 %v636_v13  ;;  %v660_v36 = vld [vmem:[%s829_s0 + $0xc] ss:$20 sps:$4 sm:$0xff]   ;;  %381 = vmatprep.mubr.bf16.mxu0 %v657_v33  ;;  %v665_v41 = vld [vmem:[%s829_s0 + $0x10] ss:$20 sps:$4 sm:$0xff]  }
   0xf   :  { %422 = vmatprep.mubr.bf16.mxu1 %v660_v36  ;;  %v663_v39 = vld [vmem:[%s828_s1 + $0x108] sm:$0xff]   ;;  %v664_v40 = vld [vmem:[%s828_s1 + $0x100] sm:$0xff]  }
  0x10   :  { %567 = vmatpush3.bf16.msra.mxu0 %v637_v14  ;;  %v550_v57 = vld [vmem:[%s830_s2] ss:$0 sm:$0xff]  ;;  %v491_v0 = vld [vmem:[%s831_s3 + $0x8] sm:$0xff] }
  0x11   :  { %589 = vmatpush3.bf16.msra.mxu1 %v638_v15  ;;  %568 = vmatprep.subr.bf16.mxu0 %v639_v16  ;;  %v490_v63 = vld [vmem:[%s831_s3] sm:$0xff] }
  0x12   :  { %590 = vmatprep.subr.bf16.mxu1 %v640_v17 }
  0x14   :  { %569 = vmatpush3.bf16.msra.mxu0 %v641_v18 }
  0x15   :  { %591 = vmatpush3.bf16.msra.mxu1 %v642_v19  ;;  %570 = vmatprep.subr.bf16.mxu0 %v643_v20 }
  0x16   :  { %592 = vmatprep.subr.bf16.mxu1 %v644_v21 }
  0x18   :  { %571 = vmatpush3.bf16.msra.mxu0 %v645_v22 }
  0x19   :  { %593 = vmatpush3.bf16.msra.mxu1 %v646_v23  ;;  %572 = vmatprep.subr.bf16.mxu0 %v647_v24 }
  0x1a   :  { %594 = vmatprep.subr.bf16.mxu1 %v648_v25 }
  0x1c   :  { %573 = vmatpush3.bf16.msra.mxu0 %v649_v26 }
  0x1d   :  { %595 = vmatpush3.bf16.msra.mxu1 %v650_v27  ;;  %574 = vmatprep.subr.bf16.mxu0 %v651_v28 }
  0x1e   :  { %596 = vmatprep.subr.bf16.mxu1 %v652_v29 }
  0x20   :  { %575 = vmatpush3.bf16.msra.mxu0 %v653_v30 }
  0x21   :  { %597 = vmatpush3.bf16.msra.mxu1 %v654_v31  ;;  %609 = vmatprep.subr.bf16.mxu0 %v666_v34 }
  0x23   :  { %382 = vmatmul.mubr.bf16.vlgmr.msra.gmra.mxu0 %v655_v32 }
  0x24   :  { %423 = vmatmul.mubr.bf16.vlgmr.msra.gmra.mxu1 %v658_v35  ;;  %610 = vmatpush3.bf16.msra.mxu0 %v661_v37 }
  0x25   :  { %611 = vmatprep.subr.bf16.mxu0 %v666_v34  ;;  %617 = vmatprep.mubr.msk.bf16.mxu0 %vm667_vm0, %v666_v34 }
  0x28   :  { %612 = vmatpush3.bf16.msra.mxu0 %v662_v38 }
  0x29   :  { %613 = vmatprep.subr.bf16.mxu0 %v666_v34 }
  0x2c   :  { %614 = vmatpush3.bf16.msra.mxu0 %v663_v39 }
  0x2d   :  { %615 = vmatprep.subr.bf16.mxu0 %v666_v34 }
  0x30   :  { %616 = vmatpush3.bf16.msra.mxu0 %v664_v40 }
  0x33   :  { %618 = vmatmul.mubr.msk.bf16.vlgmr.msra.gmra.mxu0 %vm345_vm1, %v665_v41 }
  0xe3   :  { %v576_v42 = vpop.f32.mrf.mxu0 }
  0xe4   :  { %v598_v43 = vpop.f32.mrf.mxu1 }
  0xe5   :  { %v577_v44 = vpop.f32.mrf.mxu0 }
  0xe6   :  { %v599_v45 = vpop.f32.mrf.mxu1  ;;  %v578_v48 = vadd.f32 %v577_v44, %v576_v42 }
  0xe7   :  { %v579_v46 = vpop.f32.mrf.mxu0  ;;  %v600_v49 = vadd.f32 %v599_v45, %v598_v43 }
  0xe8   :  { %v601_v47 = vpop.f32.mrf.mxu1 }
  0xe9   :  { %v580_v50 = vpop.f32.mrf.mxu0  ;;  %v425_v54 = vadd.f32 %v600_v49, %v578_v48 }
  0xea   :  { %v602_v51 = vpop.f32.mrf.mxu1  ;;  %v581_v52 = vadd.f32 %v580_v50, %v579_v46 }
  0xeb   :  { %v603_v53 = vadd.f32 %v602_v51, %v601_v47 }
  0xed   :  { %v428_v59 = vadd.f32 %v603_v53, %v581_v52 }
  0xf3   :  { %v465_v55 = vpop.f32.mrf.mxu0 }
  0xf4   :  { %v466_v56 = vadd.f32 %v465_v55, %v425_v54 }
  0xf5   :  { %v619_v58 = vpop.f32.mrf.mxu0 }
  0xf6   :  { %v488_v61 = vadd.f32 %v550_v57, %v466_v56 }
  0xf7   :  { %v468_v60 = vpop.f32.mrf.mxu0 }
  0xf8   :  { %v469_v62 = vadd.f32 %v468_v60, %v428_v59  ;;  %v492_v3 = vadd.f32 %v490_v63, %v488_v61 }
  0xf9   :  { %v620_v1 = vpop.f32.mrf.mxu0 }
  0xfa   :  { %v489_v2 = vadd.f32 %v550_v57, %v469_v62 }
  0xfc   :  { %v493_v4 = vadd.f32 %v491_v0, %v489_v2 }
  0xfe   :  { %v558_v5 = vpack.c.bf16 %v493_v4, %v492_v3 }
 0x100   :  { %559 = vst [vmem:[%s832_s4] sm:$0xff] %v558_v5  }

// kernel: discriminator_forward.31
= control target key start
LH: loop header
LB: loop body
LE: loop exit
PB: predicated region body
PF: predicated region fallthrough
CT: control target
= control target key end

     0   :  { %v191_v0 = vmov 0.0   ;;  %vm192_vm0 = vmmov 0   ;;  %v49_v10 = vlaneseq  ;;  %vm57_vm1 = vcmask 1041409   ;;  %s290_s1 = inlined_call_operand.vmem [shape: f32[128,1], index: 1, kind: input, shape index: {}]   ;;  %s291_s2 = inlined_call_operand.<no memory space> [shape: f32[1,1], index: 2, kind: input, shape index: {}]   ;;  %s292_s0 = inlined_call_operand.vmem [shape: bf16[2,1,128], index: 0, kind: input, shape index: {}]   ;;  %s293_s3 = inlined_call_operand.vmem [shape: f32[2,1], index: 3, kind: output, shape index: {}]  }
   0x1   :  { %154 = vmatprep.subr.mxu0 %v191_v0  ;;  %v39_v1 = vld [vmem:[%s290_s1 + $0x78] sm:$0xff]  ;;  %v38_v2 = vld [vmem:[%s290_s1 + $0x70] sm:$0xff]  ;;  %186 = vmatprep.mubr.msk.f32.mxu0 %vm192_vm0, %v191_v0  ;;  %v8_v3 = vstv %s291_s2  ;;  %v37_v4 = vld [vmem:[%s290_s1 + $0x68] sm:$0xff]  ;;  %vm130_vm2 = vcmask 1024  }
   0x2   :  { %155 = vmatpush3.msra.mxu0 %v39_v1  ;;  %9 = vst [vmem:[#allocation2] sm:$0x1] %v8_v3  ;;  %v36_v5 = vld [vmem:[%s290_s1 + $0x60] sm:$0xff]  ;;  %v35_v6 = vld [vmem:[%s290_s1 + $0x58] sm:$0xff]  ;;  %v34_v7 = vld [vmem:[%s290_s1 + $0x50] sm:$0xff]  ;;  %v50_v17 = vshrl.u32 %v49_v10, 7 }
   0x3   :  { %156 = vmatprep.subr.mxu0 %v191_v0  ;;  %v33_v8 = vld [vmem:[%s290_s1 + $0x48] sm:$0xff]  ;;  %v32_v9 = vld [vmem:[%s290_s1 + $0x40] sm:$0xff]  ;;  %v31_v11 = vld [vmem:[%s290_s1 + $0x38] sm:$0xff] }
   0x4   :  { %157 = vmatpush3.msra.mxu0 %v38_v2  ;;  %v16_v12 = vld [vmem:[%s292_s0] sm:$0x1]  ;;  %v17_v13 = vld [vmem:[%s292_s0 + $0x1] sm:$0x1]  ;;  %v30_v14 = vld [vmem:[%s290_s1 + $0x30] sm:$0xff]  ;;  %v51_v22 = vsub.s32 0, %v50_v17 }
   0x5   :  { %158 = vmatprep.subr.mxu0 %v191_v0  ;;  %v18_v15 = vunpack.c.l.bf16 %v16_v12  ;;  %v19_v16 = vunpack.c.l.bf16 %v17_v13  ;;  %v29_v18 = vld [vmem:[%s290_s1 + $0x28] sm:$0xff]  ;;  %v28_v19 = vld [vmem:[%s290_s1 + $0x20] sm:$0xff]  ;;  %v27_v23 = vld [vmem:[%s290_s1 + $0x18] sm:$0xff] }
   0x6   :  { %159 = vmatpush3.msra.mxu0 %v37_v4  ;;  %v26_v24 = vld [vmem:[%s290_s1 + $0x10] sm:$0xff]  ;;  %v25_v27 = vld [vmem:[%s290_s1 + $0x8] sm:$0xff]  ;;  %v24_v28 = vld [vmem:[%s290_s1] sm:$0xff] }
   0x7   :  { %160 = vmatprep.subr.mxu0 %v191_v0  ;;  %v20_v20 = vmax.f32 %v18_v15, 0.0  ;;  %v21_v21 = vmax.f32 %v19_v16, 0.0 }
   0x8   :  { %161 = vmatpush3.msra.mxu0 %v36_v5 }
   0x9   :  { %162 = vmatprep.subr.mxu0 %v191_v0  ;;  %v52_v25 = vrot.slane %v20_v20, %v51_v22  ;;  %v56_v26 = vrot.slane %v21_v21, %v51_v22  ;;  %v136_v30 = vld [vmem:[#allocation2] ss:$0 sm:$0xff] }
   0xa   :  { %163 = vmatpush3.msra.mxu0 %v35_v6 }
   0xb   :  { %164 = vmatprep.subr.mxu0 %v191_v0  ;;  %v58_v29 = vsel %vm57_vm1, %v56_v26, %v52_v25 }
   0xc   :  { %165 = vmatpush3.msra.mxu0 %v34_v7 }
   0xd   :  { %166 = vmatprep.subr.mxu0 %v191_v0 }
   0xe   :  { %167 = vmatpush3.msra.mxu0 %v33_v8 }
   0xf   :  { %168 = vmatprep.subr.mxu0 %v191_v0 }
  0x10   :  { %169 = vmatpush3.msra.mxu0 %v32_v9 }
  0x11   :  { %170 = vmatprep.subr.mxu0 %v191_v0 }
  0x12   :  { %171 = vmatpush3.msra.mxu0 %v31_v11 }
  0x13   :  { %172 = vmatprep.subr.mxu0 %v191_v0 }
  0x14   :  { %173 = vmatpush3.msra.mxu0 %v30_v14 }
  0x15   :  { %174 = vmatprep.subr.mxu0 %v191_v0 }
  0x16   :  { %175 = vmatpush3.msra.mxu0 %v29_v18 }
  0x17   :  { %176 = vmatprep.subr.mxu0 %v191_v0 }
  0x18   :  { %177 = vmatpush3.msra.mxu0 %v28_v19 }
  0x19   :  { %178 = vmatprep.subr.mxu0 %v191_v0 }
  0x1a   :  { %179 = vmatpush3.msra.mxu0 %v27_v23 }
  0x1b   :  { %180 = vmatprep.subr.mxu0 %v191_v0 }
  0x1c   :  { %181 = vmatpush3.msra.mxu0 %v26_v24 }
  0x1d   :  { %182 = vmatprep.subr.mxu0 %v191_v0 }
  0x1e   :  { %183 = vmatpush3.msra.mxu0 %v25_v27 }
  0x1f   :  { %184 = vmatprep.subr.mxu0 %v191_v0 }
  0x20   :  { %185 = vmatpush3.msra.mxu0 %v24_v28 }
  0x21   :  { %187 = vmatmul.mubr.f32.vlgmr.msra.gmra.mxu0 %v58_v29 }
  0xe1   :  { %v126_v31 = vpop.f32.mrf.mxu0 }
  0xe2   :  { %v127_v32 = vadd.f32 %v136_v30, %v126_v31 }
  0xe3   :  { %v188_v33 = vpop.f32.mrf.mxu0 }
  0xe4   :  { %131 = vst.msk [vmem:[%s293_s3] sm:$0x3] %vm130_vm2, %v127_v32 }

// kernel: discriminator_forward.29
= control target key start
LH: loop header
LB: loop body
LE: loop exit
PB: predicated region body
PF: predicated region fallthrough
CT: control target
= control target key end

     0   :  { %v661_v34 = vmov 0.0   ;;  %vm662_vm0 = vmmov 0   ;;  %vm342_vm1 = vcmask 523264   ;;  %s812_s1 = inlined_call_operand.vmem [shape: bf16[576,128], index: 1, kind: input, shape index: {}]   ;;  %s813_s0 = inlined_call_operand.vmem [shape: bf16[16,576], index: 0, kind: input, shape index: {}]   ;;  %s814_s2 = inlined_call_operand.vmem [shape: f32[1,128], index: 2, kind: input, shape index: {}]   ;;  %s815_s3 = inlined_call_operand.vmem [shape: bf16[16,128], index: 3, kind: output, shape index: {}]  }
   0x1   :  { %v618_v0 = vld [vmem:[%s812_s1 + $0x78] sm:$0xff]   ;;  %v622_v4 = vld [vmem:[%s812_s1 + $0x70] sm:$0xff]   ;;  %v626_v8 = vld [vmem:[%s812_s1 + $0x68] sm:$0xff]  }
   0x2   :  { %v619_v1 = vld [vmem:[%s812_s1 + $0xf8] sm:$0xff]   ;;  %555 = vmatprep.subr.bf16.mxu0 %v618_v0  ;;  %v623_v5 = vld [vmem:[%s812_s1 + $0xf0] sm:$0xff]   ;;  %v627_v9 = vld [vmem:[%s812_s1 + $0xe8] sm:$0xff]  }
   0x3   :  { %v620_v2 = vld [vmem:[%s812_s1 + $0x38] sm:$0xff]   ;;  %577 = vmatprep.subr.bf16.mxu1 %v619_v1  ;;  %v624_v6 = vld [vmem:[%s812_s1 + $0x30] sm:$0xff]   ;;  %v628_v10 = vld [vmem:[%s812_s1 + $0x28] sm:$0xff]  }
   0x4   :  { %v621_v3 = vld [vmem:[%s812_s1 + $0xb8] sm:$0xff]   ;;  %556 = vmatpush3.bf16.msra.mxu0 %v620_v2  ;;  %v625_v7 = vld [vmem:[%s812_s1 + $0xb0] sm:$0xff]   ;;  %v629_v11 = vld [vmem:[%s812_s1 + $0xa8] sm:$0xff]  }
   0x5   :  { %578 = vmatpush3.bf16.msra.mxu1 %v621_v3  ;;  %557 = vmatprep.subr.bf16.mxu0 %v622_v4  ;;  %v630_v12 = vld [vmem:[%s812_s1 + $0x60] sm:$0xff]   ;;  %v634_v16 = vld [vmem:[%s812_s1 + $0x58] sm:$0xff]   ;;  %v638_v20 = vld [vmem:[%s812_s1 + $0x50] sm:$0xff]  }
   0x6   :  { %579 = vmatprep.subr.bf16.mxu1 %v623_v5  ;;  %v631_v13 = vld [vmem:[%s812_s1 + $0xe0] sm:$0xff]   ;;  %v635_v17 = vld [vmem:[%s812_s1 + $0xd8] sm:$0xff]   ;;  %v639_v21 = vld [vmem:[%s812_s1 + $0xd0] sm:$0xff]  }
   0x7   :  { %v632_v14 = vld [vmem:[%s812_s1 + $0x20] sm:$0xff]   ;;  %v636_v18 = vld [vmem:[%s812_s1 + $0x18] sm:$0xff]   ;;  %v640_v22 = vld [vmem:[%s812_s1 + $0x10] sm:$0xff]  }
   0x8   :  { %558 = vmatpush3.bf16.msra.mxu0 %v624_v6  ;;  %v633_v15 = vld [vmem:[%s812_s1 + $0xa0] sm:$0xff]   ;;  %v637_v19 = vld [vmem:[%s812_s1 + $0x98] sm:$0xff]   ;;  %v641_v23 = vld [vmem:[%s812_s1 + $0x90] sm:$0xff]  }
   0x9   :  { %580 = vmatpush3.bf16.msra.mxu1 %v625_v7  ;;  %559 = vmatprep.subr.bf16.mxu0 %v626_v8  ;;  %v642_v24 = vld [vmem:[%s812_s1 + $0x48] sm:$0xff]   ;;  %v646_v28 = vld [vmem:[%s812_s1 + $0x40] sm:$0xff]   ;;  %v656_v37 = vld [vmem:[%s812_s1 + $0x118] sm:$0xff]  }
   0xa   :  { %581 = vmatprep.subr.bf16.mxu1 %v627_v9  ;;  %v643_v25 = vld [vmem:[%s812_s1 + $0xc8] sm:$0xff]   ;;  %v647_v29 = vld [vmem:[%s812_s1 + $0xc0] sm:$0xff]   ;;  %v657_v38 = vld [vmem:[%s812_s1 + $0x110] sm:$0xff]  }
   0xb   :  { %v644_v26 = vld [vmem:[%s812_s1 + $0x8] sm:$0xff]   ;;  %v648_v30 = vld [vmem:[%s812_s1] sm:$0xff]  }
   0xc   :  { %560 = vmatpush3.bf16.msra.mxu0 %v628_v10  ;;  %v645_v27 = vld [vmem:[%s812_s1 + $0x88] sm:$0xff]   ;;  %v649_v31 = vld [vmem:[%s812_s1 + $0x80] sm:$0xff]  }
   0xd   :  { %582 = vmatpush3.bf16.msra.mxu1 %v629_v11  ;;  %561 = vmatprep.subr.bf16.mxu0 %v630_v12  ;;  %v650_v32 = vld [vmem:[%s813_s0] ss:$20 sps:$4 sm:$0xff]   ;;  %v652_v33 = vld [vmem:[%s813_s0 + $0x4] ss:$20 sps:$4 sm:$0xff]   ;;  %v653_v35 = vld [vmem:[%s813_s0 + $0x8] ss:$20 sps:$4 sm:$0xff]  }
   0xe   :  { %583 = vmatprep.subr.bf16.mxu1 %v631_v13  ;;  %v655_v36 = vld [vmem:[%s813_s0 + $0xc] ss:$20 sps:$4 sm:$0xff]   ;;  %378 = vmatprep.mubr.bf16.mxu0 %v652_v33  ;;  %v660_v41 = vld [vmem:[%s813_s0 + $0x10] ss:$20 sps:$4 sm:$0xff]  }
   0xf   :  { %419 = vmatprep.mubr.bf16.mxu1 %v655_v36  ;;  %v658_v39 = vld [vmem:[%s812_s1 + $0x108] sm:$0xff]   ;;  %v659_v40 = vld [vmem:[%s812_s1 + $0x100] sm:$0xff]  }
  0x10   :  { %562 = vmatpush3.bf16.msra.mxu0 %v632_v14  ;;  %v545_v57 = vld [vmem:[%s814_s2] ss:$0 sm:$0xff] }
  0x11   :  { %584 = vmatpush3.bf16.msra.mxu1 %v633_v15  ;;  %563 = vmatprep.subr.bf16.mxu0 %v634_v16 }
  0x12   :  { %585 = vmatprep.subr.bf16.mxu1 %v635_v17 }
  0x14   :  { %564 = vmatpush3.bf16.msra.mxu0 %v636_v18 }
  0x15   :  { %586 = vmatpush3.bf16.msra.mxu1 %v637_v19  ;;  %565 = vmatprep.subr.bf16.mxu0 %v638_v20 }
  0x16   :  { %587 = vmatprep.subr.bf16.mxu1 %v639_v21 }
  0x18   :  { %566 = vmatpush3.bf16.msra.mxu0 %v640_v22 }
  0x19   :  { %588 = vmatpush3.bf16.msra.mxu1 %v641_v23  ;;  %567 = vmatprep.subr.bf16.mxu0 %v642_v24 }
  0x1a   :  { %589 = vmatprep.subr.bf16.mxu1 %v643_v25 }
  0x1c   :  { %568 = vmatpush3.bf16.msra.mxu0 %v644_v26 }
  0x1d   :  { %590 = vmatpush3.bf16.msra.mxu1 %v645_v27  ;;  %569 = vmatprep.subr.bf16.mxu0 %v646_v28 }
  0x1e   :  { %591 = vmatprep.subr.bf16.mxu1 %v647_v29 }
  0x20   :  { %570 = vmatpush3.bf16.msra.mxu0 %v648_v30 }
  0x21   :  { %592 = vmatpush3.bf16.msra.mxu1 %v649_v31  ;;  %604 = vmatprep.subr.bf16.mxu0 %v661_v34 }
  0x23   :  { %379 = vmatmul.mubr.bf16.vlgmr.msra.gmra.mxu0 %v650_v32 }
  0x24   :  { %420 = vmatmul.mubr.bf16.vlgmr.msra.gmra.mxu1 %v653_v35  ;;  %605 = vmatpush3.bf16.msra.mxu0 %v656_v37 }
  0x25   :  { %606 = vmatprep.subr.bf16.mxu0 %v661_v34  ;;  %612 = vmatprep.mubr.msk.bf16.mxu0 %vm662_vm0, %v661_v34 }
  0x28   :  { %607 = vmatpush3.bf16.msra.mxu0 %v657_v38 }
  0x29   :  { %608 = vmatprep.subr.bf16.mxu0 %v661_v34 }
  0x2c   :  { %609 = vmatpush3.bf16.msra.mxu0 %v658_v39 }
  0x2d   :  { %610 = vmatprep.subr.bf16.mxu0 %v661_v34 }
  0x30   :  { %611 = vmatpush3.bf16.msra.mxu0 %v659_v40 }
  0x33   :  { %613 = vmatmul.mubr.msk.bf16.vlgmr.msra.gmra.mxu0 %vm342_vm1, %v660_v41 }
  0xe3   :  { %v571_v42 = vpop.f32.mrf.mxu0 }
  0xe4   :  { %v593_v43 = vpop.f32.mrf.mxu1 }
  0xe5   :  { %v572_v44 = vpop.f32.mrf.mxu0 }
  0xe6   :  { %v594_v45 = vpop.f32.mrf.mxu1  ;;  %v573_v48 = vadd.f32 %v572_v44, %v571_v42 }
  0xe7   :  { %v574_v46 = vpop.f32.mrf.mxu0  ;;  %v595_v49 = vadd.f32 %v594_v45, %v593_v43 }
  0xe8   :  { %v596_v47 = vpop.f32.mrf.mxu1 }
  0xe9   :  { %v575_v50 = vpop.f32.mrf.mxu0  ;;  %v422_v54 = vadd.f32 %v595_v49, %v573_v48 }
  0xea   :  { %v597_v51 = vpop.f32.mrf.mxu1  ;;  %v576_v52 = vadd.f32 %v575_v50, %v574_v46 }
  0xeb   :  { %v598_v53 = vadd.f32 %v597_v51, %v596_v47 }
  0xed   :  { %v425_v59 = vadd.f32 %v598_v53, %v576_v52 }
  0xf3   :  { %v462_v55 = vpop.f32.mrf.mxu0 }
  0xf4   :  { %v463_v56 = vadd.f32 %v462_v55, %v422_v54 }
  0xf5   :  { %v614_v58 = vpop.f32.mrf.mxu0 }
  0xf6   :  { %v485_v61 = vadd.f32 %v545_v57, %v463_v56 }
  0xf7   :  { %v465_v60 = vpop.f32.mrf.mxu0 }
  0xf8   :  { %v466_v62 = vadd.f32 %v465_v60, %v425_v59  ;;  %v487_v1 = vmax.f32 %v485_v61, 0.0 }
  0xf9   :  { %v615_v63 = vpop.f32.mrf.mxu0 }
  0xfa   :  { %v486_v0 = vadd.f32 %v545_v57, %v466_v62 }
  0xfc   :  { %v488_v2 = vmax.f32 %v486_v0, 0.0 }
  0xfe   :  { %v553_v3 = vpack.c.bf16 %v488_v2, %v487_v1 }
 0x100   :  { %554 = vst [vmem:[%s815_s3] sm:$0xff] %v553_v3  }

// kernel: discriminator_forward.30
= control target key start
LH: loop header
LB: loop body
LE: loop exit
PB: predicated region body
PF: predicated region fallthrough
CT: control target
= control target key end

     0   :  { %vm1195_vm0 = vmmov 0   ;;  %s1476_s1 = inlined_call_operand.vmem [shape: bf16[1152,128], index: 1, kind: input, shape index: {}]   ;;  %s1477_s0 = inlined_call_operand.vmem [shape: bf16[16,1152], index: 0, kind: input, shape index: {}]   ;;  %s1478_s2 = inlined_call_operand.vmem [shape: f32[1,128], index: 2, kind: input, shape index: {}]   ;;  %s1479_s3 = inlined_call_operand.vmem [shape: f32[16,128], index: 3, kind: input, shape index: {}]   ;;  %s1480_s4 = inlined_call_operand.vmem [shape: bf16[16,128], index: 4, kind: output, shape index: {}]  }
   0x1   :  { %v1109_v0 = vld [vmem:[%s1476_s1 + $0x78] sm:$0xff]   ;;  %v1113_v4 = vld [vmem:[%s1476_s1 + $0x70] sm:$0xff]   ;;  %v1117_v8 = vld [vmem:[%s1476_s1 + $0x68] sm:$0xff]  }
   0x2   :  { %v1110_v1 = vld [vmem:[%s1476_s1 + $0xf8] sm:$0xff]   ;;  %990 = vmatprep.subr.bf16.mxu0 %v1109_v0  ;;  %v1114_v5 = vld [vmem:[%s1476_s1 + $0xf0] sm:$0xff]   ;;  %v1118_v9 = vld [vmem:[%s1476_s1 + $0xe8] sm:$0xff]  }
   0x3   :  { %v1111_v2 = vld [vmem:[%s1476_s1 + $0x38] sm:$0xff]   ;;  %1012 = vmatprep.subr.bf16.mxu1 %v1110_v1  ;;  %v1115_v6 = vld [vmem:[%s1476_s1 + $0x30] sm:$0xff]   ;;  %v1119_v10 = vld [vmem:[%s1476_s1 + $0x28] sm:$0xff]  }
   0x4   :  { %v1112_v3 = vld [vmem:[%s1476_s1 + $0xb8] sm:$0xff]   ;;  %991 = vmatpush3.bf16.msra.mxu0 %v1111_v2  ;;  %v1116_v7 = vld [vmem:[%s1476_s1 + $0xb0] sm:$0xff]   ;;  %v1120_v11 = vld [vmem:[%s1476_s1 + $0xa8] sm:$0xff]  }
   0x5   :  { %1013 = vmatpush3.bf16.msra.mxu1 %v1112_v3  ;;  %992 = vmatprep.subr.bf16.mxu0 %v1113_v4  ;;  %v1121_v12 = vld [vmem:[%s1476_s1 + $0x60] sm:$0xff]   ;;  %v1125_v16 = vld [vmem:[%s1476_s1 + $0x58] sm:$0xff]   ;;  %v1129_v20 = vld [vmem:[%s1476_s1 + $0x50] sm:$0xff]  }
   0x6   :  { %1014 = vmatprep.subr.bf16.mxu1 %v1114_v5  ;;  %v1122_v13 = vld [vmem:[%s1476_s1 + $0xe0] sm:$0xff]   ;;  %v1126_v17 = vld [vmem:[%s1476_s1 + $0xd8] sm:$0xff]   ;;  %v1130_v21 = vld [vmem:[%s1476_s1 + $0xd0] sm:$0xff]  }
   0x7   :  { %v1123_v14 = vld [vmem:[%s1476_s1 + $0x20] sm:$0xff]   ;;  %v1127_v18 = vld [vmem:[%s1476_s1 + $0x18] sm:$0xff]   ;;  %v1131_v22 = vld [vmem:[%s1476_s1 + $0x10] sm:$0xff]  }
   0x8   :  { %993 = vmatpush3.bf16.msra.mxu0 %v1115_v6  ;;  %v1124_v15 = vld [vmem:[%s1476_s1 + $0xa0] sm:$0xff]   ;;  %v1128_v19 = vld [vmem:[%s1476_s1 + $0x98] sm:$0xff]   ;;  %v1132_v23 = vld [vmem:[%s1476_s1 + $0x90] sm:$0xff]   ;;  %v1194_v6 = vmov 0.0  }
   0x9   :  { %1015 = vmatpush3.bf16.msra.mxu1 %v1116_v7  ;;  %994 = vmatprep.subr.bf16.mxu0 %v1117_v8  ;;  %v1133_v24 = vld [vmem:[%s1476_s1 + $0x48] sm:$0xff]   ;;  %v1137_v28 = vld [vmem:[%s1476_s1 + $0x40] sm:$0xff]   ;;  %v1147_v36 = vld [vmem:[%s1476_s1 + $0x178] sm:$0xff]  }
   0xa   :  { %1016 = vmatprep.subr.bf16.mxu1 %v1118_v9  ;;  %v1134_v25 = vld [vmem:[%s1476_s1 + $0xc8] sm:$0xff]   ;;  %v1138_v29 = vld [vmem:[%s1476_s1 + $0xc0] sm:$0xff]   ;;  %v1148_v37 = vld [vmem:[%s1476_s1 + $0x138] sm:$0xff]  }
   0xb   :  { %v1135_v26 = vld [vmem:[%s1476_s1 + $0x8] sm:$0xff]   ;;  %v1139_v30 = vld [vmem:[%s1476_s1] sm:$0xff]   ;;  %v1149_v38 = vld [vmem:[%s1476_s1 + $0x1f8] sm:$0xff]  }
   0xc   :  { %995 = vmatpush3.bf16.msra.mxu0 %v1119_v10  ;;  %v1136_v27 = vld [vmem:[%s1476_s1 + $0x88] sm:$0xff]   ;;  %v1140_v31 = vld [vmem:[%s1476_s1 + $0x80] sm:$0xff]   ;;  %v1150_v39 = vld [vmem:[%s1476_s1 + $0x1b8] sm:$0xff]  }
   0xd   :  { %1017 = vmatpush3.bf16.msra.mxu1 %v1120_v11  ;;  %996 = vmatprep.subr.bf16.mxu0 %v1121_v12  ;;  %v1141_v32 = vld [vmem:[%s1477_s0] ss:$36 sps:$4 sm:$0xff]   ;;  %v1144_v34 = vld [vmem:[%s1477_s0 + $0x8] ss:$36 sps:$4 sm:$0xff]   ;;  %v1151_v40 = vld [vmem:[%s1476_s1 + $0x170] sm:$0xff]  }
   0xe   :  { %1018 = vmatprep.subr.bf16.mxu1 %v1122_v13  ;;  %v1143_v33 = vld [vmem:[%s1477_s0 + $0x4] ss:$36 sps:$4 sm:$0xff]   ;;  %v1146_v35 = vld [vmem:[%s1477_s0 + $0xc] ss:$36 sps:$4 sm:$0xff]   ;;  %v1163_v52 = vld [vmem:[%s1476_s1 + $0x158] sm:$0xff]  }
   0xf   :  { %690 = vmatprep.mubr.bf16.mxu0 %v1143_v33  ;;  %731 = vmatprep.mubr.bf16.mxu1 %v1146_v35  ;;  %v1152_v41 = vld [vmem:[%s1476_s1 + $0x130] sm:$0xff]   ;;  %v1155_v44 = vld [vmem:[%s1476_s1 + $0x168] sm:$0xff]   ;;  %v1159_v48 = vld [vmem:[%s1476_s1 + $0x160] sm:$0xff]  }
  0x10   :  { %997 = vmatpush3.bf16.msra.mxu0 %v1123_v14  ;;  %v1153_v42 = vld [vmem:[%s1476_s1 + $0x1f0] sm:$0xff]   ;;  %v1156_v45 = vld [vmem:[%s1476_s1 + $0x128] sm:$0xff]   ;;  %v1160_v49 = vld [vmem:[%s1476_s1 + $0x120] sm:$0xff]  }
  0x11   :  { %1019 = vmatpush3.bf16.msra.mxu1 %v1124_v15  ;;  %998 = vmatprep.subr.bf16.mxu0 %v1125_v16  ;;  %v1154_v43 = vld [vmem:[%s1476_s1 + $0x1b0] sm:$0xff]   ;;  %v1157_v46 = vld [vmem:[%s1476_s1 + $0x1e8] sm:$0xff]   ;;  %v1161_v50 = vld [vmem:[%s1476_s1 + $0x1e0] sm:$0xff]  }
  0x12   :  { %1020 = vmatprep.subr.bf16.mxu1 %v1126_v17  ;;  %v1158_v47 = vld [vmem:[%s1476_s1 + $0x1a8] sm:$0xff]   ;;  %v1162_v51 = vld [vmem:[%s1476_s1 + $0x1a0] sm:$0xff]   ;;  %v1164_v53 = vld [vmem:[%s1476_s1 + $0x118] sm:$0xff]  }
  0x13   :  { %v1165_v54 = vld [vmem:[%s1476_s1 + $0x1d8] sm:$0xff]   ;;  %v1167_v56 = vld [vmem:[%s1476_s1 + $0x150] sm:$0xff]   ;;  %v1171_v60 = vld [vmem:[%s1476_s1 + $0x148] sm:$0xff]  }
  0x14   :  { %999 = vmatpush3.bf16.msra.mxu0 %v1127_v18  ;;  %v1166_v55 = vld [vmem:[%s1476_s1 + $0x198] sm:$0xff]   ;;  %v1168_v57 = vld [vmem:[%s1476_s1 + $0x110] sm:$0xff]   ;;  %v1172_v61 = vld [vmem:[%s1476_s1 + $0x108] sm:$0xff]  }
  0x15   :  { %1021 = vmatpush3.bf16.msra.mxu1 %v1128_v19  ;;  %1000 = vmatprep.subr.bf16.mxu0 %v1129_v20  ;;  %v1169_v58 = vld [vmem:[%s1476_s1 + $0x1d0] sm:$0xff]   ;;  %v1173_v62 = vld [vmem:[%s1476_s1 + $0x1c8] sm:$0xff]   ;;  %v1175_v0 = vld [vmem:[%s1476_s1 + $0x140] sm:$0xff]  }
  0x16   :  { %1022 = vmatprep.subr.bf16.mxu1 %v1130_v21  ;;  %v1170_v59 = vld [vmem:[%s1476_s1 + $0x190] sm:$0xff]   ;;  %v1174_v63 = vld [vmem:[%s1476_s1 + $0x188] sm:$0xff]   ;;  %v1176_v1 = vld [vmem:[%s1476_s1 + $0x100] sm:$0xff]  }
  0x17   :  { %v1177_v2 = vld [vmem:[%s1476_s1 + $0x1c0] sm:$0xff]   ;;  %v1178_v3 = vld [vmem:[%s1477_s0 + $0x10] ss:$36 sps:$4 sm:$0xff]   ;;  %v1182_v7 = vld [vmem:[%s1477_s0 + $0x18] ss:$36 sps:$4 sm:$0xff]  }
  0x18   :  { %1001 = vmatpush3.bf16.msra.mxu0 %v1131_v22  ;;  %v1180_v4 = vld [vmem:[%s1477_s0 + $0x14] ss:$36 sps:$4 sm:$0xff]   ;;  %v1181_v5 = vld [vmem:[%s1476_s1 + $0x180] sm:$0xff]   ;;  %v1187_v11 = vld [vmem:[%s1476_s1 + $0x228] sm:$0xff]  }
  0x19   :  { %1023 = vmatpush3.bf16.msra.mxu1 %v1132_v23  ;;  %1002 = vmatprep.subr.bf16.mxu0 %v1133_v24  ;;  %v1184_v8 = vld [vmem:[%s1477_s0 + $0x1c] ss:$36 sps:$4 sm:$0xff]   ;;  %v1186_v10 = vld [vmem:[%s1476_s1 + $0x230] sm:$0xff]   ;;  %v1191_v15 = vld [vmem:[%s1476_s1 + $0x208] sm:$0xff]  }
  0x1a   :  { %1024 = vmatprep.subr.bf16.mxu1 %v1134_v25  ;;  %v1185_v9 = vld [vmem:[%s1476_s1 + $0x238] sm:$0xff]   ;;  %v1188_v12 = vld [vmem:[%s1476_s1 + $0x220] sm:$0xff]   ;;  %v1190_v14 = vld [vmem:[%s1476_s1 + $0x210] sm:$0xff]  }
  0x1b   :  { %v1189_v13 = vld [vmem:[%s1476_s1 + $0x218] sm:$0xff]   ;;  %v1192_v16 = vld [vmem:[%s1476_s1 + $0x200] sm:$0xff]  }
  0x1c   :  { %1003 = vmatpush3.bf16.msra.mxu0 %v1135_v26  ;;  %v1193_v17 = vld [vmem:[%s1477_s0 + $0x20] ss:$36 sps:$4 sm:$0xff]  }
  0x1d   :  { %1025 = vmatpush3.bf16.msra.mxu1 %v1136_v27  ;;  %1004 = vmatprep.subr.bf16.mxu0 %v1137_v28 }
  0x1e   :  { %1026 = vmatprep.subr.bf16.mxu1 %v1138_v29 }
  0x20   :  { %1005 = vmatpush3.bf16.msra.mxu0 %v1139_v30 }
  0x21   :  { %1027 = vmatpush3.bf16.msra.mxu1 %v1140_v31  ;;  %1034 = vmatprep.subr.bf16.mxu0 %v1147_v36 }
  0x22   :  { %1056 = vmatprep.subr.bf16.mxu1 %v1149_v38 }
  0x23   :  { %691 = vmatmul.mubr.bf16.vlgmr.msra.gmra.mxu0 %v1141_v32 }
  0x24   :  { %732 = vmatmul.mubr.bf16.vlgmr.msra.gmra.mxu1 %v1144_v34  ;;  %1035 = vmatpush3.bf16.msra.mxu0 %v1148_v37 }
  0x25   :  { %1057 = vmatpush3.bf16.msra.mxu1 %v1150_v39  ;;  %1036 = vmatprep.subr.bf16.mxu0 %v1151_v40 }
  0x26   :  { %1058 = vmatprep.subr.bf16.mxu1 %v1153_v42  ;;  %772 = vmatprep.mubr.bf16.mxu0 %v1180_v4 }
  0x27   :  { %813 = vmatprep.mubr.bf16.mxu1 %v1184_v8 }
  0x28   :  { %1037 = vmatpush3.bf16.msra.mxu0 %v1152_v41 }
  0x29   :  { %1059 = vmatpush3.bf16.msra.mxu1 %v1154_v43  ;;  %1038 = vmatprep.subr.bf16.mxu0 %v1155_v44 }
  0x2a   :  { %1060 = vmatprep.subr.bf16.mxu1 %v1157_v46 }
  0x2c   :  { %1039 = vmatpush3.bf16.msra.mxu0 %v1156_v45 }
  0x2d   :  { %1061 = vmatpush3.bf16.msra.mxu1 %v1158_v47  ;;  %1040 = vmatprep.subr.bf16.mxu0 %v1159_v48 }
  0x2e   :  { %1062 = vmatprep.subr.bf16.mxu1 %v1161_v50 }
  0x30   :  { %1041 = vmatpush3.bf16.msra.mxu0 %v1160_v49  ;;  %v980_v49 = vld [vmem:[%s1478_s2] ss:$0 sm:$0xff] }
  0x31   :  { %1063 = vmatpush3.bf16.msra.mxu1 %v1162_v51  ;;  %1042 = vmatprep.subr.bf16.mxu0 %v1163_v52 }
  0x32   :  { %1064 = vmatprep.subr.bf16.mxu1 %v1165_v54 }
  0x34   :  { %1043 = vmatpush3.bf16.msra.mxu0 %v1164_v53 }
  0x35   :  { %1065 = vmatpush3.bf16.msra.mxu1 %v1166_v55  ;;  %1044 = vmatprep.subr.bf16.mxu0 %v1167_v56  ;;  %v881_v55 = vld [vmem:[%s1479_s3] sm:$0xff]  ;;  %v882_v56 = vld [vmem:[%s1479_s3 + $0x8] sm:$0xff] }
  0x36   :  { %1066 = vmatprep.subr.bf16.mxu1 %v1169_v58 }
  0x38   :  { %1045 = vmatpush3.bf16.msra.mxu0 %v1168_v57 }
  0x39   :  { %1067 = vmatpush3.bf16.msra.mxu1 %v1170_v59  ;;  %1046 = vmatprep.subr.bf16.mxu0 %v1171_v60 }
  0x3a   :  { %1068 = vmatprep.subr.bf16.mxu1 %v1173_v62 }
  0x3c   :  { %1047 = vmatpush3.bf16.msra.mxu0 %v1172_v61 }
  0x3d   :  { %1069 = vmatpush3.bf16.msra.mxu1 %v1174_v63  ;;  %1048 = vmatprep.subr.bf16.mxu0 %v1175_v0 }
  0x3e   :  { %1070 = vmatprep.subr.bf16.mxu1 %v1177_v2 }
  0x40   :  { %1049 = vmatpush3.bf16.msra.mxu0 %v1176_v1 }
  0x41   :  { %1087 = vmatprep.subr.bf16.mxu0 %v1194_v6  ;;  %1071 = vmatpush3.bf16.msra.mxu1 %v1181_v5 }
  0x43   :  { %773 = vmatmul.mubr.bf16.vlgmr.msra.gmra.mxu0 %v1178_v3 }
  0x44   :  { %1103 = vmatprep.mubr.msk.bf16.mxu0 %vm1195_vm0, %v1194_v6  ;;  %1088 = vmatpush3.bf16.msra.mxu0 %v1185_v9 }
  0x45   :  { %814 = vmatmul.mubr.bf16.vlgmr.msra.gmra.mxu1 %v1182_v7  ;;  %1089 = vmatprep.subr.bf16.mxu0 %v1194_v6 }
  0x48   :  { %1090 = vmatpush3.bf16.msra.mxu0 %v1186_v10 }
  0x49   :  { %1091 = vmatprep.subr.bf16.mxu0 %v1194_v6 }
  0x4c   :  { %1092 = vmatpush3.bf16.msra.mxu0 %v1187_v11 }
  0x4d   :  { %1093 = vmatprep.subr.bf16.mxu0 %v1194_v6 }
  0x50   :  { %1094 = vmatpush3.bf16.msra.mxu0 %v1188_v12 }
  0x51   :  { %1095 = vmatprep.subr.bf16.mxu0 %v1194_v6 }
  0x54   :  { %1096 = vmatpush3.bf16.msra.mxu0 %v1189_v13 }
  0x55   :  { %1097 = vmatprep.subr.bf16.mxu0 %v1194_v6 }
  0x58   :  { %1098 = vmatpush3.bf16.msra.mxu0 %v1190_v14 }
  0x59   :  { %1099 = vmatprep.subr.bf16.mxu0 %v1194_v6 }
  0x5c   :  { %1100 = vmatpush3.bf16.msra.mxu0 %v1191_v15 }
  0x5d   :  { %1101 = vmatprep.subr.bf16.mxu0 %v1194_v6 }
  0x60   :  { %1102 = vmatpush3.bf16.msra.mxu0 %v1192_v16 }
  0x63   :  { %1104 = vmatmul.mubr.bf16.vlgmr.msra.gmra.mxu0 %v1193_v17 }
  0xe3   :  { %v1006_v18 = vpop.f32.mrf.mxu0 }
  0xe4   :  { %v1028_v19 = vpop.f32.mrf.mxu1 }
  0xe5   :  { %v1007_v20 = vpop.f32.mrf.mxu0 }
  0xe6   :  { %v1029_v21 = vpop.f32.mrf.mxu1  ;;  %v1008_v31 = vadd.f32 %v1007_v20, %v1006_v18 }
  0xe7   :  { %v1009_v22 = vpop.f32.mrf.mxu0  ;;  %v1030_v32 = vadd.f32 %v1029_v21, %v1028_v19 }
  0xe8   :  { %v1031_v23 = vpop.f32.mrf.mxu1 }
  0xe9   :  { %v1010_v24 = vpop.f32.mrf.mxu0  ;;  %v734_v36 = vadd.f32 %v1030_v32, %v1008_v31 }
  0xea   :  { %v1032_v26 = vpop.f32.mrf.mxu1  ;;  %v1011_v37 = vadd.f32 %v1010_v24, %v1009_v22 }
  0xeb   :  { %v1033_v38 = vadd.f32 %v1032_v26, %v1031_v23 }
  0xed   :  { %v737_v43 = vadd.f32 %v1033_v38, %v1011_v37 }
 0x103   :  { %v1050_v25 = vpop.f32.mrf.mxu0 }
 0x105   :  { %v1051_v27 = vpop.f32.mrf.mxu0  ;;  %v1072_v28 = vpop.f32.mrf.mxu1 }
 0x106   :  { %v1052_v33 = vadd.f32 %v1051_v27, %v1050_v25 }
 0x107   :  { %v1053_v29 = vpop.f32.mrf.mxu0  ;;  %v1073_v30 = vpop.f32.mrf.mxu1 }
 0x108   :  { %v775_v39 = vadd.f32 %v1052_v33, %v734_v36  ;;  %v1074_v40 = vadd.f32 %v1073_v30, %v1072_v28 }
 0x109   :  { %v1054_v34 = vpop.f32.mrf.mxu0  ;;  %v1075_v35 = vpop.f32.mrf.mxu1 }
 0x10a   :  { %v1055_v41 = vadd.f32 %v1054_v34, %v1053_v29  ;;  %v816_v46 = vadd.f32 %v1074_v40, %v775_v39 }
 0x10b   :  { %v1076_v42 = vpop.f32.mrf.mxu1 }
 0x10c   :  { %v778_v44 = vadd.f32 %v1055_v41, %v737_v43  ;;  %v1077_v45 = vadd.f32 %v1076_v42, %v1075_v35 }
 0x10e   :  { %v819_v51 = vadd.f32 %v1077_v45, %v778_v44 }
 0x123   :  { %v856_v47 = vpop.f32.mrf.mxu0 }
 0x124   :  { %v857_v48 = vadd.f32 %v856_v47, %v816_v46 }
 0x125   :  { %v1105_v50 = vpop.f32.mrf.mxu0 }
 0x126   :  { %v879_v53 = vadd.f32 %v980_v49, %v857_v48 }
 0x127   :  { %v859_v52 = vpop.f32.mrf.mxu0 }
 0x128   :  { %v860_v54 = vadd.f32 %v859_v52, %v819_v51  ;;  %v883_v59 = vadd.f32 %v881_v55, %v879_v53 }
 0x129   :  { %v1106_v57 = vpop.f32.mrf.mxu0 }
 0x12a   :  { %v880_v58 = vadd.f32 %v980_v49, %v860_v54 }
 0x12c   :  { %v884_v60 = vadd.f32 %v882_v56, %v880_v58 }
 0x12e   :  { %v988_v61 = vpack.c.bf16 %v884_v60, %v883_v59 }
 0x130   :  { %989 = vst [vmem:[%s1480_s4] sm:$0xff] %v988_v61  }

</bundles_post_ra>
